<compile_context>
chip_gen: v5e
topology: v5e:2x2
jax: 0.10.0
libtpu: 0.0.40
codegen_flags: <defaults>
</compile_context>

<pallas_src>
import numpy as np
import jax
import jax.numpy as jnp
from jax import lax
from jax.experimental import pallas as pl
from jax.experimental.pallas import tpu as pltpu


def pnet_kernel(x_ref, w1_ref, b1_ref, w2_ref, b2_ref, w3_ref, b3_ref,
                wh_ref, bh_ref, al_ref, out_ref, rm_ref, p1_ref, h2_ref):
    f32, bf16 = jnp.float32, jnp.bfloat16
    IPS, H, W, _ = x_ref.shape
    H1, W1 = H - 2, W - 2
    Hp, Wp = H1 // 2, W1 // 2
    H2, W2 = Hp - 2, Wp - 2
    H3, W3 = H2 - 2, W2 - 2

    # Hoisted layer constants (tiny; VMEM-resident across the whole step).
    w1 = w1_ref[...]                    # (27, 10)  bf16
    w2 = w2_ref[...]                    # (90, 16)  bf16
    w3 = w3_ref[...]                    # (144, 32) bf16
    wh = wh_ref[...]                    # (32, 5)   bf16 (merged heads)
    b1 = b1_ref[...]                    # (1, 10)   f32
    b2 = b2_ref[...]                    # (1, 16)   f32
    b3 = b3_ref[...]                    # (1, 32)   f32
    bh = bh_ref[...]                    # (1, 5)    f32
    a1 = al_ref[0]                      # shared PReLU alphas from SMEM
    a2 = al_ref[1]
    a3 = al_ref[2]

    def prelu(v, a):
        return jnp.where(v >= 0.0, v, a * v)

    def im2col_row(ref, b, ho, Wo):
        # One conv output row as a (Wo, 3*3*Cin) patch matrix; concat order
        # (kh, kw, cin) matches w.reshape(KH*KW*Cin, Cout) done in the wrapper.
        return jnp.concatenate(
            [ref[b, ho + kh, kw:kw + Wo, :]
             for kh in range(3) for kw in range(3)], axis=-1)

    ch0 = lax.broadcasted_iota(jnp.int32, (H3, W3, 5), 2) == 0  # face-prob lane

    for b in range(IPS):
        # ---- conv1 (3 -> 10) fused with the 2x2/2 maxpool -------------------
        # PReLU (alpha > 0) and the per-channel bias commute with max, so both
        # are applied only to the pooled elements.
        for hp in range(Hp):
            r0 = jnp.dot(im2col_row(x_ref, b, 2 * hp, W1), w1,
                         preferred_element_type=f32)            # (W1, 10)
            r1 = jnp.dot(im2col_row(x_ref, b, 2 * hp + 1, W1), w1,
                         preferred_element_type=f32)
            rm_ref[...] = jnp.maximum(r0, r1)                   # row-pair max
            pooled = jnp.maximum(rm_ref[pl.ds(0, Wp, stride=2), :],
                                 rm_ref[pl.ds(1, Wp, stride=2), :])  # (Wp, 10)
            p1_ref[b, hp] = prelu(pooled + b1, a1).astype(bf16)

        # ---- conv2 (10 -> 16) + PReLU ---------------------------------------
        for ho in range(H2):
            v = jnp.dot(im2col_row(p1_ref, b, ho, W2), w2,
                        preferred_element_type=f32)             # (W2, 16)
            h2_ref[b, ho] = prelu(v + b2, a2).astype(bf16)

        # ---- conv3 (16 -> 32) + PReLU, fused with the merged 1x1 heads ------
        rows = []
        for ho in range(H3):
            v = jnp.dot(im2col_row(h2_ref, b, ho, W3), w3,
                        preferred_element_type=f32)             # (W3, 32)
            v = prelu(v + b3, a3).astype(bf16)
            rows.append(jnp.dot(v, wh, preferred_element_type=f32) + bh)
        logits = jnp.stack(rows, axis=0)                        # (H3, W3, 5)
        out_ref[b] = jnp.where(ch0, jax.nn.sigmoid(logits), logits)  # 1 store


def pnet_forward(x_nchw, p):
    f32, bf16 = jnp.float32, jnp.bfloat16
    x = jnp.transpose(x_nchw, (0, 2, 3, 1)).astype(bf16)        # NHWC
    N, H, W, Cin = x.shape
    H1, W1 = H - 2, W - 2
    Hp, Wp = H1 // 2, W1 // 2
    H2, W2 = Hp - 2, Wp - 2
    H3, W3 = H2 - 2, W2 - 2

    # Pre-reshape conv weights to im2col layout (KH*KW*Cin, Cout) in XLA.
    w1 = p['w1'].reshape(-1, 10).astype(bf16)                   # (27, 10)
    w2 = p['w2'].reshape(-1, 16).astype(bf16)                   # (90, 16)
    w3 = p['w3'].reshape(-1, 32).astype(bf16)                   # (144, 32)
    wh = jnp.concatenate([p['w41'], p['w42']], axis=1).astype(bf16)   # (32, 5)
    bh = jnp.concatenate([p['b41'], p['b42']], axis=1).astype(f32)    # (1, 5)
    alphas = jnp.concatenate([p['a1'].reshape(1), p['a2'].reshape(1),
                              p['a3'].reshape(1)]).astype(f32)        # (3,)

    # Images per grid step: >= 2 grid steps whenever N >= 2 (v7x has 2 TCs),
    # larger blocks for big N to amortize the ~0.35us per-step overhead, and
    # pad N so there is no divisibility cliff.
    ips = max(1, min(32, (N + 1) // 2))
    n_steps = -(-N // ips)
    Npad = n_steps * ips
    if Npad != N:
        x = jnp.pad(x, ((0, Npad - N), (0, 0), (0, 0), (0, 0)))

    ins = (x, w1, p['b1'].astype(f32), w2, p['b2'].astype(f32),
           w3, p['b3'].astype(f32), wh, bh, alphas)

    def full_vmem(a):
        return pl.BlockSpec(a.shape, lambda n, nd=a.ndim: (0,) * nd)

    in_specs = [pl.BlockSpec((ips, H, W, Cin), lambda n: (n, 0, 0, 0))]
    in_specs += [full_vmem(a) for a in ins[1:-1]]
    in_specs += [pl.BlockSpec(memory_space=pltpu.MemorySpace.SMEM)]   # alphas

    out_specs = pl.BlockSpec((ips, H3, W3, 5), lambda n: (n, 0, 0, 0))
    out_shape = jax.ShapeDtypeStruct((Npad, H3, W3, 5), f32)

    scratch = [pltpu.VMEM((W1, 10), f32),              # conv1 row-pair max
               pltpu.VMEM((ips, Hp, Wp, 10), bf16),    # pooled conv1 acts
               pltpu.VMEM((ips, H2, W2, 16), bf16)]    # conv2 acts

    flops = 2 * Npad * (H1 * W1 * 27 * 10 + H2 * W2 * 90 * 16
                        + H3 * W3 * 144 * 32 + H3 * W3 * 32 * 5)
    bytes_acc = int(x.size * 2 + Npad * H3 * W3 * 5 * 4
                    + (w1.size + w2.size + w3.size + wh.size) * 2 + 256)

    out = pl.pallas_call(
        pnet_kernel,
        out_shape=out_shape,
        grid_spec=pltpu.PrefetchScalarGridSpec(
            num_scalar_prefetch=0,
            grid=(n_steps,),
            in_specs=in_specs,
            out_specs=out_specs,
            scratch_shapes=scratch),
        compiler_params=pltpu.CompilerParams(
            dimension_semantics=("parallel",)),
        cost_estimate=pl.CostEstimate(flops=flops,
                                      transcendentals=Npad * H3 * W3,
                                      bytes_accessed=bytes_acc),
    )(*ins)

    out = out[:N]
    cond = jnp.transpose(out[..., 0:1], (0, 3, 1, 2))   # NCHW (N, 1, H3, W3)
    off = jnp.transpose(out[..., 1:5], (0, 3, 1, 2))    # NCHW (N, 4, H3, W3)
    return cond, off


def make_params(key):
    ks = jax.random.split(key, 10)

    def nrm(k, shape, scale):
        return (scale * jax.random.normal(k, shape)).astype(jnp.float32)

    return dict(
        w1=nrm(ks[0], (3, 3, 3, 10), 0.20), b1=nrm(ks[1], (1, 10), 0.05),
        a1=jnp.full((1, 1), 0.25, jnp.float32),
        w2=nrm(ks[2], (3, 3, 10, 16), 0.15), b2=nrm(ks[3], (1, 16), 0.05),
        a2=jnp.full((1, 1), 0.25, jnp.float32),
        w3=nrm(ks[4], (3, 3, 16, 32), 0.12), b3=nrm(ks[5], (1, 32), 0.05),
        a3=jnp.full((1, 1), 0.25, jnp.float32),
        w41=nrm(ks[6], (32, 1), 0.20), b41=nrm(ks[7], (1, 1), 0.05),
        w42=nrm(ks[8], (32, 4), 0.20), b42=nrm(ks[9], (1, 4), 0.05),
    )


def reference_np(x_nchw, p):
    x = np.transpose(x_nchw, (0, 2, 3, 1)).astype(np.float32)

    def conv(x, w, b):
        KH, KW, Cin, Cout = w.shape
        N, H, W, _ = x.shape
        Ho, Wo = H - KH + 1, W - KW + 1
        out = np.zeros((N, Ho, Wo, Cout), np.float32)
        for kh in range(KH):
            for kw in range(KW):
                out += np.einsum('nhwc,co->nhwo',
                                 x[:, kh:kh + Ho, kw:kw + Wo, :], w[kh, kw])
        return out + b.reshape(1, 1, 1, -1)

    def prelu(x, a):
        return np.where(x >= 0, x, float(a.reshape(-1)[0]) * x).astype(np.float32)

    def maxpool(x):
        N, H, W, C = x.shape
        Ho, Wo = H // 2, W // 2
        return x[:, :Ho * 2, :Wo * 2, :].reshape(N, Ho, 2, Wo, 2, C).max(axis=(2, 4))

    h = prelu(conv(x, p['w1'], p['b1']), p['a1'])
    h = maxpool(h)
    h = prelu(conv(h, p['w2'], p['b2']), p['a2'])
    h = prelu(conv(h, p['w3'], p['b3']), p['a3'])
    logit = np.einsum('nhwc,co->nhwo', h, p['w41']) + p['b41'].reshape(1, 1, 1, -1)
    cond = 1.0 / (1.0 + np.exp(-logit))
    off = np.einsum('nhwc,co->nhwo', h, p['w42']) + p['b42'].reshape(1, 1, 1, -1)
    return (np.transpose(cond, (0, 3, 1, 2)).astype(np.float32),
            np.transpose(off, (0, 3, 1, 2)).astype(np.float32))


if __name__ == "__main__":
    key = jax.random.PRNGKey(0)
    kx, kp = jax.random.split(key)

    # PyTorch-style NCHW input: (batch=2, channels=3, H=16, W=16)
    x = jax.random.normal(kx, (2, 3, 16, 16), jnp.float32)
    params = make_params(kp)

    cond, off = pnet_forward(x, params)
    jax.block_until_ready((cond, off))

    # Sanity check against a pure-NumPy f32 reference of the same math.
    np_params = {k: np.asarray(v) for k, v in params.items()}
    cond_ref, off_ref = reference_np(np.asarray(x), np_params)
    assert cond.shape == (2, 1, 3, 3) and off.shape == (2, 4, 3, 3)
    # bf16 matmul operands (f32 accumulation) -> slightly relaxed tolerance.
    np.testing.assert_allclose(np.asarray(cond), cond_ref, rtol=3e-2, atol=3e-2)
    np.testing.assert_allclose(np.asarray(off), off_ref, rtol=3e-2, atol=3e-2)

    print("KERNEL_OK")
</pallas_src>

<mosaic_0001>
module attributes {stable_mosaic.version = 11 : i64} {
  func.func @pnet_kernel(%arg0: i32, %arg1: memref<1x16x16x3xbf16, #tpu.memory_space<vmem>>, %arg2: memref<27x10xbf16, #tpu.memory_space<vmem>>, %arg3: memref<1x10xf32, #tpu.memory_space<vmem>>, %arg4: memref<90x16xbf16, #tpu.memory_space<vmem>>, %arg5: memref<1x16xf32, #tpu.memory_space<vmem>>, %arg6: memref<144x32xbf16, #tpu.memory_space<vmem>>, %arg7: memref<1x32xf32, #tpu.memory_space<vmem>>, %arg8: memref<32x5xbf16, #tpu.memory_space<vmem>>, %arg9: memref<1x5xf32, #tpu.memory_space<vmem>>, %arg10: memref<3xf32, #tpu.memory_space<smem>>, %arg11: memref<1x3x3x5xf32, #tpu.memory_space<vmem>>, %arg12: memref<14x10xf32, #tpu.memory_space<vmem>>, %arg13: memref<1x7x7x10xbf16, #tpu.memory_space<vmem>>, %arg14: memref<1x5x5x16xbf16, #tpu.memory_space<vmem>>) attributes {dimension_semantics = [#tpu.dimension_semantics<parallel>], iteration_bounds = array<i64: 2>, scalar_prefetch = 0 : i64, scratch_operands = 3 : i64, tpu.core_type = #tpu.core_type<tc>, window_params = [{transform_indices = @transform_0, window_bounds = array<i64: 1, 16, 16, 3>}, {pipeline_mode = #tpu.pipeline_mode<synchronous>, transform_indices = @transform_1, window_bounds = array<i64: 27, 10>}, {pipeline_mode = #tpu.pipeline_mode<synchronous>, transform_indices = @transform_2, window_bounds = array<i64: 1, 10>}, {pipeline_mode = #tpu.pipeline_mode<synchronous>, transform_indices = @transform_3, window_bounds = array<i64: 90, 16>}, {pipeline_mode = #tpu.pipeline_mode<synchronous>, transform_indices = @transform_4, window_bounds = array<i64: 1, 16>}, {pipeline_mode = #tpu.pipeline_mode<synchronous>, transform_indices = @transform_5, window_bounds = array<i64: 144, 32>}, {pipeline_mode = #tpu.pipeline_mode<synchronous>, transform_indices = @transform_6, window_bounds = array<i64: 1, 32>}, {pipeline_mode = #tpu.pipeline_mode<synchronous>, transform_indices = @transform_7, window_bounds = array<i64: 32, 5>}, {pipeline_mode = #tpu.pipeline_mode<synchronous>, transform_indices = @transform_8, window_bounds = array<i64: 1, 5>}, {transform_indices = @transform_9, window_bounds = array<i64: 3>}, {transform_indices = @transform_10, window_bounds = array<i64: 1, 3, 3, 5>}]} {
    %c0 = arith.constant 0 : index
    %c0_0 = arith.constant 0 : index
    %0 = vector.load %arg2[%c0, %c0_0] : memref<27x10xbf16, #tpu.memory_space<vmem>>, vector<27x10xbf16>
    %c0_1 = arith.constant 0 : index
    %c0_2 = arith.constant 0 : index
    %1 = vector.load %arg4[%c0_1, %c0_2] : memref<90x16xbf16, #tpu.memory_space<vmem>>, vector<90x16xbf16>
    %c0_3 = arith.constant 0 : index
    %c0_4 = arith.constant 0 : index
    %2 = vector.load %arg6[%c0_3, %c0_4] : memref<144x32xbf16, #tpu.memory_space<vmem>>, vector<144x32xbf16>
    %c0_5 = arith.constant 0 : index
    %c0_6 = arith.constant 0 : index
    %3 = vector.load %arg8[%c0_5, %c0_6] : memref<32x5xbf16, #tpu.memory_space<vmem>>, vector<32x5xbf16>
    %c0_7 = arith.constant 0 : index
    %c0_8 = arith.constant 0 : index
    %4 = vector.load %arg3[%c0_7, %c0_8] : memref<1x10xf32, #tpu.memory_space<vmem>>, vector<1x10xf32>
    %c0_9 = arith.constant 0 : index
    %c0_10 = arith.constant 0 : index
    %5 = vector.load %arg5[%c0_9, %c0_10] : memref<1x16xf32, #tpu.memory_space<vmem>>, vector<1x16xf32>
    %c0_11 = arith.constant 0 : index
    %c0_12 = arith.constant 0 : index
    %6 = vector.load %arg7[%c0_11, %c0_12] : memref<1x32xf32, #tpu.memory_space<vmem>>, vector<1x32xf32>
    %c0_13 = arith.constant 0 : index
    %c0_14 = arith.constant 0 : index
    %7 = vector.load %arg9[%c0_13, %c0_14] : memref<1x5xf32, #tpu.memory_space<vmem>>, vector<1x5xf32>
    %c0_15 = arith.constant 0 : index
    %8 = memref.load %arg10[%c0_15] : memref<3xf32, #tpu.memory_space<smem>>
    %c1 = arith.constant 1 : index
    %9 = memref.load %arg10[%c1] : memref<3xf32, #tpu.memory_space<smem>>
    %c2 = arith.constant 2 : index
    %10 = memref.load %arg10[%c2] : memref<3xf32, #tpu.memory_space<smem>>
    %11 = tpu.iota {dimensions = array<i32: 2>} : vector<3x3x5xi32>
    %c0_i32 = arith.constant 0 : i32
    %12 = vector.broadcast %c0_i32 : i32 to vector<3x3x5xi32>
    %13 = arith.cmpi eq, %11, %12 : vector<3x3x5xi32>
    %c0_16 = arith.constant 0 : index
    %c0_17 = arith.constant 0 : index
    %c0_18 = arith.constant 0 : index
    %c0_19 = arith.constant 0 : index
    %14 = vector.load %arg1[%c0_16, %c0_17, %c0_18, %c0_19] : memref<1x16x16x3xbf16, #tpu.memory_space<vmem>>, vector<1x1x14x3xbf16>
    %15 = vector.shape_cast %14 : vector<1x1x14x3xbf16> to vector<14x3xbf16>
    %c0_20 = arith.constant 0 : index
    %c0_21 = arith.constant 0 : index
    %c1_22 = arith.constant 1 : index
    %c0_23 = arith.constant 0 : index
    %16 = vector.load %arg1[%c0_20, %c0_21, %c1_22, %c0_23] : memref<1x16x16x3xbf16, #tpu.memory_space<vmem>>, vector<1x1x14x3xbf16>
    %17 = vector.shape_cast %16 : vector<1x1x14x3xbf16> to vector<14x3xbf16>
    %c0_24 = arith.constant 0 : index
    %c0_25 = arith.constant 0 : index
    %c2_26 = arith.constant 2 : index
    %c0_27 = arith.constant 0 : index
    %18 = vector.load %arg1[%c0_24, %c0_25, %c2_26, %c0_27] : memref<1x16x16x3xbf16, #tpu.memory_space<vmem>>, vector<1x1x14x3xbf16>
    %19 = vector.shape_cast %18 : vector<1x1x14x3xbf16> to vector<14x3xbf16>
    %c0_28 = arith.constant 0 : index
    %c1_29 = arith.constant 1 : index
    %c0_30 = arith.constant 0 : index
    %c0_31 = arith.constant 0 : index
    %20 = vector.load %arg1[%c0_28, %c1_29, %c0_30, %c0_31] : memref<1x16x16x3xbf16, #tpu.memory_space<vmem>>, vector<1x1x14x3xbf16>
    %21 = vector.shape_cast %20 : vector<1x1x14x3xbf16> to vector<14x3xbf16>
    %c0_32 = arith.constant 0 : index
    %c1_33 = arith.constant 1 : index
    %c1_34 = arith.constant 1 : index
    %c0_35 = arith.constant 0 : index
    %22 = vector.load %arg1[%c0_32, %c1_33, %c1_34, %c0_35] : memref<1x16x16x3xbf16, #tpu.memory_space<vmem>>, vector<1x1x14x3xbf16>
    %23 = vector.shape_cast %22 : vector<1x1x14x3xbf16> to vector<14x3xbf16>
    %c0_36 = arith.constant 0 : index
    %c1_37 = arith.constant 1 : index
    %c2_38 = arith.constant 2 : index
    %c0_39 = arith.constant 0 : index
    %24 = vector.load %arg1[%c0_36, %c1_37, %c2_38, %c0_39] : memref<1x16x16x3xbf16, #tpu.memory_space<vmem>>, vector<1x1x14x3xbf16>
    %25 = vector.shape_cast %24 : vector<1x1x14x3xbf16> to vector<14x3xbf16>
    %c0_40 = arith.constant 0 : index
    %c2_41 = arith.constant 2 : index
    %c0_42 = arith.constant 0 : index
    %c0_43 = arith.constant 0 : index
    %26 = vector.load %arg1[%c0_40, %c2_41, %c0_42, %c0_43] : memref<1x16x16x3xbf16, #tpu.memory_space<vmem>>, vector<1x1x14x3xbf16>
    %27 = vector.shape_cast %26 : vector<1x1x14x3xbf16> to vector<14x3xbf16>
    %c0_44 = arith.constant 0 : index
    %c2_45 = arith.constant 2 : index
    %c1_46 = arith.constant 1 : index
    %c0_47 = arith.constant 0 : index
    %28 = vector.load %arg1[%c0_44, %c2_45, %c1_46, %c0_47] : memref<1x16x16x3xbf16, #tpu.memory_space<vmem>>, vector<1x1x14x3xbf16>
    %29 = vector.shape_cast %28 : vector<1x1x14x3xbf16> to vector<14x3xbf16>
    %c0_48 = arith.constant 0 : index
    %c2_49 = arith.constant 2 : index
    %c2_50 = arith.constant 2 : index
    %c0_51 = arith.constant 0 : index
    %30 = vector.load %arg1[%c0_48, %c2_49, %c2_50, %c0_51] : memref<1x16x16x3xbf16, #tpu.memory_space<vmem>>, vector<1x1x14x3xbf16>
    %31 = vector.shape_cast %30 : vector<1x1x14x3xbf16> to vector<14x3xbf16>
    %32 = tpu.concatenate %15, %17, %19, %21, %23, %25, %27, %29, %31 in 1 : vector<14x3xbf16>, vector<14x3xbf16>, vector<14x3xbf16>, vector<14x3xbf16>, vector<14x3xbf16>, vector<14x3xbf16>, vector<14x3xbf16>, vector<14x3xbf16>, vector<14x3xbf16> -> vector<14x27xbf16>
    %cst = arith.constant dense<0.000000e+00> : vector<14x10xf32>
    %33 = tpu.matmul %32, %0, %cst {dimension_numbers = #tpu.dot_dimension_numbers<[1], [0], [0], [1], [0, 0, 1, 1], [], []>} : vector<14x27xbf16>, vector<27x10xbf16>, vector<14x10xf32> -> vector<14x10xf32>
    %c0_52 = arith.constant 0 : index
    %c1_53 = arith.constant 1 : index
    %c0_54 = arith.constant 0 : index
    %c0_55 = arith.constant 0 : index
    %34 = vector.load %arg1[%c0_52, %c1_53, %c0_54, %c0_55] : memref<1x16x16x3xbf16, #tpu.memory_space<vmem>>, vector<1x1x14x3xbf16>
    %35 = vector.shape_cast %34 : vector<1x1x14x3xbf16> to vector<14x3xbf16>
    %c0_56 = arith.constant 0 : index
    %c1_57 = arith.constant 1 : index
    %c1_58 = arith.constant 1 : index
    %c0_59 = arith.constant 0 : index
    %36 = vector.load %arg1[%c0_56, %c1_57, %c1_58, %c0_59] : memref<1x16x16x3xbf16, #tpu.memory_space<vmem>>, vector<1x1x14x3xbf16>
    %37 = vector.shape_cast %36 : vector<1x1x14x3xbf16> to vector<14x3xbf16>
    %c0_60 = arith.constant 0 : index
    %c1_61 = arith.constant 1 : index
    %c2_62 = arith.constant 2 : index
    %c0_63 = arith.constant 0 : index
    %38 = vector.load %arg1[%c0_60, %c1_61, %c2_62, %c0_63] : memref<1x16x16x3xbf16, #tpu.memory_space<vmem>>, vector<1x1x14x3xbf16>
    %39 = vector.shape_cast %38 : vector<1x1x14x3xbf16> to vector<14x3xbf16>
    %c0_64 = arith.constant 0 : index
    %c2_65 = arith.constant 2 : index
    %c0_66 = arith.constant 0 : index
    %c0_67 = arith.constant 0 : index
    %40 = vector.load %arg1[%c0_64, %c2_65, %c0_66, %c0_67] : memref<1x16x16x3xbf16, #tpu.memory_space<vmem>>, vector<1x1x14x3xbf16>
    %41 = vector.shape_cast %40 : vector<1x1x14x3xbf16> to vector<14x3xbf16>
    %c0_68 = arith.constant 0 : index
    %c2_69 = arith.constant 2 : index
    %c1_70 = arith.constant 1 : index
    %c0_71 = arith.constant 0 : index
    %42 = vector.load %arg1[%c0_68, %c2_69, %c1_70, %c0_71] : memref<1x16x16x3xbf16, #tpu.memory_space<vmem>>, vector<1x1x14x3xbf16>
    %43 = vector.shape_cast %42 : vector<1x1x14x3xbf16> to vector<14x3xbf16>
    %c0_72 = arith.constant 0 : index
    %c2_73 = arith.constant 2 : index
    %c2_74 = arith.constant 2 : index
    %c0_75 = arith.constant 0 : index
    %44 = vector.load %arg1[%c0_72, %c2_73, %c2_74, %c0_75] : memref<1x16x16x3xbf16, #tpu.memory_space<vmem>>, vector<1x1x14x3xbf16>
    %45 = vector.shape_cast %44 : vector<1x1x14x3xbf16> to vector<14x3xbf16>
    %c0_76 = arith.constant 0 : index
    %c3 = arith.constant 3 : index
    %c0_77 = arith.constant 0 : index
    %c0_78 = arith.constant 0 : index
    %46 = vector.load %arg1[%c0_76, %c3, %c0_77, %c0_78] : memref<1x16x16x3xbf16, #tpu.memory_space<vmem>>, vector<1x1x14x3xbf16>
    %47 = vector.shape_cast %46 : vector<1x1x14x3xbf16> to vector<14x3xbf16>
    %c0_79 = arith.constant 0 : index
    %c3_80 = arith.constant 3 : index
    %c1_81 = arith.constant 1 : index
    %c0_82 = arith.constant 0 : index
    %48 = vector.load %arg1[%c0_79, %c3_80, %c1_81, %c0_82] : memref<1x16x16x3xbf16, #tpu.memory_space<vmem>>, vector<1x1x14x3xbf16>
    %49 = vector.shape_cast %48 : vector<1x1x14x3xbf16> to vector<14x3xbf16>
    %c0_83 = arith.constant 0 : index
    %c3_84 = arith.constant 3 : index
    %c2_85 = arith.constant 2 : index
    %c0_86 = arith.constant 0 : index
    %50 = vector.load %arg1[%c0_83, %c3_84, %c2_85, %c0_86] : memref<1x16x16x3xbf16, #tpu.memory_space<vmem>>, vector<1x1x14x3xbf16>
    %51 = vector.shape_cast %50 : vector<1x1x14x3xbf16> to vector<14x3xbf16>
    %52 = tpu.concatenate %35, %37, %39, %41, %43, %45, %47, %49, %51 in 1 : vector<14x3xbf16>, vector<14x3xbf16>, vector<14x3xbf16>, vector<14x3xbf16>, vector<14x3xbf16>, vector<14x3xbf16>, vector<14x3xbf16>, vector<14x3xbf16>, vector<14x3xbf16> -> vector<14x27xbf16>
    %cst_87 = arith.constant dense<0.000000e+00> : vector<14x10xf32>
    %53 = tpu.matmul %52, %0, %cst_87 {dimension_numbers = #tpu.dot_dimension_numbers<[1], [0], [0], [1], [0, 0, 1, 1], [], []>} : vector<14x27xbf16>, vector<27x10xbf16>, vector<14x10xf32> -> vector<14x10xf32>
    %54 = arith.maximumf %33, %53 : vector<14x10xf32>
    %c0_88 = arith.constant 0 : index
    %c0_89 = arith.constant 0 : index
    %55 = vector.load %arg12[%c0_88, %c0_89] : memref<14x10xf32, #tpu.memory_space<vmem>>, vector<14x10xf32>
    tpu.vector_store %arg12[%c0_88, %c0_89], %54 {strides = array<i32>} : memref<14x10xf32, #tpu.memory_space<vmem>>, vector<14x10xf32>,
    %c0_90 = arith.constant 0 : index
    %c0_91 = arith.constant 0 : index
    %56 = tpu.strided_load %arg12[%c0_90, %c0_91] {strides = array<i32: 2, 1>} : memref<14x10xf32, #tpu.memory_space<vmem>>, vector<7x10xf32>
    %c1_92 = arith.constant 1 : index
    %c0_93 = arith.constant 0 : index
    %57 = tpu.strided_load %arg12[%c1_92, %c0_93] {strides = array<i32: 2, 1>} : memref<14x10xf32, #tpu.memory_space<vmem>>, vector<7x10xf32>
    %58 = arith.maximumf %56, %57 : vector<7x10xf32>
    %59 = vector.broadcast %4 : vector<1x10xf32> to vector<7x10xf32>
    %60 = arith.addf %58, %59 : vector<7x10xf32>
    %cst_94 = arith.constant 0.000000e+00 : f32
    %61 = vector.broadcast %cst_94 : f32 to vector<7x10xf32>
    %62 = arith.cmpf oge, %60, %61 : vector<7x10xf32>
    %63 = vector.broadcast %8 : f32 to vector<7x10xf32>
    %64 = arith.mulf %63, %60 : vector<7x10xf32>
    %65 = arith.select %62, %60, %64 : vector<7x10xi1>, vector<7x10xf32>
    %66 = arith.truncf %65 : vector<7x10xf32> to vector<7x10xbf16>
    %c0_95 = arith.constant 0 : index
    %c0_96 = arith.constant 0 : index
    %c0_97 = arith.constant 0 : index
    %c0_98 = arith.constant 0 : index
    %67 = vector.load %arg13[%c0_95, %c0_96, %c0_97, %c0_98] : memref<1x7x7x10xbf16, #tpu.memory_space<vmem>>, vector<1x1x7x10xbf16>
    %68 = vector.shape_cast %67 : vector<1x1x7x10xbf16> to vector<7x10xbf16>
    %69 = vector.shape_cast %66 : vector<7x10xbf16> to vector<1x1x7x10xbf16>
    tpu.vector_store %arg13[%c0_95, %c0_96, %c0_97, %c0_98], %69 {strides = array<i32>} : memref<1x7x7x10xbf16, #tpu.memory_space<vmem>>, vector<1x1x7x10xbf16>,
    %c0_99 = arith.constant 0 : index
    %c2_100 = arith.constant 2 : index
    %c0_101 = arith.constant 0 : index
    %c0_102 = arith.constant 0 : index
    %70 = vector.load %arg1[%c0_99, %c2_100, %c0_101, %c0_102] : memref<1x16x16x3xbf16, #tpu.memory_space<vmem>>, vector<1x1x14x3xbf16>
    %71 = vector.shape_cast %70 : vector<1x1x14x3xbf16> to vector<14x3xbf16>
    %c0_103 = arith.constant 0 : index
    %c2_104 = arith.constant 2 : index
    %c1_105 = arith.constant 1 : index
    %c0_106 = arith.constant 0 : index
    %72 = vector.load %arg1[%c0_103, %c2_104, %c1_105, %c0_106] : memref<1x16x16x3xbf16, #tpu.memory_space<vmem>>, vector<1x1x14x3xbf16>
    %73 = vector.shape_cast %72 : vector<1x1x14x3xbf16> to vector<14x3xbf16>
    %c0_107 = arith.constant 0 : index
    %c2_108 = arith.constant 2 : index
    %c2_109 = arith.constant 2 : index
    %c0_110 = arith.constant 0 : index
    %74 = vector.load %arg1[%c0_107, %c2_108, %c2_109, %c0_110] : memref<1x16x16x3xbf16, #tpu.memory_space<vmem>>, vector<1x1x14x3xbf16>
    %75 = vector.shape_cast %74 : vector<1x1x14x3xbf16> to vector<14x3xbf16>
    %c0_111 = arith.constant 0 : index
    %c3_112 = arith.constant 3 : index
    %c0_113 = arith.constant 0 : index
    %c0_114 = arith.constant 0 : index
    %76 = vector.load %arg1[%c0_111, %c3_112, %c0_113, %c0_114] : memref<1x16x16x3xbf16, #tpu.memory_space<vmem>>, vector<1x1x14x3xbf16>
    %77 = vector.shape_cast %76 : vector<1x1x14x3xbf16> to vector<14x3xbf16>
    %c0_115 = arith.constant 0 : index
    %c3_116 = arith.constant 3 : index
    %c1_117 = arith.constant 1 : index
    %c0_118 = arith.constant 0 : index
    %78 = vector.load %arg1[%c0_115, %c3_116, %c1_117, %c0_118] : memref<1x16x16x3xbf16, #tpu.memory_space<vmem>>, vector<1x1x14x3xbf16>
    %79 = vector.shape_cast %78 : vector<1x1x14x3xbf16> to vector<14x3xbf16>
    %c0_119 = arith.constant 0 : index
    %c3_120 = arith.constant 3 : index
    %c2_121 = arith.constant 2 : index
    %c0_122 = arith.constant 0 : index
    %80 = vector.load %arg1[%c0_119, %c3_120, %c2_121, %c0_122] : memref<1x16x16x3xbf16, #tpu.memory_space<vmem>>, vector<1x1x14x3xbf16>
    %81 = vector.shape_cast %80 : vector<1x1x14x3xbf16> to vector<14x3xbf16>
    %c0_123 = arith.constant 0 : index
    %c4 = arith.constant 4 : index
    %c0_124 = arith.constant 0 : index
    %c0_125 = arith.constant 0 : index
    %82 = vector.load %arg1[%c0_123, %c4, %c0_124, %c0_125] : memref<1x16x16x3xbf16, #tpu.memory_space<vmem>>, vector<1x1x14x3xbf16>
    %83 = vector.shape_cast %82 : vector<1x1x14x3xbf16> to vector<14x3xbf16>
    %c0_126 = arith.constant 0 : index
    %c4_127 = arith.constant 4 : index
    %c1_128 = arith.constant 1 : index
    %c0_129 = arith.constant 0 : index
    %84 = vector.load %arg1[%c0_126, %c4_127, %c1_128, %c0_129] : memref<1x16x16x3xbf16, #tpu.memory_space<vmem>>, vector<1x1x14x3xbf16>
    %85 = vector.shape_cast %84 : vector<1x1x14x3xbf16> to vector<14x3xbf16>
    %c0_130 = arith.constant 0 : index
    %c4_131 = arith.constant 4 : index
    %c2_132 = arith.constant 2 : index
    %c0_133 = arith.constant 0 : index
    %86 = vector.load %arg1[%c0_130, %c4_131, %c2_132, %c0_133] : memref<1x16x16x3xbf16, #tpu.memory_space<vmem>>, vector<1x1x14x3xbf16>
    %87 = vector.shape_cast %86 : vector<1x1x14x3xbf16> to vector<14x3xbf16>
    %88 = tpu.concatenate %71, %73, %75, %77, %79, %81, %83, %85, %87 in 1 : vector<14x3xbf16>, vector<14x3xbf16>, vector<14x3xbf16>, vector<14x3xbf16>, vector<14x3xbf16>, vector<14x3xbf16>, vector<14x3xbf16>, vector<14x3xbf16>, vector<14x3xbf16> -> vector<14x27xbf16>
    %cst_134 = arith.constant dense<0.000000e+00> : vector<14x10xf32>
    %89 = tpu.matmul %88, %0, %cst_134 {dimension_numbers = #tpu.dot_dimension_numbers<[1], [0], [0], [1], [0, 0, 1, 1], [], []>} : vector<14x27xbf16>, vector<27x10xbf16>, vector<14x10xf32> -> vector<14x10xf32>
    %c0_135 = arith.constant 0 : index
    %c3_136 = arith.constant 3 : index
    %c0_137 = arith.constant 0 : index
    %c0_138 = arith.constant 0 : index
    %90 = vector.load %arg1[%c0_135, %c3_136, %c0_137, %c0_138] : memref<1x16x16x3xbf16, #tpu.memory_space<vmem>>, vector<1x1x14x3xbf16>
    %91 = vector.shape_cast %90 : vector<1x1x14x3xbf16> to vector<14x3xbf16>
    %c0_139 = arith.constant 0 : index
    %c3_140 = arith.constant 3 : index
    %c1_141 = arith.constant 1 : index
    %c0_142 = arith.constant 0 : index
    %92 = vector.load %arg1[%c0_139, %c3_140, %c1_141, %c0_142] : memref<1x16x16x3xbf16, #tpu.memory_space<vmem>>, vector<1x1x14x3xbf16>
    %93 = vector.shape_cast %92 : vector<1x1x14x3xbf16> to vector<14x3xbf16>
    %c0_143 = arith.constant 0 : index
    %c3_144 = arith.constant 3 : index
    %c2_145 = arith.constant 2 : index
    %c0_146 = arith.constant 0 : index
    %94 = vector.load %arg1[%c0_143, %c3_144, %c2_145, %c0_146] : memref<1x16x16x3xbf16, #tpu.memory_space<vmem>>, vector<1x1x14x3xbf16>
    %95 = vector.shape_cast %94 : vector<1x1x14x3xbf16> to vector<14x3xbf16>
    %c0_147 = arith.constant 0 : index
    %c4_148 = arith.constant 4 : index
    %c0_149 = arith.constant 0 : index
    %c0_150 = arith.constant 0 : index
    %96 = vector.load %arg1[%c0_147, %c4_148, %c0_149, %c0_150] : memref<1x16x16x3xbf16, #tpu.memory_space<vmem>>, vector<1x1x14x3xbf16>
    %97 = vector.shape_cast %96 : vector<1x1x14x3xbf16> to vector<14x3xbf16>
    %c0_151 = arith.constant 0 : index
    %c4_152 = arith.constant 4 : index
    %c1_153 = arith.constant 1 : index
    %c0_154 = arith.constant 0 : index
    %98 = vector.load %arg1[%c0_151, %c4_152, %c1_153, %c0_154] : memref<1x16x16x3xbf16, #tpu.memory_space<vmem>>, vector<1x1x14x3xbf16>
    %99 = vector.shape_cast %98 : vector<1x1x14x3xbf16> to vector<14x3xbf16>
    %c0_155 = arith.constant 0 : index
    %c4_156 = arith.constant 4 : index
    %c2_157 = arith.constant 2 : index
    %c0_158 = arith.constant 0 : index
    %100 = vector.load %arg1[%c0_155, %c4_156, %c2_157, %c0_158] : memref<1x16x16x3xbf16, #tpu.memory_space<vmem>>, vector<1x1x14x3xbf16>
    %101 = vector.shape_cast %100 : vector<1x1x14x3xbf16> to vector<14x3xbf16>
    %c0_159 = arith.constant 0 : index
    %c5 = arith.constant 5 : index
    %c0_160 = arith.constant 0 : index
    %c0_161 = arith.constant 0 : index
    %102 = vector.load %arg1[%c0_159, %c5, %c0_160, %c0_161] : memref<1x16x16x3xbf16, #tpu.memory_space<vmem>>, vector<1x1x14x3xbf16>
    %103 = vector.shape_cast %102 : vector<1x1x14x3xbf16> to vector<14x3xbf16>
    %c0_162 = arith.constant 0 : index
    %c5_163 = arith.constant 5 : index
    %c1_164 = arith.constant 1 : index
    %c0_165 = arith.constant 0 : index
    %104 = vector.load %arg1[%c0_162, %c5_163, %c1_164, %c0_165] : memref<1x16x16x3xbf16, #tpu.memory_space<vmem>>, vector<1x1x14x3xbf16>
    %105 = vector.shape_cast %104 : vector<1x1x14x3xbf16> to vector<14x3xbf16>
    %c0_166 = arith.constant 0 : index
    %c5_167 = arith.constant 5 : index
    %c2_168 = arith.constant 2 : index
    %c0_169 = arith.constant 0 : index
    %106 = vector.load %arg1[%c0_166, %c5_167, %c2_168, %c0_169] : memref<1x16x16x3xbf16, #tpu.memory_space<vmem>>, vector<1x1x14x3xbf16>
    %107 = vector.shape_cast %106 : vector<1x1x14x3xbf16> to vector<14x3xbf16>
    %108 = tpu.concatenate %91, %93, %95, %97, %99, %101, %103, %105, %107 in 1 : vector<14x3xbf16>, vector<14x3xbf16>, vector<14x3xbf16>, vector<14x3xbf16>, vector<14x3xbf16>, vector<14x3xbf16>, vector<14x3xbf16>, vector<14x3xbf16>, vector<14x3xbf16> -> vector<14x27xbf16>
    %cst_170 = arith.constant dense<0.000000e+00> : vector<14x10xf32>
    %109 = tpu.matmul %108, %0, %cst_170 {dimension_numbers = #tpu.dot_dimension_numbers<[1], [0], [0], [1], [0, 0, 1, 1], [], []>} : vector<14x27xbf16>, vector<27x10xbf16>, vector<14x10xf32> -> vector<14x10xf32>
    %110 = arith.maximumf %89, %109 : vector<14x10xf32>
    %c0_171 = arith.constant 0 : index
    %c0_172 = arith.constant 0 : index
    %111 = vector.load %arg12[%c0_171, %c0_172] : memref<14x10xf32, #tpu.memory_space<vmem>>, vector<14x10xf32>
    tpu.vector_store %arg12[%c0_171, %c0_172], %110 {strides = array<i32>} : memref<14x10xf32, #tpu.memory_space<vmem>>, vector<14x10xf32>,
    %c0_173 = arith.constant 0 : index
    %c0_174 = arith.constant 0 : index
    %112 = tpu.strided_load %arg12[%c0_173, %c0_174] {strides = array<i32: 2, 1>} : memref<14x10xf32, #tpu.memory_space<vmem>>, vector<7x10xf32>
    %c1_175 = arith.constant 1 : index
    %c0_176 = arith.constant 0 : index
    %113 = tpu.strided_load %arg12[%c1_175, %c0_176] {strides = array<i32: 2, 1>} : memref<14x10xf32, #tpu.memory_space<vmem>>, vector<7x10xf32>
    %114 = arith.maximumf %112, %113 : vector<7x10xf32>
    %115 = vector.broadcast %4 : vector<1x10xf32> to vector<7x10xf32>
    %116 = arith.addf %114, %115 : vector<7x10xf32>
    %cst_177 = arith.constant 0.000000e+00 : f32
    %117 = vector.broadcast %cst_177 : f32 to vector<7x10xf32>
    %118 = arith.cmpf oge, %116, %117 : vector<7x10xf32>
    %119 = vector.broadcast %8 : f32 to vector<7x10xf32>
    %120 = arith.mulf %119, %116 : vector<7x10xf32>
    %121 = arith.select %118, %116, %120 : vector<7x10xi1>, vector<7x10xf32>
    %122 = arith.truncf %121 : vector<7x10xf32> to vector<7x10xbf16>
    %c0_178 = arith.constant 0 : index
    %c1_179 = arith.constant 1 : index
    %c0_180 = arith.constant 0 : index
    %c0_181 = arith.constant 0 : index
    %123 = vector.load %arg13[%c0_178, %c1_179, %c0_180, %c0_181] : memref<1x7x7x10xbf16, #tpu.memory_space<vmem>>, vector<1x1x7x10xbf16>
    %124 = vector.shape_cast %123 : vector<1x1x7x10xbf16> to vector<7x10xbf16>
    %125 = vector.shape_cast %122 : vector<7x10xbf16> to vector<1x1x7x10xbf16>
    tpu.vector_store %arg13[%c0_178, %c1_179, %c0_180, %c0_181], %125 {strides = array<i32>} : memref<1x7x7x10xbf16, #tpu.memory_space<vmem>>, vector<1x1x7x10xbf16>,
    %c0_182 = arith.constant 0 : index
    %c4_183 = arith.constant 4 : index
    %c0_184 = arith.constant 0 : index
    %c0_185 = arith.constant 0 : index
    %126 = vector.load %arg1[%c0_182, %c4_183, %c0_184, %c0_185] : memref<1x16x16x3xbf16, #tpu.memory_space<vmem>>, vector<1x1x14x3xbf16>
    %127 = vector.shape_cast %126 : vector<1x1x14x3xbf16> to vector<14x3xbf16>
    %c0_186 = arith.constant 0 : index
    %c4_187 = arith.constant 4 : index
    %c1_188 = arith.constant 1 : index
    %c0_189 = arith.constant 0 : index
    %128 = vector.load %arg1[%c0_186, %c4_187, %c1_188, %c0_189] : memref<1x16x16x3xbf16, #tpu.memory_space<vmem>>, vector<1x1x14x3xbf16>
    %129 = vector.shape_cast %128 : vector<1x1x14x3xbf16> to vector<14x3xbf16>
    %c0_190 = arith.constant 0 : index
    %c4_191 = arith.constant 4 : index
    %c2_192 = arith.constant 2 : index
    %c0_193 = arith.constant 0 : index
    %130 = vector.load %arg1[%c0_190, %c4_191, %c2_192, %c0_193] : memref<1x16x16x3xbf16, #tpu.memory_space<vmem>>, vector<1x1x14x3xbf16>
    %131 = vector.shape_cast %130 : vector<1x1x14x3xbf16> to vector<14x3xbf16>
    %c0_194 = arith.constant 0 : index
    %c5_195 = arith.constant 5 : index
    %c0_196 = arith.constant 0 : index
    %c0_197 = arith.constant 0 : index
    %132 = vector.load %arg1[%c0_194, %c5_195, %c0_196, %c0_197] : memref<1x16x16x3xbf16, #tpu.memory_space<vmem>>, vector<1x1x14x3xbf16>
    %133 = vector.shape_cast %132 : vector<1x1x14x3xbf16> to vector<14x3xbf16>
    %c0_198 = arith.constant 0 : index
    %c5_199 = arith.constant 5 : index
    %c1_200 = arith.constant 1 : index
    %c0_201 = arith.constant 0 : index
    %134 = vector.load %arg1[%c0_198, %c5_199, %c1_200, %c0_201] : memref<1x16x16x3xbf16, #tpu.memory_space<vmem>>, vector<1x1x14x3xbf16>
    %135 = vector.shape_cast %134 : vector<1x1x14x3xbf16> to vector<14x3xbf16>
    %c0_202 = arith.constant 0 : index
    %c5_203 = arith.constant 5 : index
    %c2_204 = arith.constant 2 : index
    %c0_205 = arith.constant 0 : index
    %136 = vector.load %arg1[%c0_202, %c5_203, %c2_204, %c0_205] : memref<1x16x16x3xbf16, #tpu.memory_space<vmem>>, vector<1x1x14x3xbf16>
    %137 = vector.shape_cast %136 : vector<1x1x14x3xbf16> to vector<14x3xbf16>
    %c0_206 = arith.constant 0 : index
    %c6 = arith.constant 6 : index
    %c0_207 = arith.constant 0 : index
    %c0_208 = arith.constant 0 : index
    %138 = vector.load %arg1[%c0_206, %c6, %c0_207, %c0_208] : memref<1x16x16x3xbf16, #tpu.memory_space<vmem>>, vector<1x1x14x3xbf16>
    %139 = vector.shape_cast %138 : vector<1x1x14x3xbf16> to vector<14x3xbf16>
    %c0_209 = arith.constant 0 : index
    %c6_210 = arith.constant 6 : index
    %c1_211 = arith.constant 1 : index
    %c0_212 = arith.constant 0 : index
    %140 = vector.load %arg1[%c0_209, %c6_210, %c1_211, %c0_212] : memref<1x16x16x3xbf16, #tpu.memory_space<vmem>>, vector<1x1x14x3xbf16>
    %141 = vector.shape_cast %140 : vector<1x1x14x3xbf16> to vector<14x3xbf16>
    %c0_213 = arith.constant 0 : index
    %c6_214 = arith.constant 6 : index
    %c2_215 = arith.constant 2 : index
    %c0_216 = arith.constant 0 : index
    %142 = vector.load %arg1[%c0_213, %c6_214, %c2_215, %c0_216] : memref<1x16x16x3xbf16, #tpu.memory_space<vmem>>, vector<1x1x14x3xbf16>
    %143 = vector.shape_cast %142 : vector<1x1x14x3xbf16> to vector<14x3xbf16>
    %144 = tpu.concatenate %127, %129, %131, %133, %135, %137, %139, %141, %143 in 1 : vector<14x3xbf16>, vector<14x3xbf16>, vector<14x3xbf16>, vector<14x3xbf16>, vector<14x3xbf16>, vector<14x3xbf16>, vector<14x3xbf16>, vector<14x3xbf16>, vector<14x3xbf16> -> vector<14x27xbf16>
    %cst_217 = arith.constant dense<0.000000e+00> : vector<14x10xf32>
    %145 = tpu.matmul %144, %0, %cst_217 {dimension_numbers = #tpu.dot_dimension_numbers<[1], [0], [0], [1], [0, 0, 1, 1], [], []>} : vector<14x27xbf16>, vector<27x10xbf16>, vector<14x10xf32> -> vector<14x10xf32>
    %c0_218 = arith.constant 0 : index
    %c5_219 = arith.constant 5 : index
    %c0_220 = arith.constant 0 : index
    %c0_221 = arith.constant 0 : index
    %146 = vector.load %arg1[%c0_218, %c5_219, %c0_220, %c0_221] : memref<1x16x16x3xbf16, #tpu.memory_space<vmem>>, vector<1x1x14x3xbf16>
    %147 = vector.shape_cast %146 : vector<1x1x14x3xbf16> to vector<14x3xbf16>
    %c0_222 = arith.constant 0 : index
    %c5_223 = arith.constant 5 : index
    %c1_224 = arith.constant 1 : index
    %c0_225 = arith.constant 0 : index
    %148 = vector.load %arg1[%c0_222, %c5_223, %c1_224, %c0_225] : memref<1x16x16x3xbf16, #tpu.memory_space<vmem>>, vector<1x1x14x3xbf16>
    %149 = vector.shape_cast %148 : vector<1x1x14x3xbf16> to vector<14x3xbf16>
    %c0_226 = arith.constant 0 : index
    %c5_227 = arith.constant 5 : index
    %c2_228 = arith.constant 2 : index
    %c0_229 = arith.constant 0 : index
    %150 = vector.load %arg1[%c0_226, %c5_227, %c2_228, %c0_229] : memref<1x16x16x3xbf16, #tpu.memory_space<vmem>>, vector<1x1x14x3xbf16>
    %151 = vector.shape_cast %150 : vector<1x1x14x3xbf16> to vector<14x3xbf16>
    %c0_230 = arith.constant 0 : index
    %c6_231 = arith.constant 6 : index
    %c0_232 = arith.constant 0 : index
    %c0_233 = arith.constant 0 : index
    %152 = vector.load %arg1[%c0_230, %c6_231, %c0_232, %c0_233] : memref<1x16x16x3xbf16, #tpu.memory_space<vmem>>, vector<1x1x14x3xbf16>
    %153 = vector.shape_cast %152 : vector<1x1x14x3xbf16> to vector<14x3xbf16>
    %c0_234 = arith.constant 0 : index
    %c6_235 = arith.constant 6 : index
    %c1_236 = arith.constant 1 : index
    %c0_237 = arith.constant 0 : index
    %154 = vector.load %arg1[%c0_234, %c6_235, %c1_236, %c0_237] : memref<1x16x16x3xbf16, #tpu.memory_space<vmem>>, vector<1x1x14x3xbf16>
    %155 = vector.shape_cast %154 : vector<1x1x14x3xbf16> to vector<14x3xbf16>
    %c0_238 = arith.constant 0 : index
    %c6_239 = arith.constant 6 : index
    %c2_240 = arith.constant 2 : index
    %c0_241 = arith.constant 0 : index
    %156 = vector.load %arg1[%c0_238, %c6_239, %c2_240, %c0_241] : memref<1x16x16x3xbf16, #tpu.memory_space<vmem>>, vector<1x1x14x3xbf16>
    %157 = vector.shape_cast %156 : vector<1x1x14x3xbf16> to vector<14x3xbf16>
    %c0_242 = arith.constant 0 : index
    %c7 = arith.constant 7 : index
    %c0_243 = arith.constant 0 : index
    %c0_244 = arith.constant 0 : index
    %158 = vector.load %arg1[%c0_242, %c7, %c0_243, %c0_244] : memref<1x16x16x3xbf16, #tpu.memory_space<vmem>>, vector<1x1x14x3xbf16>
    %159 = vector.shape_cast %158 : vector<1x1x14x3xbf16> to vector<14x3xbf16>
    %c0_245 = arith.constant 0 : index
    %c7_246 = arith.constant 7 : index
    %c1_247 = arith.constant 1 : index
    %c0_248 = arith.constant 0 : index
    %160 = vector.load %arg1[%c0_245, %c7_246, %c1_247, %c0_248] : memref<1x16x16x3xbf16, #tpu.memory_space<vmem>>, vector<1x1x14x3xbf16>
    %161 = vector.shape_cast %160 : vector<1x1x14x3xbf16> to vector<14x3xbf16>
    %c0_249 = arith.constant 0 : index
    %c7_250 = arith.constant 7 : index
    %c2_251 = arith.constant 2 : index
    %c0_252 = arith.constant 0 : index
    %162 = vector.load %arg1[%c0_249, %c7_250, %c2_251, %c0_252] : memref<1x16x16x3xbf16, #tpu.memory_space<vmem>>, vector<1x1x14x3xbf16>
    %163 = vector.shape_cast %162 : vector<1x1x14x3xbf16> to vector<14x3xbf16>
    %164 = tpu.concatenate %147, %149, %151, %153, %155, %157, %159, %161, %163 in 1 : vector<14x3xbf16>, vector<14x3xbf16>, vector<14x3xbf16>, vector<14x3xbf16>, vector<14x3xbf16>, vector<14x3xbf16>, vector<14x3xbf16>, vector<14x3xbf16>, vector<14x3xbf16> -> vector<14x27xbf16>
    %cst_253 = arith.constant dense<0.000000e+00> : vector<14x10xf32>
    %165 = tpu.matmul %164, %0, %cst_253 {dimension_numbers = #tpu.dot_dimension_numbers<[1], [0], [0], [1], [0, 0, 1, 1], [], []>} : vector<14x27xbf16>, vector<27x10xbf16>, vector<14x10xf32> -> vector<14x10xf32>
    %166 = arith.maximumf %145, %165 : vector<14x10xf32>
    %c0_254 = arith.constant 0 : index
    %c0_255 = arith.constant 0 : index
    %167 = vector.load %arg12[%c0_254, %c0_255] : memref<14x10xf32, #tpu.memory_space<vmem>>, vector<14x10xf32>
    tpu.vector_store %arg12[%c0_254, %c0_255], %166 {strides = array<i32>} : memref<14x10xf32, #tpu.memory_space<vmem>>, vector<14x10xf32>,
    %c0_256 = arith.constant 0 : index
    %c0_257 = arith.constant 0 : index
    %168 = tpu.strided_load %arg12[%c0_256, %c0_257] {strides = array<i32: 2, 1>} : memref<14x10xf32, #tpu.memory_space<vmem>>, vector<7x10xf32>
    %c1_258 = arith.constant 1 : index
    %c0_259 = arith.constant 0 : index
    %169 = tpu.strided_load %arg12[%c1_258, %c0_259] {strides = array<i32: 2, 1>} : memref<14x10xf32, #tpu.memory_space<vmem>>, vector<7x10xf32>
    %170 = arith.maximumf %168, %169 : vector<7x10xf32>
    %171 = vector.broadcast %4 : vector<1x10xf32> to vector<7x10xf32>
    %172 = arith.addf %170, %171 : vector<7x10xf32>
    %cst_260 = arith.constant 0.000000e+00 : f32
    %173 = vector.broadcast %cst_260 : f32 to vector<7x10xf32>
    %174 = arith.cmpf oge, %172, %173 : vector<7x10xf32>
    %175 = vector.broadcast %8 : f32 to vector<7x10xf32>
    %176 = arith.mulf %175, %172 : vector<7x10xf32>
    %177 = arith.select %174, %172, %176 : vector<7x10xi1>, vector<7x10xf32>
    %178 = arith.truncf %177 : vector<7x10xf32> to vector<7x10xbf16>
    %c0_261 = arith.constant 0 : index
    %c2_262 = arith.constant 2 : index
    %c0_263 = arith.constant 0 : index
    %c0_264 = arith.constant 0 : index
    %179 = vector.load %arg13[%c0_261, %c2_262, %c0_263, %c0_264] : memref<1x7x7x10xbf16, #tpu.memory_space<vmem>>, vector<1x1x7x10xbf16>
    %180 = vector.shape_cast %179 : vector<1x1x7x10xbf16> to vector<7x10xbf16>
    %181 = vector.shape_cast %178 : vector<7x10xbf16> to vector<1x1x7x10xbf16>
    tpu.vector_store %arg13[%c0_261, %c2_262, %c0_263, %c0_264], %181 {strides = array<i32>} : memref<1x7x7x10xbf16, #tpu.memory_space<vmem>>, vector<1x1x7x10xbf16>,
    %c0_265 = arith.constant 0 : index
    %c6_266 = arith.constant 6 : index
    %c0_267 = arith.constant 0 : index
    %c0_268 = arith.constant 0 : index
    %182 = vector.load %arg1[%c0_265, %c6_266, %c0_267, %c0_268] : memref<1x16x16x3xbf16, #tpu.memory_space<vmem>>, vector<1x1x14x3xbf16>
    %183 = vector.shape_cast %182 : vector<1x1x14x3xbf16> to vector<14x3xbf16>
    %c0_269 = arith.constant 0 : index
    %c6_270 = arith.constant 6 : index
    %c1_271 = arith.constant 1 : index
    %c0_272 = arith.constant 0 : index
    %184 = vector.load %arg1[%c0_269, %c6_270, %c1_271, %c0_272] : memref<1x16x16x3xbf16, #tpu.memory_space<vmem>>, vector<1x1x14x3xbf16>
    %185 = vector.shape_cast %184 : vector<1x1x14x3xbf16> to vector<14x3xbf16>
    %c0_273 = arith.constant 0 : index
    %c6_274 = arith.constant 6 : index
    %c2_275 = arith.constant 2 : index
    %c0_276 = arith.constant 0 : index
    %186 = vector.load %arg1[%c0_273, %c6_274, %c2_275, %c0_276] : memref<1x16x16x3xbf16, #tpu.memory_space<vmem>>, vector<1x1x14x3xbf16>
    %187 = vector.shape_cast %186 : vector<1x1x14x3xbf16> to vector<14x3xbf16>
    %c0_277 = arith.constant 0 : index
    %c7_278 = arith.constant 7 : index
    %c0_279 = arith.constant 0 : index
    %c0_280 = arith.constant 0 : index
    %188 = vector.load %arg1[%c0_277, %c7_278, %c0_279, %c0_280] : memref<1x16x16x3xbf16, #tpu.memory_space<vmem>>, vector<1x1x14x3xbf16>
    %189 = vector.shape_cast %188 : vector<1x1x14x3xbf16> to vector<14x3xbf16>
    %c0_281 = arith.constant 0 : index
    %c7_282 = arith.constant 7 : index
    %c1_283 = arith.constant 1 : index
    %c0_284 = arith.constant 0 : index
    %190 = vector.load %arg1[%c0_281, %c7_282, %c1_283, %c0_284] : memref<1x16x16x3xbf16, #tpu.memory_space<vmem>>, vector<1x1x14x3xbf16>
    %191 = vector.shape_cast %190 : vector<1x1x14x3xbf16> to vector<14x3xbf16>
    %c0_285 = arith.constant 0 : index
    %c7_286 = arith.constant 7 : index
    %c2_287 = arith.constant 2 : index
    %c0_288 = arith.constant 0 : index
    %192 = vector.load %arg1[%c0_285, %c7_286, %c2_287, %c0_288] : memref<1x16x16x3xbf16, #tpu.memory_space<vmem>>, vector<1x1x14x3xbf16>
    %193 = vector.shape_cast %192 : vector<1x1x14x3xbf16> to vector<14x3xbf16>
    %c0_289 = arith.constant 0 : index
    %c8 = arith.constant 8 : index
    %c0_290 = arith.constant 0 : index
    %c0_291 = arith.constant 0 : index
    %194 = vector.load %arg1[%c0_289, %c8, %c0_290, %c0_291] : memref<1x16x16x3xbf16, #tpu.memory_space<vmem>>, vector<1x1x14x3xbf16>
    %195 = vector.shape_cast %194 : vector<1x1x14x3xbf16> to vector<14x3xbf16>
    %c0_292 = arith.constant 0 : index
    %c8_293 = arith.constant 8 : index
    %c1_294 = arith.constant 1 : index
    %c0_295 = arith.constant 0 : index
    %196 = vector.load %arg1[%c0_292, %c8_293, %c1_294, %c0_295] : memref<1x16x16x3xbf16, #tpu.memory_space<vmem>>, vector<1x1x14x3xbf16>
    %197 = vector.shape_cast %196 : vector<1x1x14x3xbf16> to vector<14x3xbf16>
    %c0_296 = arith.constant 0 : index
    %c8_297 = arith.constant 8 : index
    %c2_298 = arith.constant 2 : index
    %c0_299 = arith.constant 0 : index
    %198 = vector.load %arg1[%c0_296, %c8_297, %c2_298, %c0_299] : memref<1x16x16x3xbf16, #tpu.memory_space<vmem>>, vector<1x1x14x3xbf16>
    %199 = vector.shape_cast %198 : vector<1x1x14x3xbf16> to vector<14x3xbf16>
    %200 = tpu.concatenate %183, %185, %187, %189, %191, %193, %195, %197, %199 in 1 : vector<14x3xbf16>, vector<14x3xbf16>, vector<14x3xbf16>, vector<14x3xbf16>, vector<14x3xbf16>, vector<14x3xbf16>, vector<14x3xbf16>, vector<14x3xbf16>, vector<14x3xbf16> -> vector<14x27xbf16>
    %cst_300 = arith.constant dense<0.000000e+00> : vector<14x10xf32>
    %201 = tpu.matmul %200, %0, %cst_300 {dimension_numbers = #tpu.dot_dimension_numbers<[1], [0], [0], [1], [0, 0, 1, 1], [], []>} : vector<14x27xbf16>, vector<27x10xbf16>, vector<14x10xf32> -> vector<14x10xf32>
    %c0_301 = arith.constant 0 : index
    %c7_302 = arith.constant 7 : index
    %c0_303 = arith.constant 0 : index
    %c0_304 = arith.constant 0 : index
    %202 = vector.load %arg1[%c0_301, %c7_302, %c0_303, %c0_304] : memref<1x16x16x3xbf16, #tpu.memory_space<vmem>>, vector<1x1x14x3xbf16>
    %203 = vector.shape_cast %202 : vector<1x1x14x3xbf16> to vector<14x3xbf16>
    %c0_305 = arith.constant 0 : index
    %c7_306 = arith.constant 7 : index
    %c1_307 = arith.constant 1 : index
    %c0_308 = arith.constant 0 : index
    %204 = vector.load %arg1[%c0_305, %c7_306, %c1_307, %c0_308] : memref<1x16x16x3xbf16, #tpu.memory_space<vmem>>, vector<1x1x14x3xbf16>
    %205 = vector.shape_cast %204 : vector<1x1x14x3xbf16> to vector<14x3xbf16>
    %c0_309 = arith.constant 0 : index
    %c7_310 = arith.constant 7 : index
    %c2_311 = arith.constant 2 : index
    %c0_312 = arith.constant 0 : index
    %206 = vector.load %arg1[%c0_309, %c7_310, %c2_311, %c0_312] : memref<1x16x16x3xbf16, #tpu.memory_space<vmem>>, vector<1x1x14x3xbf16>
    %207 = vector.shape_cast %206 : vector<1x1x14x3xbf16> to vector<14x3xbf16>
    %c0_313 = arith.constant 0 : index
    %c8_314 = arith.constant 8 : index
    %c0_315 = arith.constant 0 : index
    %c0_316 = arith.constant 0 : index
    %208 = vector.load %arg1[%c0_313, %c8_314, %c0_315, %c0_316] : memref<1x16x16x3xbf16, #tpu.memory_space<vmem>>, vector<1x1x14x3xbf16>
    %209 = vector.shape_cast %208 : vector<1x1x14x3xbf16> to vector<14x3xbf16>
    %c0_317 = arith.constant 0 : index
    %c8_318 = arith.constant 8 : index
    %c1_319 = arith.constant 1 : index
    %c0_320 = arith.constant 0 : index
    %210 = vector.load %arg1[%c0_317, %c8_318, %c1_319, %c0_320] : memref<1x16x16x3xbf16, #tpu.memory_space<vmem>>, vector<1x1x14x3xbf16>
    %211 = vector.shape_cast %210 : vector<1x1x14x3xbf16> to vector<14x3xbf16>
    %c0_321 = arith.constant 0 : index
    %c8_322 = arith.constant 8 : index
    %c2_323 = arith.constant 2 : index
    %c0_324 = arith.constant 0 : index
    %212 = vector.load %arg1[%c0_321, %c8_322, %c2_323, %c0_324] : memref<1x16x16x3xbf16, #tpu.memory_space<vmem>>, vector<1x1x14x3xbf16>
    %213 = vector.shape_cast %212 : vector<1x1x14x3xbf16> to vector<14x3xbf16>
    %c0_325 = arith.constant 0 : index
    %c9 = arith.constant 9 : index
    %c0_326 = arith.constant 0 : index
    %c0_327 = arith.constant 0 : index
    %214 = vector.load %arg1[%c0_325, %c9, %c0_326, %c0_327] : memref<1x16x16x3xbf16, #tpu.memory_space<vmem>>, vector<1x1x14x3xbf16>
    %215 = vector.shape_cast %214 : vector<1x1x14x3xbf16> to vector<14x3xbf16>
    %c0_328 = arith.constant 0 : index
    %c9_329 = arith.constant 9 : index
    %c1_330 = arith.constant 1 : index
    %c0_331 = arith.constant 0 : index
    %216 = vector.load %arg1[%c0_328, %c9_329, %c1_330, %c0_331] : memref<1x16x16x3xbf16, #tpu.memory_space<vmem>>, vector<1x1x14x3xbf16>
    %217 = vector.shape_cast %216 : vector<1x1x14x3xbf16> to vector<14x3xbf16>
    %c0_332 = arith.constant 0 : index
    %c9_333 = arith.constant 9 : index
    %c2_334 = arith.constant 2 : index
    %c0_335 = arith.constant 0 : index
    %218 = vector.load %arg1[%c0_332, %c9_333, %c2_334, %c0_335] : memref<1x16x16x3xbf16, #tpu.memory_space<vmem>>, vector<1x1x14x3xbf16>
    %219 = vector.shape_cast %218 : vector<1x1x14x3xbf16> to vector<14x3xbf16>
    %220 = tpu.concatenate %203, %205, %207, %209, %211, %213, %215, %217, %219 in 1 : vector<14x3xbf16>, vector<14x3xbf16>, vector<14x3xbf16>, vector<14x3xbf16>, vector<14x3xbf16>, vector<14x3xbf16>, vector<14x3xbf16>, vector<14x3xbf16>, vector<14x3xbf16> -> vector<14x27xbf16>
    %cst_336 = arith.constant dense<0.000000e+00> : vector<14x10xf32>
    %221 = tpu.matmul %220, %0, %cst_336 {dimension_numbers = #tpu.dot_dimension_numbers<[1], [0], [0], [1], [0, 0, 1, 1], [], []>} : vector<14x27xbf16>, vector<27x10xbf16>, vector<14x10xf32> -> vector<14x10xf32>
    %222 = arith.maximumf %201, %221 : vector<14x10xf32>
    %c0_337 = arith.constant 0 : index
    %c0_338 = arith.constant 0 : index
    %223 = vector.load %arg12[%c0_337, %c0_338] : memref<14x10xf32, #tpu.memory_space<vmem>>, vector<14x10xf32>
    tpu.vector_store %arg12[%c0_337, %c0_338], %222 {strides = array<i32>} : memref<14x10xf32, #tpu.memory_space<vmem>>, vector<14x10xf32>,
    %c0_339 = arith.constant 0 : index
    %c0_340 = arith.constant 0 : index
    %224 = tpu.strided_load %arg12[%c0_339, %c0_340] {strides = array<i32: 2, 1>} : memref<14x10xf32, #tpu.memory_space<vmem>>, vector<7x10xf32>
    %c1_341 = arith.constant 1 : index
    %c0_342 = arith.constant 0 : index
    %225 = tpu.strided_load %arg12[%c1_341, %c0_342] {strides = array<i32: 2, 1>} : memref<14x10xf32, #tpu.memory_space<vmem>>, vector<7x10xf32>
    %226 = arith.maximumf %224, %225 : vector<7x10xf32>
    %227 = vector.broadcast %4 : vector<1x10xf32> to vector<7x10xf32>
    %228 = arith.addf %226, %227 : vector<7x10xf32>
    %cst_343 = arith.constant 0.000000e+00 : f32
    %229 = vector.broadcast %cst_343 : f32 to vector<7x10xf32>
    %230 = arith.cmpf oge, %228, %229 : vector<7x10xf32>
    %231 = vector.broadcast %8 : f32 to vector<7x10xf32>
    %232 = arith.mulf %231, %228 : vector<7x10xf32>
    %233 = arith.select %230, %228, %232 : vector<7x10xi1>, vector<7x10xf32>
    %234 = arith.truncf %233 : vector<7x10xf32> to vector<7x10xbf16>
    %c0_344 = arith.constant 0 : index
    %c3_345 = arith.constant 3 : index
    %c0_346 = arith.constant 0 : index
    %c0_347 = arith.constant 0 : index
    %235 = vector.load %arg13[%c0_344, %c3_345, %c0_346, %c0_347] : memref<1x7x7x10xbf16, #tpu.memory_space<vmem>>, vector<1x1x7x10xbf16>
    %236 = vector.shape_cast %235 : vector<1x1x7x10xbf16> to vector<7x10xbf16>
    %237 = vector.shape_cast %234 : vector<7x10xbf16> to vector<1x1x7x10xbf16>
    tpu.vector_store %arg13[%c0_344, %c3_345, %c0_346, %c0_347], %237 {strides = array<i32>} : memref<1x7x7x10xbf16, #tpu.memory_space<vmem>>, vector<1x1x7x10xbf16>,
    %c0_348 = arith.constant 0 : index
    %c8_349 = arith.constant 8 : index
    %c0_350 = arith.constant 0 : index
    %c0_351 = arith.constant 0 : index
    %238 = vector.load %arg1[%c0_348, %c8_349, %c0_350, %c0_351] : memref<1x16x16x3xbf16, #tpu.memory_space<vmem>>, vector<1x1x14x3xbf16>
    %239 = vector.shape_cast %238 : vector<1x1x14x3xbf16> to vector<14x3xbf16>
    %c0_352 = arith.constant 0 : index
    %c8_353 = arith.constant 8 : index
    %c1_354 = arith.constant 1 : index
    %c0_355 = arith.constant 0 : index
    %240 = vector.load %arg1[%c0_352, %c8_353, %c1_354, %c0_355] : memref<1x16x16x3xbf16, #tpu.memory_space<vmem>>, vector<1x1x14x3xbf16>
    %241 = vector.shape_cast %240 : vector<1x1x14x3xbf16> to vector<14x3xbf16>
    %c0_356 = arith.constant 0 : index
    %c8_357 = arith.constant 8 : index
    %c2_358 = arith.constant 2 : index
    %c0_359 = arith.constant 0 : index
    %242 = vector.load %arg1[%c0_356, %c8_357, %c2_358, %c0_359] : memref<1x16x16x3xbf16, #tpu.memory_space<vmem>>, vector<1x1x14x3xbf16>
    %243 = vector.shape_cast %242 : vector<1x1x14x3xbf16> to vector<14x3xbf16>
    %c0_360 = arith.constant 0 : index
    %c9_361 = arith.constant 9 : index
    %c0_362 = arith.constant 0 : index
    %c0_363 = arith.constant 0 : index
    %244 = vector.load %arg1[%c0_360, %c9_361, %c0_362, %c0_363] : memref<1x16x16x3xbf16, #tpu.memory_space<vmem>>, vector<1x1x14x3xbf16>
    %245 = vector.shape_cast %244 : vector<1x1x14x3xbf16> to vector<14x3xbf16>
    %c0_364 = arith.constant 0 : index
    %c9_365 = arith.constant 9 : index
    %c1_366 = arith.constant 1 : index
    %c0_367 = arith.constant 0 : index
    %246 = vector.load %arg1[%c0_364, %c9_365, %c1_366, %c0_367] : memref<1x16x16x3xbf16, #tpu.memory_space<vmem>>, vector<1x1x14x3xbf16>
    %247 = vector.shape_cast %246 : vector<1x1x14x3xbf16> to vector<14x3xbf16>
    %c0_368 = arith.constant 0 : index
    %c9_369 = arith.constant 9 : index
    %c2_370 = arith.constant 2 : index
    %c0_371 = arith.constant 0 : index
    %248 = vector.load %arg1[%c0_368, %c9_369, %c2_370, %c0_371] : memref<1x16x16x3xbf16, #tpu.memory_space<vmem>>, vector<1x1x14x3xbf16>
    %249 = vector.shape_cast %248 : vector<1x1x14x3xbf16> to vector<14x3xbf16>
    %c0_372 = arith.constant 0 : index
    %c10 = arith.constant 10 : index
    %c0_373 = arith.constant 0 : index
    %c0_374 = arith.constant 0 : index
    %250 = vector.load %arg1[%c0_372, %c10, %c0_373, %c0_374] : memref<1x16x16x3xbf16, #tpu.memory_space<vmem>>, vector<1x1x14x3xbf16>
    %251 = vector.shape_cast %250 : vector<1x1x14x3xbf16> to vector<14x3xbf16>
    %c0_375 = arith.constant 0 : index
    %c10_376 = arith.constant 10 : index
    %c1_377 = arith.constant 1 : index
    %c0_378 = arith.constant 0 : index
    %252 = vector.load %arg1[%c0_375, %c10_376, %c1_377, %c0_378] : memref<1x16x16x3xbf16, #tpu.memory_space<vmem>>, vector<1x1x14x3xbf16>
    %253 = vector.shape_cast %252 : vector<1x1x14x3xbf16> to vector<14x3xbf16>
    %c0_379 = arith.constant 0 : index
    %c10_380 = arith.constant 10 : index
    %c2_381 = arith.constant 2 : index
    %c0_382 = arith.constant 0 : index
    %254 = vector.load %arg1[%c0_379, %c10_380, %c2_381, %c0_382] : memref<1x16x16x3xbf16, #tpu.memory_space<vmem>>, vector<1x1x14x3xbf16>
    %255 = vector.shape_cast %254 : vector<1x1x14x3xbf16> to vector<14x3xbf16>
    %256 = tpu.concatenate %239, %241, %243, %245, %247, %249, %251, %253, %255 in 1 : vector<14x3xbf16>, vector<14x3xbf16>, vector<14x3xbf16>, vector<14x3xbf16>, vector<14x3xbf16>, vector<14x3xbf16>, vector<14x3xbf16>, vector<14x3xbf16>, vector<14x3xbf16> -> vector<14x27xbf16>
    %cst_383 = arith.constant dense<0.000000e+00> : vector<14x10xf32>
    %257 = tpu.matmul %256, %0, %cst_383 {dimension_numbers = #tpu.dot_dimension_numbers<[1], [0], [0], [1], [0, 0, 1, 1], [], []>} : vector<14x27xbf16>, vector<27x10xbf16>, vector<14x10xf32> -> vector<14x10xf32>
    %c0_384 = arith.constant 0 : index
    %c9_385 = arith.constant 9 : index
    %c0_386 = arith.constant 0 : index
    %c0_387 = arith.constant 0 : index
    %258 = vector.load %arg1[%c0_384, %c9_385, %c0_386, %c0_387] : memref<1x16x16x3xbf16, #tpu.memory_space<vmem>>, vector<1x1x14x3xbf16>
    %259 = vector.shape_cast %258 : vector<1x1x14x3xbf16> to vector<14x3xbf16>
    %c0_388 = arith.constant 0 : index
    %c9_389 = arith.constant 9 : index
    %c1_390 = arith.constant 1 : index
    %c0_391 = arith.constant 0 : index
    %260 = vector.load %arg1[%c0_388, %c9_389, %c1_390, %c0_391] : memref<1x16x16x3xbf16, #tpu.memory_space<vmem>>, vector<1x1x14x3xbf16>
    %261 = vector.shape_cast %260 : vector<1x1x14x3xbf16> to vector<14x3xbf16>
    %c0_392 = arith.constant 0 : index
    %c9_393 = arith.constant 9 : index
    %c2_394 = arith.constant 2 : index
    %c0_395 = arith.constant 0 : index
    %262 = vector.load %arg1[%c0_392, %c9_393, %c2_394, %c0_395] : memref<1x16x16x3xbf16, #tpu.memory_space<vmem>>, vector<1x1x14x3xbf16>
    %263 = vector.shape_cast %262 : vector<1x1x14x3xbf16> to vector<14x3xbf16>
    %c0_396 = arith.constant 0 : index
    %c10_397 = arith.constant 10 : index
    %c0_398 = arith.constant 0 : index
    %c0_399 = arith.constant 0 : index
    %264 = vector.load %arg1[%c0_396, %c10_397, %c0_398, %c0_399] : memref<1x16x16x3xbf16, #tpu.memory_space<vmem>>, vector<1x1x14x3xbf16>
    %265 = vector.shape_cast %264 : vector<1x1x14x3xbf16> to vector<14x3xbf16>
    %c0_400 = arith.constant 0 : index
    %c10_401 = arith.constant 10 : index
    %c1_402 = arith.constant 1 : index
    %c0_403 = arith.constant 0 : index
    %266 = vector.load %arg1[%c0_400, %c10_401, %c1_402, %c0_403] : memref<1x16x16x3xbf16, #tpu.memory_space<vmem>>, vector<1x1x14x3xbf16>
    %267 = vector.shape_cast %266 : vector<1x1x14x3xbf16> to vector<14x3xbf16>
    %c0_404 = arith.constant 0 : index
    %c10_405 = arith.constant 10 : index
    %c2_406 = arith.constant 2 : index
    %c0_407 = arith.constant 0 : index
    %268 = vector.load %arg1[%c0_404, %c10_405, %c2_406, %c0_407] : memref<1x16x16x3xbf16, #tpu.memory_space<vmem>>, vector<1x1x14x3xbf16>
    %269 = vector.shape_cast %268 : vector<1x1x14x3xbf16> to vector<14x3xbf16>
    %c0_408 = arith.constant 0 : index
    %c11 = arith.constant 11 : index
    %c0_409 = arith.constant 0 : index
    %c0_410 = arith.constant 0 : index
    %270 = vector.load %arg1[%c0_408, %c11, %c0_409, %c0_410] : memref<1x16x16x3xbf16, #tpu.memory_space<vmem>>, vector<1x1x14x3xbf16>
    %271 = vector.shape_cast %270 : vector<1x1x14x3xbf16> to vector<14x3xbf16>
    %c0_411 = arith.constant 0 : index
    %c11_412 = arith.constant 11 : index
    %c1_413 = arith.constant 1 : index
    %c0_414 = arith.constant 0 : index
    %272 = vector.load %arg1[%c0_411, %c11_412, %c1_413, %c0_414] : memref<1x16x16x3xbf16, #tpu.memory_space<vmem>>, vector<1x1x14x3xbf16>
    %273 = vector.shape_cast %272 : vector<1x1x14x3xbf16> to vector<14x3xbf16>
    %c0_415 = arith.constant 0 : index
    %c11_416 = arith.constant 11 : index
    %c2_417 = arith.constant 2 : index
    %c0_418 = arith.constant 0 : index
    %274 = vector.load %arg1[%c0_415, %c11_416, %c2_417, %c0_418] : memref<1x16x16x3xbf16, #tpu.memory_space<vmem>>, vector<1x1x14x3xbf16>
    %275 = vector.shape_cast %274 : vector<1x1x14x3xbf16> to vector<14x3xbf16>
    %276 = tpu.concatenate %259, %261, %263, %265, %267, %269, %271, %273, %275 in 1 : vector<14x3xbf16>, vector<14x3xbf16>, vector<14x3xbf16>, vector<14x3xbf16>, vector<14x3xbf16>, vector<14x3xbf16>, vector<14x3xbf16>, vector<14x3xbf16>, vector<14x3xbf16> -> vector<14x27xbf16>
    %cst_419 = arith.constant dense<0.000000e+00> : vector<14x10xf32>
    %277 = tpu.matmul %276, %0, %cst_419 {dimension_numbers = #tpu.dot_dimension_numbers<[1], [0], [0], [1], [0, 0, 1, 1], [], []>} : vector<14x27xbf16>, vector<27x10xbf16>, vector<14x10xf32> -> vector<14x10xf32>
    %278 = arith.maximumf %257, %277 : vector<14x10xf32>
    %c0_420 = arith.constant 0 : index
    %c0_421 = arith.constant 0 : index
    %279 = vector.load %arg12[%c0_420, %c0_421] : memref<14x10xf32, #tpu.memory_space<vmem>>, vector<14x10xf32>
    tpu.vector_store %arg12[%c0_420, %c0_421], %278 {strides = array<i32>} : memref<14x10xf32, #tpu.memory_space<vmem>>, vector<14x10xf32>,
    %c0_422 = arith.constant 0 : index
    %c0_423 = arith.constant 0 : index
    %280 = tpu.strided_load %arg12[%c0_422, %c0_423] {strides = array<i32: 2, 1>} : memref<14x10xf32, #tpu.memory_space<vmem>>, vector<7x10xf32>
    %c1_424 = arith.constant 1 : index
    %c0_425 = arith.constant 0 : index
    %281 = tpu.strided_load %arg12[%c1_424, %c0_425] {strides = array<i32: 2, 1>} : memref<14x10xf32, #tpu.memory_space<vmem>>, vector<7x10xf32>
    %282 = arith.maximumf %280, %281 : vector<7x10xf32>
    %283 = vector.broadcast %4 : vector<1x10xf32> to vector<7x10xf32>
    %284 = arith.addf %282, %283 : vector<7x10xf32>
    %cst_426 = arith.constant 0.000000e+00 : f32
    %285 = vector.broadcast %cst_426 : f32 to vector<7x10xf32>
    %286 = arith.cmpf oge, %284, %285 : vector<7x10xf32>
    %287 = vector.broadcast %8 : f32 to vector<7x10xf32>
    %288 = arith.mulf %287, %284 : vector<7x10xf32>
    %289 = arith.select %286, %284, %288 : vector<7x10xi1>, vector<7x10xf32>
    %290 = arith.truncf %289 : vector<7x10xf32> to vector<7x10xbf16>
    %c0_427 = arith.constant 0 : index
    %c4_428 = arith.constant 4 : index
    %c0_429 = arith.constant 0 : index
    %c0_430 = arith.constant 0 : index
    %291 = vector.load %arg13[%c0_427, %c4_428, %c0_429, %c0_430] : memref<1x7x7x10xbf16, #tpu.memory_space<vmem>>, vector<1x1x7x10xbf16>
    %292 = vector.shape_cast %291 : vector<1x1x7x10xbf16> to vector<7x10xbf16>
    %293 = vector.shape_cast %290 : vector<7x10xbf16> to vector<1x1x7x10xbf16>
    tpu.vector_store %arg13[%c0_427, %c4_428, %c0_429, %c0_430], %293 {strides = array<i32>} : memref<1x7x7x10xbf16, #tpu.memory_space<vmem>>, vector<1x1x7x10xbf16>,
    %c0_431 = arith.constant 0 : index
    %c10_432 = arith.constant 10 : index
    %c0_433 = arith.constant 0 : index
    %c0_434 = arith.constant 0 : index
    %294 = vector.load %arg1[%c0_431, %c10_432, %c0_433, %c0_434] : memref<1x16x16x3xbf16, #tpu.memory_space<vmem>>, vector<1x1x14x3xbf16>
    %295 = vector.shape_cast %294 : vector<1x1x14x3xbf16> to vector<14x3xbf16>
    %c0_435 = arith.constant 0 : index
    %c10_436 = arith.constant 10 : index
    %c1_437 = arith.constant 1 : index
    %c0_438 = arith.constant 0 : index
    %296 = vector.load %arg1[%c0_435, %c10_436, %c1_437, %c0_438] : memref<1x16x16x3xbf16, #tpu.memory_space<vmem>>, vector<1x1x14x3xbf16>
    %297 = vector.shape_cast %296 : vector<1x1x14x3xbf16> to vector<14x3xbf16>
    %c0_439 = arith.constant 0 : index
    %c10_440 = arith.constant 10 : index
    %c2_441 = arith.constant 2 : index
    %c0_442 = arith.constant 0 : index
    %298 = vector.load %arg1[%c0_439, %c10_440, %c2_441, %c0_442] : memref<1x16x16x3xbf16, #tpu.memory_space<vmem>>, vector<1x1x14x3xbf16>
    %299 = vector.shape_cast %298 : vector<1x1x14x3xbf16> to vector<14x3xbf16>
    %c0_443 = arith.constant 0 : index
    %c11_444 = arith.constant 11 : index
    %c0_445 = arith.constant 0 : index
    %c0_446 = arith.constant 0 : index
    %300 = vector.load %arg1[%c0_443, %c11_444, %c0_445, %c0_446] : memref<1x16x16x3xbf16, #tpu.memory_space<vmem>>, vector<1x1x14x3xbf16>
    %301 = vector.shape_cast %300 : vector<1x1x14x3xbf16> to vector<14x3xbf16>
    %c0_447 = arith.constant 0 : index
    %c11_448 = arith.constant 11 : index
    %c1_449 = arith.constant 1 : index
    %c0_450 = arith.constant 0 : index
    %302 = vector.load %arg1[%c0_447, %c11_448, %c1_449, %c0_450] : memref<1x16x16x3xbf16, #tpu.memory_space<vmem>>, vector<1x1x14x3xbf16>
    %303 = vector.shape_cast %302 : vector<1x1x14x3xbf16> to vector<14x3xbf16>
    %c0_451 = arith.constant 0 : index
    %c11_452 = arith.constant 11 : index
    %c2_453 = arith.constant 2 : index
    %c0_454 = arith.constant 0 : index
    %304 = vector.load %arg1[%c0_451, %c11_452, %c2_453, %c0_454] : memref<1x16x16x3xbf16, #tpu.memory_space<vmem>>, vector<1x1x14x3xbf16>
    %305 = vector.shape_cast %304 : vector<1x1x14x3xbf16> to vector<14x3xbf16>
    %c0_455 = arith.constant 0 : index
    %c12 = arith.constant 12 : index
    %c0_456 = arith.constant 0 : index
    %c0_457 = arith.constant 0 : index
    %306 = vector.load %arg1[%c0_455, %c12, %c0_456, %c0_457] : memref<1x16x16x3xbf16, #tpu.memory_space<vmem>>, vector<1x1x14x3xbf16>
    %307 = vector.shape_cast %306 : vector<1x1x14x3xbf16> to vector<14x3xbf16>
    %c0_458 = arith.constant 0 : index
    %c12_459 = arith.constant 12 : index
    %c1_460 = arith.constant 1 : index
    %c0_461 = arith.constant 0 : index
    %308 = vector.load %arg1[%c0_458, %c12_459, %c1_460, %c0_461] : memref<1x16x16x3xbf16, #tpu.memory_space<vmem>>, vector<1x1x14x3xbf16>
    %309 = vector.shape_cast %308 : vector<1x1x14x3xbf16> to vector<14x3xbf16>
    %c0_462 = arith.constant 0 : index
    %c12_463 = arith.constant 12 : index
    %c2_464 = arith.constant 2 : index
    %c0_465 = arith.constant 0 : index
    %310 = vector.load %arg1[%c0_462, %c12_463, %c2_464, %c0_465] : memref<1x16x16x3xbf16, #tpu.memory_space<vmem>>, vector<1x1x14x3xbf16>
    %311 = vector.shape_cast %310 : vector<1x1x14x3xbf16> to vector<14x3xbf16>
    %312 = tpu.concatenate %295, %297, %299, %301, %303, %305, %307, %309, %311 in 1 : vector<14x3xbf16>, vector<14x3xbf16>, vector<14x3xbf16>, vector<14x3xbf16>, vector<14x3xbf16>, vector<14x3xbf16>, vector<14x3xbf16>, vector<14x3xbf16>, vector<14x3xbf16> -> vector<14x27xbf16>
    %cst_466 = arith.constant dense<0.000000e+00> : vector<14x10xf32>
    %313 = tpu.matmul %312, %0, %cst_466 {dimension_numbers = #tpu.dot_dimension_numbers<[1], [0], [0], [1], [0, 0, 1, 1], [], []>} : vector<14x27xbf16>, vector<27x10xbf16>, vector<14x10xf32> -> vector<14x10xf32>
    %c0_467 = arith.constant 0 : index
    %c11_468 = arith.constant 11 : index
    %c0_469 = arith.constant 0 : index
    %c0_470 = arith.constant 0 : index
    %314 = vector.load %arg1[%c0_467, %c11_468, %c0_469, %c0_470] : memref<1x16x16x3xbf16, #tpu.memory_space<vmem>>, vector<1x1x14x3xbf16>
    %315 = vector.shape_cast %314 : vector<1x1x14x3xbf16> to vector<14x3xbf16>
    %c0_471 = arith.constant 0 : index
    %c11_472 = arith.constant 11 : index
    %c1_473 = arith.constant 1 : index
    %c0_474 = arith.constant 0 : index
    %316 = vector.load %arg1[%c0_471, %c11_472, %c1_473, %c0_474] : memref<1x16x16x3xbf16, #tpu.memory_space<vmem>>, vector<1x1x14x3xbf16>
    %317 = vector.shape_cast %316 : vector<1x1x14x3xbf16> to vector<14x3xbf16>
    %c0_475 = arith.constant 0 : index
    %c11_476 = arith.constant 11 : index
    %c2_477 = arith.constant 2 : index
    %c0_478 = arith.constant 0 : index
    %318 = vector.load %arg1[%c0_475, %c11_476, %c2_477, %c0_478] : memref<1x16x16x3xbf16, #tpu.memory_space<vmem>>, vector<1x1x14x3xbf16>
    %319 = vector.shape_cast %318 : vector<1x1x14x3xbf16> to vector<14x3xbf16>
    %c0_479 = arith.constant 0 : index
    %c12_480 = arith.constant 12 : index
    %c0_481 = arith.constant 0 : index
    %c0_482 = arith.constant 0 : index
    %320 = vector.load %arg1[%c0_479, %c12_480, %c0_481, %c0_482] : memref<1x16x16x3xbf16, #tpu.memory_space<vmem>>, vector<1x1x14x3xbf16>
    %321 = vector.shape_cast %320 : vector<1x1x14x3xbf16> to vector<14x3xbf16>
    %c0_483 = arith.constant 0 : index
    %c12_484 = arith.constant 12 : index
    %c1_485 = arith.constant 1 : index
    %c0_486 = arith.constant 0 : index
    %322 = vector.load %arg1[%c0_483, %c12_484, %c1_485, %c0_486] : memref<1x16x16x3xbf16, #tpu.memory_space<vmem>>, vector<1x1x14x3xbf16>
    %323 = vector.shape_cast %322 : vector<1x1x14x3xbf16> to vector<14x3xbf16>
    %c0_487 = arith.constant 0 : index
    %c12_488 = arith.constant 12 : index
    %c2_489 = arith.constant 2 : index
    %c0_490 = arith.constant 0 : index
    %324 = vector.load %arg1[%c0_487, %c12_488, %c2_489, %c0_490] : memref<1x16x16x3xbf16, #tpu.memory_space<vmem>>, vector<1x1x14x3xbf16>
    %325 = vector.shape_cast %324 : vector<1x1x14x3xbf16> to vector<14x3xbf16>
    %c0_491 = arith.constant 0 : index
    %c13 = arith.constant 13 : index
    %c0_492 = arith.constant 0 : index
    %c0_493 = arith.constant 0 : index
    %326 = vector.load %arg1[%c0_491, %c13, %c0_492, %c0_493] : memref<1x16x16x3xbf16, #tpu.memory_space<vmem>>, vector<1x1x14x3xbf16>
    %327 = vector.shape_cast %326 : vector<1x1x14x3xbf16> to vector<14x3xbf16>
    %c0_494 = arith.constant 0 : index
    %c13_495 = arith.constant 13 : index
    %c1_496 = arith.constant 1 : index
    %c0_497 = arith.constant 0 : index
    %328 = vector.load %arg1[%c0_494, %c13_495, %c1_496, %c0_497] : memref<1x16x16x3xbf16, #tpu.memory_space<vmem>>, vector<1x1x14x3xbf16>
    %329 = vector.shape_cast %328 : vector<1x1x14x3xbf16> to vector<14x3xbf16>
    %c0_498 = arith.constant 0 : index
    %c13_499 = arith.constant 13 : index
    %c2_500 = arith.constant 2 : index
    %c0_501 = arith.constant 0 : index
    %330 = vector.load %arg1[%c0_498, %c13_499, %c2_500, %c0_501] : memref<1x16x16x3xbf16, #tpu.memory_space<vmem>>, vector<1x1x14x3xbf16>
    %331 = vector.shape_cast %330 : vector<1x1x14x3xbf16> to vector<14x3xbf16>
    %332 = tpu.concatenate %315, %317, %319, %321, %323, %325, %327, %329, %331 in 1 : vector<14x3xbf16>, vector<14x3xbf16>, vector<14x3xbf16>, vector<14x3xbf16>, vector<14x3xbf16>, vector<14x3xbf16>, vector<14x3xbf16>, vector<14x3xbf16>, vector<14x3xbf16> -> vector<14x27xbf16>
    %cst_502 = arith.constant dense<0.000000e+00> : vector<14x10xf32>
    %333 = tpu.matmul %332, %0, %cst_502 {dimension_numbers = #tpu.dot_dimension_numbers<[1], [0], [0], [1], [0, 0, 1, 1], [], []>} : vector<14x27xbf16>, vector<27x10xbf16>, vector<14x10xf32> -> vector<14x10xf32>
    %334 = arith.maximumf %313, %333 : vector<14x10xf32>
    %c0_503 = arith.constant 0 : index
    %c0_504 = arith.constant 0 : index
    %335 = vector.load %arg12[%c0_503, %c0_504] : memref<14x10xf32, #tpu.memory_space<vmem>>, vector<14x10xf32>
    tpu.vector_store %arg12[%c0_503, %c0_504], %334 {strides = array<i32>} : memref<14x10xf32, #tpu.memory_space<vmem>>, vector<14x10xf32>,
    %c0_505 = arith.constant 0 : index
    %c0_506 = arith.constant 0 : index
    %336 = tpu.strided_load %arg12[%c0_505, %c0_506] {strides = array<i32: 2, 1>} : memref<14x10xf32, #tpu.memory_space<vmem>>, vector<7x10xf32>
    %c1_507 = arith.constant 1 : index
    %c0_508 = arith.constant 0 : index
    %337 = tpu.strided_load %arg12[%c1_507, %c0_508] {strides = array<i32: 2, 1>} : memref<14x10xf32, #tpu.memory_space<vmem>>, vector<7x10xf32>
    %338 = arith.maximumf %336, %337 : vector<7x10xf32>
    %339 = vector.broadcast %4 : vector<1x10xf32> to vector<7x10xf32>
    %340 = arith.addf %338, %339 : vector<7x10xf32>
    %cst_509 = arith.constant 0.000000e+00 : f32
    %341 = vector.broadcast %cst_509 : f32 to vector<7x10xf32>
    %342 = arith.cmpf oge, %340, %341 : vector<7x10xf32>
    %343 = vector.broadcast %8 : f32 to vector<7x10xf32>
    %344 = arith.mulf %343, %340 : vector<7x10xf32>
    %345 = arith.select %342, %340, %344 : vector<7x10xi1>, vector<7x10xf32>
    %346 = arith.truncf %345 : vector<7x10xf32> to vector<7x10xbf16>
    %c0_510 = arith.constant 0 : index
    %c5_511 = arith.constant 5 : index
    %c0_512 = arith.constant 0 : index
    %c0_513 = arith.constant 0 : index
    %347 = vector.load %arg13[%c0_510, %c5_511, %c0_512, %c0_513] : memref<1x7x7x10xbf16, #tpu.memory_space<vmem>>, vector<1x1x7x10xbf16>
    %348 = vector.shape_cast %347 : vector<1x1x7x10xbf16> to vector<7x10xbf16>
    %349 = vector.shape_cast %346 : vector<7x10xbf16> to vector<1x1x7x10xbf16>
    tpu.vector_store %arg13[%c0_510, %c5_511, %c0_512, %c0_513], %349 {strides = array<i32>} : memref<1x7x7x10xbf16, #tpu.memory_space<vmem>>, vector<1x1x7x10xbf16>,
    %c0_514 = arith.constant 0 : index
    %c12_515 = arith.constant 12 : index
    %c0_516 = arith.constant 0 : index
    %c0_517 = arith.constant 0 : index
    %350 = vector.load %arg1[%c0_514, %c12_515, %c0_516, %c0_517] : memref<1x16x16x3xbf16, #tpu.memory_space<vmem>>, vector<1x1x14x3xbf16>
    %351 = vector.shape_cast %350 : vector<1x1x14x3xbf16> to vector<14x3xbf16>
    %c0_518 = arith.constant 0 : index
    %c12_519 = arith.constant 12 : index
    %c1_520 = arith.constant 1 : index
    %c0_521 = arith.constant 0 : index
    %352 = vector.load %arg1[%c0_518, %c12_519, %c1_520, %c0_521] : memref<1x16x16x3xbf16, #tpu.memory_space<vmem>>, vector<1x1x14x3xbf16>
    %353 = vector.shape_cast %352 : vector<1x1x14x3xbf16> to vector<14x3xbf16>
    %c0_522 = arith.constant 0 : index
    %c12_523 = arith.constant 12 : index
    %c2_524 = arith.constant 2 : index
    %c0_525 = arith.constant 0 : index
    %354 = vector.load %arg1[%c0_522, %c12_523, %c2_524, %c0_525] : memref<1x16x16x3xbf16, #tpu.memory_space<vmem>>, vector<1x1x14x3xbf16>
    %355 = vector.shape_cast %354 : vector<1x1x14x3xbf16> to vector<14x3xbf16>
    %c0_526 = arith.constant 0 : index
    %c13_527 = arith.constant 13 : index
    %c0_528 = arith.constant 0 : index
    %c0_529 = arith.constant 0 : index
    %356 = vector.load %arg1[%c0_526, %c13_527, %c0_528, %c0_529] : memref<1x16x16x3xbf16, #tpu.memory_space<vmem>>, vector<1x1x14x3xbf16>
    %357 = vector.shape_cast %356 : vector<1x1x14x3xbf16> to vector<14x3xbf16>
    %c0_530 = arith.constant 0 : index
    %c13_531 = arith.constant 13 : index
    %c1_532 = arith.constant 1 : index
    %c0_533 = arith.constant 0 : index
    %358 = vector.load %arg1[%c0_530, %c13_531, %c1_532, %c0_533] : memref<1x16x16x3xbf16, #tpu.memory_space<vmem>>, vector<1x1x14x3xbf16>
    %359 = vector.shape_cast %358 : vector<1x1x14x3xbf16> to vector<14x3xbf16>
    %c0_534 = arith.constant 0 : index
    %c13_535 = arith.constant 13 : index
    %c2_536 = arith.constant 2 : index
    %c0_537 = arith.constant 0 : index
    %360 = vector.load %arg1[%c0_534, %c13_535, %c2_536, %c0_537] : memref<1x16x16x3xbf16, #tpu.memory_space<vmem>>, vector<1x1x14x3xbf16>
    %361 = vector.shape_cast %360 : vector<1x1x14x3xbf16> to vector<14x3xbf16>
    %c0_538 = arith.constant 0 : index
    %c14 = arith.constant 14 : index
    %c0_539 = arith.constant 0 : index
    %c0_540 = arith.constant 0 : index
    %362 = vector.load %arg1[%c0_538, %c14, %c0_539, %c0_540] : memref<1x16x16x3xbf16, #tpu.memory_space<vmem>>, vector<1x1x14x3xbf16>
    %363 = vector.shape_cast %362 : vector<1x1x14x3xbf16> to vector<14x3xbf16>
    %c0_541 = arith.constant 0 : index
    %c14_542 = arith.constant 14 : index
    %c1_543 = arith.constant 1 : index
    %c0_544 = arith.constant 0 : index
    %364 = vector.load %arg1[%c0_541, %c14_542, %c1_543, %c0_544] : memref<1x16x16x3xbf16, #tpu.memory_space<vmem>>, vector<1x1x14x3xbf16>
    %365 = vector.shape_cast %364 : vector<1x1x14x3xbf16> to vector<14x3xbf16>
    %c0_545 = arith.constant 0 : index
    %c14_546 = arith.constant 14 : index
    %c2_547 = arith.constant 2 : index
    %c0_548 = arith.constant 0 : index
    %366 = vector.load %arg1[%c0_545, %c14_546, %c2_547, %c0_548] : memref<1x16x16x3xbf16, #tpu.memory_space<vmem>>, vector<1x1x14x3xbf16>
    %367 = vector.shape_cast %366 : vector<1x1x14x3xbf16> to vector<14x3xbf16>
    %368 = tpu.concatenate %351, %353, %355, %357, %359, %361, %363, %365, %367 in 1 : vector<14x3xbf16>, vector<14x3xbf16>, vector<14x3xbf16>, vector<14x3xbf16>, vector<14x3xbf16>, vector<14x3xbf16>, vector<14x3xbf16>, vector<14x3xbf16>, vector<14x3xbf16> -> vector<14x27xbf16>
    %cst_549 = arith.constant dense<0.000000e+00> : vector<14x10xf32>
    %369 = tpu.matmul %368, %0, %cst_549 {dimension_numbers = #tpu.dot_dimension_numbers<[1], [0], [0], [1], [0, 0, 1, 1], [], []>} : vector<14x27xbf16>, vector<27x10xbf16>, vector<14x10xf32> -> vector<14x10xf32>
    %c0_550 = arith.constant 0 : index
    %c13_551 = arith.constant 13 : index
    %c0_552 = arith.constant 0 : index
    %c0_553 = arith.constant 0 : index
    %370 = vector.load %arg1[%c0_550, %c13_551, %c0_552, %c0_553] : memref<1x16x16x3xbf16, #tpu.memory_space<vmem>>, vector<1x1x14x3xbf16>
    %371 = vector.shape_cast %370 : vector<1x1x14x3xbf16> to vector<14x3xbf16>
    %c0_554 = arith.constant 0 : index
    %c13_555 = arith.constant 13 : index
    %c1_556 = arith.constant 1 : index
    %c0_557 = arith.constant 0 : index
    %372 = vector.load %arg1[%c0_554, %c13_555, %c1_556, %c0_557] : memref<1x16x16x3xbf16, #tpu.memory_space<vmem>>, vector<1x1x14x3xbf16>
    %373 = vector.shape_cast %372 : vector<1x1x14x3xbf16> to vector<14x3xbf16>
    %c0_558 = arith.constant 0 : index
    %c13_559 = arith.constant 13 : index
    %c2_560 = arith.constant 2 : index
    %c0_561 = arith.constant 0 : index
    %374 = vector.load %arg1[%c0_558, %c13_559, %c2_560, %c0_561] : memref<1x16x16x3xbf16, #tpu.memory_space<vmem>>, vector<1x1x14x3xbf16>
    %375 = vector.shape_cast %374 : vector<1x1x14x3xbf16> to vector<14x3xbf16>
    %c0_562 = arith.constant 0 : index
    %c14_563 = arith.constant 14 : index
    %c0_564 = arith.constant 0 : index
    %c0_565 = arith.constant 0 : index
    %376 = vector.load %arg1[%c0_562, %c14_563, %c0_564, %c0_565] : memref<1x16x16x3xbf16, #tpu.memory_space<vmem>>, vector<1x1x14x3xbf16>
    %377 = vector.shape_cast %376 : vector<1x1x14x3xbf16> to vector<14x3xbf16>
    %c0_566 = arith.constant 0 : index
    %c14_567 = arith.constant 14 : index
    %c1_568 = arith.constant 1 : index
    %c0_569 = arith.constant 0 : index
    %378 = vector.load %arg1[%c0_566, %c14_567, %c1_568, %c0_569] : memref<1x16x16x3xbf16, #tpu.memory_space<vmem>>, vector<1x1x14x3xbf16>
    %379 = vector.shape_cast %378 : vector<1x1x14x3xbf16> to vector<14x3xbf16>
    %c0_570 = arith.constant 0 : index
    %c14_571 = arith.constant 14 : index
    %c2_572 = arith.constant 2 : index
    %c0_573 = arith.constant 0 : index
    %380 = vector.load %arg1[%c0_570, %c14_571, %c2_572, %c0_573] : memref<1x16x16x3xbf16, #tpu.memory_space<vmem>>, vector<1x1x14x3xbf16>
    %381 = vector.shape_cast %380 : vector<1x1x14x3xbf16> to vector<14x3xbf16>
    %c0_574 = arith.constant 0 : index
    %c15 = arith.constant 15 : index
    %c0_575 = arith.constant 0 : index
    %c0_576 = arith.constant 0 : index
    %382 = vector.load %arg1[%c0_574, %c15, %c0_575, %c0_576] : memref<1x16x16x3xbf16, #tpu.memory_space<vmem>>, vector<1x1x14x3xbf16>
    %383 = vector.shape_cast %382 : vector<1x1x14x3xbf16> to vector<14x3xbf16>
    %c0_577 = arith.constant 0 : index
    %c15_578 = arith.constant 15 : index
    %c1_579 = arith.constant 1 : index
    %c0_580 = arith.constant 0 : index
    %384 = vector.load %arg1[%c0_577, %c15_578, %c1_579, %c0_580] : memref<1x16x16x3xbf16, #tpu.memory_space<vmem>>, vector<1x1x14x3xbf16>
    %385 = vector.shape_cast %384 : vector<1x1x14x3xbf16> to vector<14x3xbf16>
    %c0_581 = arith.constant 0 : index
    %c15_582 = arith.constant 15 : index
    %c2_583 = arith.constant 2 : index
    %c0_584 = arith.constant 0 : index
    %386 = vector.load %arg1[%c0_581, %c15_582, %c2_583, %c0_584] : memref<1x16x16x3xbf16, #tpu.memory_space<vmem>>, vector<1x1x14x3xbf16>
    %387 = vector.shape_cast %386 : vector<1x1x14x3xbf16> to vector<14x3xbf16>
    %388 = tpu.concatenate %371, %373, %375, %377, %379, %381, %383, %385, %387 in 1 : vector<14x3xbf16>, vector<14x3xbf16>, vector<14x3xbf16>, vector<14x3xbf16>, vector<14x3xbf16>, vector<14x3xbf16>, vector<14x3xbf16>, vector<14x3xbf16>, vector<14x3xbf16> -> vector<14x27xbf16>
    %cst_585 = arith.constant dense<0.000000e+00> : vector<14x10xf32>
    %389 = tpu.matmul %388, %0, %cst_585 {dimension_numbers = #tpu.dot_dimension_numbers<[1], [0], [0], [1], [0, 0, 1, 1], [], []>} : vector<14x27xbf16>, vector<27x10xbf16>, vector<14x10xf32> -> vector<14x10xf32>
    %390 = arith.maximumf %369, %389 : vector<14x10xf32>
    %c0_586 = arith.constant 0 : index
    %c0_587 = arith.constant 0 : index
    %391 = vector.load %arg12[%c0_586, %c0_587] : memref<14x10xf32, #tpu.memory_space<vmem>>, vector<14x10xf32>
    tpu.vector_store %arg12[%c0_586, %c0_587], %390 {strides = array<i32>} : memref<14x10xf32, #tpu.memory_space<vmem>>, vector<14x10xf32>,
    %c0_588 = arith.constant 0 : index
    %c0_589 = arith.constant 0 : index
    %392 = tpu.strided_load %arg12[%c0_588, %c0_589] {strides = array<i32: 2, 1>} : memref<14x10xf32, #tpu.memory_space<vmem>>, vector<7x10xf32>
    %c1_590 = arith.constant 1 : index
    %c0_591 = arith.constant 0 : index
    %393 = tpu.strided_load %arg12[%c1_590, %c0_591] {strides = array<i32: 2, 1>} : memref<14x10xf32, #tpu.memory_space<vmem>>, vector<7x10xf32>
    %394 = arith.maximumf %392, %393 : vector<7x10xf32>
    %395 = vector.broadcast %4 : vector<1x10xf32> to vector<7x10xf32>
    %396 = arith.addf %394, %395 : vector<7x10xf32>
    %cst_592 = arith.constant 0.000000e+00 : f32
    %397 = vector.broadcast %cst_592 : f32 to vector<7x10xf32>
    %398 = arith.cmpf oge, %396, %397 : vector<7x10xf32>
    %399 = vector.broadcast %8 : f32 to vector<7x10xf32>
    %400 = arith.mulf %399, %396 : vector<7x10xf32>
    %401 = arith.select %398, %396, %400 : vector<7x10xi1>, vector<7x10xf32>
    %402 = arith.truncf %401 : vector<7x10xf32> to vector<7x10xbf16>
    %c0_593 = arith.constant 0 : index
    %c6_594 = arith.constant 6 : index
    %c0_595 = arith.constant 0 : index
    %c0_596 = arith.constant 0 : index
    %403 = vector.load %arg13[%c0_593, %c6_594, %c0_595, %c0_596] : memref<1x7x7x10xbf16, #tpu.memory_space<vmem>>, vector<1x1x7x10xbf16>
    %404 = vector.shape_cast %403 : vector<1x1x7x10xbf16> to vector<7x10xbf16>
    %405 = vector.shape_cast %402 : vector<7x10xbf16> to vector<1x1x7x10xbf16>
    tpu.vector_store %arg13[%c0_593, %c6_594, %c0_595, %c0_596], %405 {strides = array<i32>} : memref<1x7x7x10xbf16, #tpu.memory_space<vmem>>, vector<1x1x7x10xbf16>,
    %c0_597 = arith.constant 0 : index
    %c0_598 = arith.constant 0 : index
    %c0_599 = arith.constant 0 : index
    %c0_600 = arith.constant 0 : index
    %406 = vector.load %arg13[%c0_597, %c0_598, %c0_599, %c0_600] : memref<1x7x7x10xbf16, #tpu.memory_space<vmem>>, vector<1x1x5x10xbf16>
    %407 = vector.shape_cast %406 : vector<1x1x5x10xbf16> to vector<5x10xbf16>
    %c0_601 = arith.constant 0 : index
    %c0_602 = arith.constant 0 : index
    %c1_603 = arith.constant 1 : index
    %c0_604 = arith.constant 0 : index
    %408 = vector.load %arg13[%c0_601, %c0_602, %c1_603, %c0_604] : memref<1x7x7x10xbf16, #tpu.memory_space<vmem>>, vector<1x1x5x10xbf16>
    %409 = vector.shape_cast %408 : vector<1x1x5x10xbf16> to vector<5x10xbf16>
    %c0_605 = arith.constant 0 : index
    %c0_606 = arith.constant 0 : index
    %c2_607 = arith.constant 2 : index
    %c0_608 = arith.constant 0 : index
    %410 = vector.load %arg13[%c0_605, %c0_606, %c2_607, %c0_608] : memref<1x7x7x10xbf16, #tpu.memory_space<vmem>>, vector<1x1x5x10xbf16>
    %411 = vector.shape_cast %410 : vector<1x1x5x10xbf16> to vector<5x10xbf16>
    %c0_609 = arith.constant 0 : index
    %c1_610 = arith.constant 1 : index
    %c0_611 = arith.constant 0 : index
    %c0_612 = arith.constant 0 : index
    %412 = vector.load %arg13[%c0_609, %c1_610, %c0_611, %c0_612] : memref<1x7x7x10xbf16, #tpu.memory_space<vmem>>, vector<1x1x5x10xbf16>
    %413 = vector.shape_cast %412 : vector<1x1x5x10xbf16> to vector<5x10xbf16>
    %c0_613 = arith.constant 0 : index
    %c1_614 = arith.constant 1 : index
    %c1_615 = arith.constant 1 : index
    %c0_616 = arith.constant 0 : index
    %414 = vector.load %arg13[%c0_613, %c1_614, %c1_615, %c0_616] : memref<1x7x7x10xbf16, #tpu.memory_space<vmem>>, vector<1x1x5x10xbf16>
    %415 = vector.shape_cast %414 : vector<1x1x5x10xbf16> to vector<5x10xbf16>
    %c0_617 = arith.constant 0 : index
    %c1_618 = arith.constant 1 : index
    %c2_619 = arith.constant 2 : index
    %c0_620 = arith.constant 0 : index
    %416 = vector.load %arg13[%c0_617, %c1_618, %c2_619, %c0_620] : memref<1x7x7x10xbf16, #tpu.memory_space<vmem>>, vector<1x1x5x10xbf16>
    %417 = vector.shape_cast %416 : vector<1x1x5x10xbf16> to vector<5x10xbf16>
    %c0_621 = arith.constant 0 : index
    %c2_622 = arith.constant 2 : index
    %c0_623 = arith.constant 0 : index
    %c0_624 = arith.constant 0 : index
    %418 = vector.load %arg13[%c0_621, %c2_622, %c0_623, %c0_624] : memref<1x7x7x10xbf16, #tpu.memory_space<vmem>>, vector<1x1x5x10xbf16>
    %419 = vector.shape_cast %418 : vector<1x1x5x10xbf16> to vector<5x10xbf16>
    %c0_625 = arith.constant 0 : index
    %c2_626 = arith.constant 2 : index
    %c1_627 = arith.constant 1 : index
    %c0_628 = arith.constant 0 : index
    %420 = vector.load %arg13[%c0_625, %c2_626, %c1_627, %c0_628] : memref<1x7x7x10xbf16, #tpu.memory_space<vmem>>, vector<1x1x5x10xbf16>
    %421 = vector.shape_cast %420 : vector<1x1x5x10xbf16> to vector<5x10xbf16>
    %c0_629 = arith.constant 0 : index
    %c2_630 = arith.constant 2 : index
    %c2_631 = arith.constant 2 : index
    %c0_632 = arith.constant 0 : index
    %422 = vector.load %arg13[%c0_629, %c2_630, %c2_631, %c0_632] : memref<1x7x7x10xbf16, #tpu.memory_space<vmem>>, vector<1x1x5x10xbf16>
    %423 = vector.shape_cast %422 : vector<1x1x5x10xbf16> to vector<5x10xbf16>
    %424 = tpu.concatenate %407, %409, %411, %413, %415, %417, %419, %421, %423 in 1 : vector<5x10xbf16>, vector<5x10xbf16>, vector<5x10xbf16>, vector<5x10xbf16>, vector<5x10xbf16>, vector<5x10xbf16>, vector<5x10xbf16>, vector<5x10xbf16>, vector<5x10xbf16> -> vector<5x90xbf16>
    %cst_633 = arith.constant dense<0.000000e+00> : vector<5x16xf32>
    %425 = tpu.matmul %424, %1, %cst_633 {dimension_numbers = #tpu.dot_dimension_numbers<[1], [0], [0], [1], [0, 0, 1, 1], [], []>} : vector<5x90xbf16>, vector<90x16xbf16>, vector<5x16xf32> -> vector<5x16xf32>
    %426 = vector.broadcast %5 : vector<1x16xf32> to vector<5x16xf32>
    %427 = arith.addf %425, %426 : vector<5x16xf32>
    %cst_634 = arith.constant 0.000000e+00 : f32
    %428 = vector.broadcast %cst_634 : f32 to vector<5x16xf32>
    %429 = arith.cmpf oge, %427, %428 : vector<5x16xf32>
    %430 = vector.broadcast %9 : f32 to vector<5x16xf32>
    %431 = arith.mulf %430, %427 : vector<5x16xf32>
    %432 = arith.select %429, %427, %431 : vector<5x16xi1>, vector<5x16xf32>
    %433 = arith.truncf %432 : vector<5x16xf32> to vector<5x16xbf16>
    %c0_635 = arith.constant 0 : index
    %c0_636 = arith.constant 0 : index
    %c0_637 = arith.constant 0 : index
    %c0_638 = arith.constant 0 : index
    %434 = vector.load %arg14[%c0_635, %c0_636, %c0_637, %c0_638] : memref<1x5x5x16xbf16, #tpu.memory_space<vmem>>, vector<1x1x5x16xbf16>
    %435 = vector.shape_cast %434 : vector<1x1x5x16xbf16> to vector<5x16xbf16>
    %436 = vector.shape_cast %433 : vector<5x16xbf16> to vector<1x1x5x16xbf16>
    tpu.vector_store %arg14[%c0_635, %c0_636, %c0_637, %c0_638], %436 {strides = array<i32>} : memref<1x5x5x16xbf16, #tpu.memory_space<vmem>>, vector<1x1x5x16xbf16>,
    %c0_639 = arith.constant 0 : index
    %c1_640 = arith.constant 1 : index
    %c0_641 = arith.constant 0 : index
    %c0_642 = arith.constant 0 : index
    %437 = vector.load %arg13[%c0_639, %c1_640, %c0_641, %c0_642] : memref<1x7x7x10xbf16, #tpu.memory_space<vmem>>, vector<1x1x5x10xbf16>
    %438 = vector.shape_cast %437 : vector<1x1x5x10xbf16> to vector<5x10xbf16>
    %c0_643 = arith.constant 0 : index
    %c1_644 = arith.constant 1 : index
    %c1_645 = arith.constant 1 : index
    %c0_646 = arith.constant 0 : index
    %439 = vector.load %arg13[%c0_643, %c1_644, %c1_645, %c0_646] : memref<1x7x7x10xbf16, #tpu.memory_space<vmem>>, vector<1x1x5x10xbf16>
    %440 = vector.shape_cast %439 : vector<1x1x5x10xbf16> to vector<5x10xbf16>
    %c0_647 = arith.constant 0 : index
    %c1_648 = arith.constant 1 : index
    %c2_649 = arith.constant 2 : index
    %c0_650 = arith.constant 0 : index
    %441 = vector.load %arg13[%c0_647, %c1_648, %c2_649, %c0_650] : memref<1x7x7x10xbf16, #tpu.memory_space<vmem>>, vector<1x1x5x10xbf16>
    %442 = vector.shape_cast %441 : vector<1x1x5x10xbf16> to vector<5x10xbf16>
    %c0_651 = arith.constant 0 : index
    %c2_652 = arith.constant 2 : index
    %c0_653 = arith.constant 0 : index
    %c0_654 = arith.constant 0 : index
    %443 = vector.load %arg13[%c0_651, %c2_652, %c0_653, %c0_654] : memref<1x7x7x10xbf16, #tpu.memory_space<vmem>>, vector<1x1x5x10xbf16>
    %444 = vector.shape_cast %443 : vector<1x1x5x10xbf16> to vector<5x10xbf16>
    %c0_655 = arith.constant 0 : index
    %c2_656 = arith.constant 2 : index
    %c1_657 = arith.constant 1 : index
    %c0_658 = arith.constant 0 : index
    %445 = vector.load %arg13[%c0_655, %c2_656, %c1_657, %c0_658] : memref<1x7x7x10xbf16, #tpu.memory_space<vmem>>, vector<1x1x5x10xbf16>
    %446 = vector.shape_cast %445 : vector<1x1x5x10xbf16> to vector<5x10xbf16>
    %c0_659 = arith.constant 0 : index
    %c2_660 = arith.constant 2 : index
    %c2_661 = arith.constant 2 : index
    %c0_662 = arith.constant 0 : index
    %447 = vector.load %arg13[%c0_659, %c2_660, %c2_661, %c0_662] : memref<1x7x7x10xbf16, #tpu.memory_space<vmem>>, vector<1x1x5x10xbf16>
    %448 = vector.shape_cast %447 : vector<1x1x5x10xbf16> to vector<5x10xbf16>
    %c0_663 = arith.constant 0 : index
    %c3_664 = arith.constant 3 : index
    %c0_665 = arith.constant 0 : index
    %c0_666 = arith.constant 0 : index
    %449 = vector.load %arg13[%c0_663, %c3_664, %c0_665, %c0_666] : memref<1x7x7x10xbf16, #tpu.memory_space<vmem>>, vector<1x1x5x10xbf16>
    %450 = vector.shape_cast %449 : vector<1x1x5x10xbf16> to vector<5x10xbf16>
    %c0_667 = arith.constant 0 : index
    %c3_668 = arith.constant 3 : index
    %c1_669 = arith.constant 1 : index
    %c0_670 = arith.constant 0 : index
    %451 = vector.load %arg13[%c0_667, %c3_668, %c1_669, %c0_670] : memref<1x7x7x10xbf16, #tpu.memory_space<vmem>>, vector<1x1x5x10xbf16>
    %452 = vector.shape_cast %451 : vector<1x1x5x10xbf16> to vector<5x10xbf16>
    %c0_671 = arith.constant 0 : index
    %c3_672 = arith.constant 3 : index
    %c2_673 = arith.constant 2 : index
    %c0_674 = arith.constant 0 : index
    %453 = vector.load %arg13[%c0_671, %c3_672, %c2_673, %c0_674] : memref<1x7x7x10xbf16, #tpu.memory_space<vmem>>, vector<1x1x5x10xbf16>
    %454 = vector.shape_cast %453 : vector<1x1x5x10xbf16> to vector<5x10xbf16>
    %455 = tpu.concatenate %438, %440, %442, %444, %446, %448, %450, %452, %454 in 1 : vector<5x10xbf16>, vector<5x10xbf16>, vector<5x10xbf16>, vector<5x10xbf16>, vector<5x10xbf16>, vector<5x10xbf16>, vector<5x10xbf16>, vector<5x10xbf16>, vector<5x10xbf16> -> vector<5x90xbf16>
    %cst_675 = arith.constant dense<0.000000e+00> : vector<5x16xf32>
    %456 = tpu.matmul %455, %1, %cst_675 {dimension_numbers = #tpu.dot_dimension_numbers<[1], [0], [0], [1], [0, 0, 1, 1], [], []>} : vector<5x90xbf16>, vector<90x16xbf16>, vector<5x16xf32> -> vector<5x16xf32>
    %457 = vector.broadcast %5 : vector<1x16xf32> to vector<5x16xf32>
    %458 = arith.addf %456, %457 : vector<5x16xf32>
    %cst_676 = arith.constant 0.000000e+00 : f32
    %459 = vector.broadcast %cst_676 : f32 to vector<5x16xf32>
    %460 = arith.cmpf oge, %458, %459 : vector<5x16xf32>
    %461 = vector.broadcast %9 : f32 to vector<5x16xf32>
    %462 = arith.mulf %461, %458 : vector<5x16xf32>
    %463 = arith.select %460, %458, %462 : vector<5x16xi1>, vector<5x16xf32>
    %464 = arith.truncf %463 : vector<5x16xf32> to vector<5x16xbf16>
    %c0_677 = arith.constant 0 : index
    %c1_678 = arith.constant 1 : index
    %c0_679 = arith.constant 0 : index
    %c0_680 = arith.constant 0 : index
    %465 = vector.load %arg14[%c0_677, %c1_678, %c0_679, %c0_680] : memref<1x5x5x16xbf16, #tpu.memory_space<vmem>>, vector<1x1x5x16xbf16>
    %466 = vector.shape_cast %465 : vector<1x1x5x16xbf16> to vector<5x16xbf16>
    %467 = vector.shape_cast %464 : vector<5x16xbf16> to vector<1x1x5x16xbf16>
    tpu.vector_store %arg14[%c0_677, %c1_678, %c0_679, %c0_680], %467 {strides = array<i32>} : memref<1x5x5x16xbf16, #tpu.memory_space<vmem>>, vector<1x1x5x16xbf16>,
    %c0_681 = arith.constant 0 : index
    %c2_682 = arith.constant 2 : index
    %c0_683 = arith.constant 0 : index
    %c0_684 = arith.constant 0 : index
    %468 = vector.load %arg13[%c0_681, %c2_682, %c0_683, %c0_684] : memref<1x7x7x10xbf16, #tpu.memory_space<vmem>>, vector<1x1x5x10xbf16>
    %469 = vector.shape_cast %468 : vector<1x1x5x10xbf16> to vector<5x10xbf16>
    %c0_685 = arith.constant 0 : index
    %c2_686 = arith.constant 2 : index
    %c1_687 = arith.constant 1 : index
    %c0_688 = arith.constant 0 : index
    %470 = vector.load %arg13[%c0_685, %c2_686, %c1_687, %c0_688] : memref<1x7x7x10xbf16, #tpu.memory_space<vmem>>, vector<1x1x5x10xbf16>
    %471 = vector.shape_cast %470 : vector<1x1x5x10xbf16> to vector<5x10xbf16>
    %c0_689 = arith.constant 0 : index
    %c2_690 = arith.constant 2 : index
    %c2_691 = arith.constant 2 : index
    %c0_692 = arith.constant 0 : index
    %472 = vector.load %arg13[%c0_689, %c2_690, %c2_691, %c0_692] : memref<1x7x7x10xbf16, #tpu.memory_space<vmem>>, vector<1x1x5x10xbf16>
    %473 = vector.shape_cast %472 : vector<1x1x5x10xbf16> to vector<5x10xbf16>
    %c0_693 = arith.constant 0 : index
    %c3_694 = arith.constant 3 : index
    %c0_695 = arith.constant 0 : index
    %c0_696 = arith.constant 0 : index
    %474 = vector.load %arg13[%c0_693, %c3_694, %c0_695, %c0_696] : memref<1x7x7x10xbf16, #tpu.memory_space<vmem>>, vector<1x1x5x10xbf16>
    %475 = vector.shape_cast %474 : vector<1x1x5x10xbf16> to vector<5x10xbf16>
    %c0_697 = arith.constant 0 : index
    %c3_698 = arith.constant 3 : index
    %c1_699 = arith.constant 1 : index
    %c0_700 = arith.constant 0 : index
    %476 = vector.load %arg13[%c0_697, %c3_698, %c1_699, %c0_700] : memref<1x7x7x10xbf16, #tpu.memory_space<vmem>>, vector<1x1x5x10xbf16>
    %477 = vector.shape_cast %476 : vector<1x1x5x10xbf16> to vector<5x10xbf16>
    %c0_701 = arith.constant 0 : index
    %c3_702 = arith.constant 3 : index
    %c2_703 = arith.constant 2 : index
    %c0_704 = arith.constant 0 : index
    %478 = vector.load %arg13[%c0_701, %c3_702, %c2_703, %c0_704] : memref<1x7x7x10xbf16, #tpu.memory_space<vmem>>, vector<1x1x5x10xbf16>
    %479 = vector.shape_cast %478 : vector<1x1x5x10xbf16> to vector<5x10xbf16>
    %c0_705 = arith.constant 0 : index
    %c4_706 = arith.constant 4 : index
    %c0_707 = arith.constant 0 : index
    %c0_708 = arith.constant 0 : index
    %480 = vector.load %arg13[%c0_705, %c4_706, %c0_707, %c0_708] : memref<1x7x7x10xbf16, #tpu.memory_space<vmem>>, vector<1x1x5x10xbf16>
    %481 = vector.shape_cast %480 : vector<1x1x5x10xbf16> to vector<5x10xbf16>
    %c0_709 = arith.constant 0 : index
    %c4_710 = arith.constant 4 : index
    %c1_711 = arith.constant 1 : index
    %c0_712 = arith.constant 0 : index
    %482 = vector.load %arg13[%c0_709, %c4_710, %c1_711, %c0_712] : memref<1x7x7x10xbf16, #tpu.memory_space<vmem>>, vector<1x1x5x10xbf16>
    %483 = vector.shape_cast %482 : vector<1x1x5x10xbf16> to vector<5x10xbf16>
    %c0_713 = arith.constant 0 : index
    %c4_714 = arith.constant 4 : index
    %c2_715 = arith.constant 2 : index
    %c0_716 = arith.constant 0 : index
    %484 = vector.load %arg13[%c0_713, %c4_714, %c2_715, %c0_716] : memref<1x7x7x10xbf16, #tpu.memory_space<vmem>>, vector<1x1x5x10xbf16>
    %485 = vector.shape_cast %484 : vector<1x1x5x10xbf16> to vector<5x10xbf16>
    %486 = tpu.concatenate %469, %471, %473, %475, %477, %479, %481, %483, %485 in 1 : vector<5x10xbf16>, vector<5x10xbf16>, vector<5x10xbf16>, vector<5x10xbf16>, vector<5x10xbf16>, vector<5x10xbf16>, vector<5x10xbf16>, vector<5x10xbf16>, vector<5x10xbf16> -> vector<5x90xbf16>
    %cst_717 = arith.constant dense<0.000000e+00> : vector<5x16xf32>
    %487 = tpu.matmul %486, %1, %cst_717 {dimension_numbers = #tpu.dot_dimension_numbers<[1], [0], [0], [1], [0, 0, 1, 1], [], []>} : vector<5x90xbf16>, vector<90x16xbf16>, vector<5x16xf32> -> vector<5x16xf32>
    %488 = vector.broadcast %5 : vector<1x16xf32> to vector<5x16xf32>
    %489 = arith.addf %487, %488 : vector<5x16xf32>
    %cst_718 = arith.constant 0.000000e+00 : f32
    %490 = vector.broadcast %cst_718 : f32 to vector<5x16xf32>
    %491 = arith.cmpf oge, %489, %490 : vector<5x16xf32>
    %492 = vector.broadcast %9 : f32 to vector<5x16xf32>
    %493 = arith.mulf %492, %489 : vector<5x16xf32>
    %494 = arith.select %491, %489, %493 : vector<5x16xi1>, vector<5x16xf32>
    %495 = arith.truncf %494 : vector<5x16xf32> to vector<5x16xbf16>
    %c0_719 = arith.constant 0 : index
    %c2_720 = arith.constant 2 : index
    %c0_721 = arith.constant 0 : index
    %c0_722 = arith.constant 0 : index
    %496 = vector.load %arg14[%c0_719, %c2_720, %c0_721, %c0_722] : memref<1x5x5x16xbf16, #tpu.memory_space<vmem>>, vector<1x1x5x16xbf16>
    %497 = vector.shape_cast %496 : vector<1x1x5x16xbf16> to vector<5x16xbf16>
    %498 = vector.shape_cast %495 : vector<5x16xbf16> to vector<1x1x5x16xbf16>
    tpu.vector_store %arg14[%c0_719, %c2_720, %c0_721, %c0_722], %498 {strides = array<i32>} : memref<1x5x5x16xbf16, #tpu.memory_space<vmem>>, vector<1x1x5x16xbf16>,
    %c0_723 = arith.constant 0 : index
    %c3_724 = arith.constant 3 : index
    %c0_725 = arith.constant 0 : index
    %c0_726 = arith.constant 0 : index
    %499 = vector.load %arg13[%c0_723, %c3_724, %c0_725, %c0_726] : memref<1x7x7x10xbf16, #tpu.memory_space<vmem>>, vector<1x1x5x10xbf16>
    %500 = vector.shape_cast %499 : vector<1x1x5x10xbf16> to vector<5x10xbf16>
    %c0_727 = arith.constant 0 : index
    %c3_728 = arith.constant 3 : index
    %c1_729 = arith.constant 1 : index
    %c0_730 = arith.constant 0 : index
    %501 = vector.load %arg13[%c0_727, %c3_728, %c1_729, %c0_730] : memref<1x7x7x10xbf16, #tpu.memory_space<vmem>>, vector<1x1x5x10xbf16>
    %502 = vector.shape_cast %501 : vector<1x1x5x10xbf16> to vector<5x10xbf16>
    %c0_731 = arith.constant 0 : index
    %c3_732 = arith.constant 3 : index
    %c2_733 = arith.constant 2 : index
    %c0_734 = arith.constant 0 : index
    %503 = vector.load %arg13[%c0_731, %c3_732, %c2_733, %c0_734] : memref<1x7x7x10xbf16, #tpu.memory_space<vmem>>, vector<1x1x5x10xbf16>
    %504 = vector.shape_cast %503 : vector<1x1x5x10xbf16> to vector<5x10xbf16>
    %c0_735 = arith.constant 0 : index
    %c4_736 = arith.constant 4 : index
    %c0_737 = arith.constant 0 : index
    %c0_738 = arith.constant 0 : index
    %505 = vector.load %arg13[%c0_735, %c4_736, %c0_737, %c0_738] : memref<1x7x7x10xbf16, #tpu.memory_space<vmem>>, vector<1x1x5x10xbf16>
    %506 = vector.shape_cast %505 : vector<1x1x5x10xbf16> to vector<5x10xbf16>
    %c0_739 = arith.constant 0 : index
    %c4_740 = arith.constant 4 : index
    %c1_741 = arith.constant 1 : index
    %c0_742 = arith.constant 0 : index
    %507 = vector.load %arg13[%c0_739, %c4_740, %c1_741, %c0_742] : memref<1x7x7x10xbf16, #tpu.memory_space<vmem>>, vector<1x1x5x10xbf16>
    %508 = vector.shape_cast %507 : vector<1x1x5x10xbf16> to vector<5x10xbf16>
    %c0_743 = arith.constant 0 : index
    %c4_744 = arith.constant 4 : index
    %c2_745 = arith.constant 2 : index
    %c0_746 = arith.constant 0 : index
    %509 = vector.load %arg13[%c0_743, %c4_744, %c2_745, %c0_746] : memref<1x7x7x10xbf16, #tpu.memory_space<vmem>>, vector<1x1x5x10xbf16>
    %510 = vector.shape_cast %509 : vector<1x1x5x10xbf16> to vector<5x10xbf16>
    %c0_747 = arith.constant 0 : index
    %c5_748 = arith.constant 5 : index
    %c0_749 = arith.constant 0 : index
    %c0_750 = arith.constant 0 : index
    %511 = vector.load %arg13[%c0_747, %c5_748, %c0_749, %c0_750] : memref<1x7x7x10xbf16, #tpu.memory_space<vmem>>, vector<1x1x5x10xbf16>
    %512 = vector.shape_cast %511 : vector<1x1x5x10xbf16> to vector<5x10xbf16>
    %c0_751 = arith.constant 0 : index
    %c5_752 = arith.constant 5 : index
    %c1_753 = arith.constant 1 : index
    %c0_754 = arith.constant 0 : index
    %513 = vector.load %arg13[%c0_751, %c5_752, %c1_753, %c0_754] : memref<1x7x7x10xbf16, #tpu.memory_space<vmem>>, vector<1x1x5x10xbf16>
    %514 = vector.shape_cast %513 : vector<1x1x5x10xbf16> to vector<5x10xbf16>
    %c0_755 = arith.constant 0 : index
    %c5_756 = arith.constant 5 : index
    %c2_757 = arith.constant 2 : index
    %c0_758 = arith.constant 0 : index
    %515 = vector.load %arg13[%c0_755, %c5_756, %c2_757, %c0_758] : memref<1x7x7x10xbf16, #tpu.memory_space<vmem>>, vector<1x1x5x10xbf16>
    %516 = vector.shape_cast %515 : vector<1x1x5x10xbf16> to vector<5x10xbf16>
    %517 = tpu.concatenate %500, %502, %504, %506, %508, %510, %512, %514, %516 in 1 : vector<5x10xbf16>, vector<5x10xbf16>, vector<5x10xbf16>, vector<5x10xbf16>, vector<5x10xbf16>, vector<5x10xbf16>, vector<5x10xbf16>, vector<5x10xbf16>, vector<5x10xbf16> -> vector<5x90xbf16>
    %cst_759 = arith.constant dense<0.000000e+00> : vector<5x16xf32>
    %518 = tpu.matmul %517, %1, %cst_759 {dimension_numbers = #tpu.dot_dimension_numbers<[1], [0], [0], [1], [0, 0, 1, 1], [], []>} : vector<5x90xbf16>, vector<90x16xbf16>, vector<5x16xf32> -> vector<5x16xf32>
    %519 = vector.broadcast %5 : vector<1x16xf32> to vector<5x16xf32>
    %520 = arith.addf %518, %519 : vector<5x16xf32>
    %cst_760 = arith.constant 0.000000e+00 : f32
    %521 = vector.broadcast %cst_760 : f32 to vector<5x16xf32>
    %522 = arith.cmpf oge, %520, %521 : vector<5x16xf32>
    %523 = vector.broadcast %9 : f32 to vector<5x16xf32>
    %524 = arith.mulf %523, %520 : vector<5x16xf32>
    %525 = arith.select %522, %520, %524 : vector<5x16xi1>, vector<5x16xf32>
    %526 = arith.truncf %525 : vector<5x16xf32> to vector<5x16xbf16>
    %c0_761 = arith.constant 0 : index
    %c3_762 = arith.constant 3 : index
    %c0_763 = arith.constant 0 : index
    %c0_764 = arith.constant 0 : index
    %527 = vector.load %arg14[%c0_761, %c3_762, %c0_763, %c0_764] : memref<1x5x5x16xbf16, #tpu.memory_space<vmem>>, vector<1x1x5x16xbf16>
    %528 = vector.shape_cast %527 : vector<1x1x5x16xbf16> to vector<5x16xbf16>
    %529 = vector.shape_cast %526 : vector<5x16xbf16> to vector<1x1x5x16xbf16>
    tpu.vector_store %arg14[%c0_761, %c3_762, %c0_763, %c0_764], %529 {strides = array<i32>} : memref<1x5x5x16xbf16, #tpu.memory_space<vmem>>, vector<1x1x5x16xbf16>,
    %c0_765 = arith.constant 0 : index
    %c4_766 = arith.constant 4 : index
    %c0_767 = arith.constant 0 : index
    %c0_768 = arith.constant 0 : index
    %530 = vector.load %arg13[%c0_765, %c4_766, %c0_767, %c0_768] : memref<1x7x7x10xbf16, #tpu.memory_space<vmem>>, vector<1x1x5x10xbf16>
    %531 = vector.shape_cast %530 : vector<1x1x5x10xbf16> to vector<5x10xbf16>
    %c0_769 = arith.constant 0 : index
    %c4_770 = arith.constant 4 : index
    %c1_771 = arith.constant 1 : index
    %c0_772 = arith.constant 0 : index
    %532 = vector.load %arg13[%c0_769, %c4_770, %c1_771, %c0_772] : memref<1x7x7x10xbf16, #tpu.memory_space<vmem>>, vector<1x1x5x10xbf16>
    %533 = vector.shape_cast %532 : vector<1x1x5x10xbf16> to vector<5x10xbf16>
    %c0_773 = arith.constant 0 : index
    %c4_774 = arith.constant 4 : index
    %c2_775 = arith.constant 2 : index
    %c0_776 = arith.constant 0 : index
    %534 = vector.load %arg13[%c0_773, %c4_774, %c2_775, %c0_776] : memref<1x7x7x10xbf16, #tpu.memory_space<vmem>>, vector<1x1x5x10xbf16>
    %535 = vector.shape_cast %534 : vector<1x1x5x10xbf16> to vector<5x10xbf16>
    %c0_777 = arith.constant 0 : index
    %c5_778 = arith.constant 5 : index
    %c0_779 = arith.constant 0 : index
    %c0_780 = arith.constant 0 : index
    %536 = vector.load %arg13[%c0_777, %c5_778, %c0_779, %c0_780] : memref<1x7x7x10xbf16, #tpu.memory_space<vmem>>, vector<1x1x5x10xbf16>
    %537 = vector.shape_cast %536 : vector<1x1x5x10xbf16> to vector<5x10xbf16>
    %c0_781 = arith.constant 0 : index
    %c5_782 = arith.constant 5 : index
    %c1_783 = arith.constant 1 : index
    %c0_784 = arith.constant 0 : index
    %538 = vector.load %arg13[%c0_781, %c5_782, %c1_783, %c0_784] : memref<1x7x7x10xbf16, #tpu.memory_space<vmem>>, vector<1x1x5x10xbf16>
    %539 = vector.shape_cast %538 : vector<1x1x5x10xbf16> to vector<5x10xbf16>
    %c0_785 = arith.constant 0 : index
    %c5_786 = arith.constant 5 : index
    %c2_787 = arith.constant 2 : index
    %c0_788 = arith.constant 0 : index
    %540 = vector.load %arg13[%c0_785, %c5_786, %c2_787, %c0_788] : memref<1x7x7x10xbf16, #tpu.memory_space<vmem>>, vector<1x1x5x10xbf16>
    %541 = vector.shape_cast %540 : vector<1x1x5x10xbf16> to vector<5x10xbf16>
    %c0_789 = arith.constant 0 : index
    %c6_790 = arith.constant 6 : index
    %c0_791 = arith.constant 0 : index
    %c0_792 = arith.constant 0 : index
    %542 = vector.load %arg13[%c0_789, %c6_790, %c0_791, %c0_792] : memref<1x7x7x10xbf16, #tpu.memory_space<vmem>>, vector<1x1x5x10xbf16>
    %543 = vector.shape_cast %542 : vector<1x1x5x10xbf16> to vector<5x10xbf16>
    %c0_793 = arith.constant 0 : index
    %c6_794 = arith.constant 6 : index
    %c1_795 = arith.constant 1 : index
    %c0_796 = arith.constant 0 : index
    %544 = vector.load %arg13[%c0_793, %c6_794, %c1_795, %c0_796] : memref<1x7x7x10xbf16, #tpu.memory_space<vmem>>, vector<1x1x5x10xbf16>
    %545 = vector.shape_cast %544 : vector<1x1x5x10xbf16> to vector<5x10xbf16>
    %c0_797 = arith.constant 0 : index
    %c6_798 = arith.constant 6 : index
    %c2_799 = arith.constant 2 : index
    %c0_800 = arith.constant 0 : index
    %546 = vector.load %arg13[%c0_797, %c6_798, %c2_799, %c0_800] : memref<1x7x7x10xbf16, #tpu.memory_space<vmem>>, vector<1x1x5x10xbf16>
    %547 = vector.shape_cast %546 : vector<1x1x5x10xbf16> to vector<5x10xbf16>
    %548 = tpu.concatenate %531, %533, %535, %537, %539, %541, %543, %545, %547 in 1 : vector<5x10xbf16>, vector<5x10xbf16>, vector<5x10xbf16>, vector<5x10xbf16>, vector<5x10xbf16>, vector<5x10xbf16>, vector<5x10xbf16>, vector<5x10xbf16>, vector<5x10xbf16> -> vector<5x90xbf16>
    %cst_801 = arith.constant dense<0.000000e+00> : vector<5x16xf32>
    %549 = tpu.matmul %548, %1, %cst_801 {dimension_numbers = #tpu.dot_dimension_numbers<[1], [0], [0], [1], [0, 0, 1, 1], [], []>} : vector<5x90xbf16>, vector<90x16xbf16>, vector<5x16xf32> -> vector<5x16xf32>
    %550 = vector.broadcast %5 : vector<1x16xf32> to vector<5x16xf32>
    %551 = arith.addf %549, %550 : vector<5x16xf32>
    %cst_802 = arith.constant 0.000000e+00 : f32
    %552 = vector.broadcast %cst_802 : f32 to vector<5x16xf32>
    %553 = arith.cmpf oge, %551, %552 : vector<5x16xf32>
    %554 = vector.broadcast %9 : f32 to vector<5x16xf32>
    %555 = arith.mulf %554, %551 : vector<5x16xf32>
    %556 = arith.select %553, %551, %555 : vector<5x16xi1>, vector<5x16xf32>
    %557 = arith.truncf %556 : vector<5x16xf32> to vector<5x16xbf16>
    %c0_803 = arith.constant 0 : index
    %c4_804 = arith.constant 4 : index
    %c0_805 = arith.constant 0 : index
    %c0_806 = arith.constant 0 : index
    %558 = vector.load %arg14[%c0_803, %c4_804, %c0_805, %c0_806] : memref<1x5x5x16xbf16, #tpu.memory_space<vmem>>, vector<1x1x5x16xbf16>
    %559 = vector.shape_cast %558 : vector<1x1x5x16xbf16> to vector<5x16xbf16>
    %560 = vector.shape_cast %557 : vector<5x16xbf16> to vector<1x1x5x16xbf16>
    tpu.vector_store %arg14[%c0_803, %c4_804, %c0_805, %c0_806], %560 {strides = array<i32>} : memref<1x5x5x16xbf16, #tpu.memory_space<vmem>>, vector<1x1x5x16xbf16>,
    %c0_807 = arith.constant 0 : index
    %c0_808 = arith.constant 0 : index
    %c0_809 = arith.constant 0 : index
    %c0_810 = arith.constant 0 : index
    %561 = vector.load %arg14[%c0_807, %c0_808, %c0_809, %c0_810] : memref<1x5x5x16xbf16, #tpu.memory_space<vmem>>, vector<1x1x3x16xbf16>
    %562 = vector.shape_cast %561 : vector<1x1x3x16xbf16> to vector<3x16xbf16>
    %c0_811 = arith.constant 0 : index
    %c0_812 = arith.constant 0 : index
    %c1_813 = arith.constant 1 : index
    %c0_814 = arith.constant 0 : index
    %563 = vector.load %arg14[%c0_811, %c0_812, %c1_813, %c0_814] : memref<1x5x5x16xbf16, #tpu.memory_space<vmem>>, vector<1x1x3x16xbf16>
    %564 = vector.shape_cast %563 : vector<1x1x3x16xbf16> to vector<3x16xbf16>
    %c0_815 = arith.constant 0 : index
    %c0_816 = arith.constant 0 : index
    %c2_817 = arith.constant 2 : index
    %c0_818 = arith.constant 0 : index
    %565 = vector.load %arg14[%c0_815, %c0_816, %c2_817, %c0_818] : memref<1x5x5x16xbf16, #tpu.memory_space<vmem>>, vector<1x1x3x16xbf16>
    %566 = vector.shape_cast %565 : vector<1x1x3x16xbf16> to vector<3x16xbf16>
    %c0_819 = arith.constant 0 : index
    %c1_820 = arith.constant 1 : index
    %c0_821 = arith.constant 0 : index
    %c0_822 = arith.constant 0 : index
    %567 = vector.load %arg14[%c0_819, %c1_820, %c0_821, %c0_822] : memref<1x5x5x16xbf16, #tpu.memory_space<vmem>>, vector<1x1x3x16xbf16>
    %568 = vector.shape_cast %567 : vector<1x1x3x16xbf16> to vector<3x16xbf16>
    %c0_823 = arith.constant 0 : index
    %c1_824 = arith.constant 1 : index
    %c1_825 = arith.constant 1 : index
    %c0_826 = arith.constant 0 : index
    %569 = vector.load %arg14[%c0_823, %c1_824, %c1_825, %c0_826] : memref<1x5x5x16xbf16, #tpu.memory_space<vmem>>, vector<1x1x3x16xbf16>
    %570 = vector.shape_cast %569 : vector<1x1x3x16xbf16> to vector<3x16xbf16>
    %c0_827 = arith.constant 0 : index
    %c1_828 = arith.constant 1 : index
    %c2_829 = arith.constant 2 : index
    %c0_830 = arith.constant 0 : index
    %571 = vector.load %arg14[%c0_827, %c1_828, %c2_829, %c0_830] : memref<1x5x5x16xbf16, #tpu.memory_space<vmem>>, vector<1x1x3x16xbf16>
    %572 = vector.shape_cast %571 : vector<1x1x3x16xbf16> to vector<3x16xbf16>
    %c0_831 = arith.constant 0 : index
    %c2_832 = arith.constant 2 : index
    %c0_833 = arith.constant 0 : index
    %c0_834 = arith.constant 0 : index
    %573 = vector.load %arg14[%c0_831, %c2_832, %c0_833, %c0_834] : memref<1x5x5x16xbf16, #tpu.memory_space<vmem>>, vector<1x1x3x16xbf16>
    %574 = vector.shape_cast %573 : vector<1x1x3x16xbf16> to vector<3x16xbf16>
    %c0_835 = arith.constant 0 : index
    %c2_836 = arith.constant 2 : index
    %c1_837 = arith.constant 1 : index
    %c0_838 = arith.constant 0 : index
    %575 = vector.load %arg14[%c0_835, %c2_836, %c1_837, %c0_838] : memref<1x5x5x16xbf16, #tpu.memory_space<vmem>>, vector<1x1x3x16xbf16>
    %576 = vector.shape_cast %575 : vector<1x1x3x16xbf16> to vector<3x16xbf16>
    %c0_839 = arith.constant 0 : index
    %c2_840 = arith.constant 2 : index
    %c2_841 = arith.constant 2 : index
    %c0_842 = arith.constant 0 : index
    %577 = vector.load %arg14[%c0_839, %c2_840, %c2_841, %c0_842] : memref<1x5x5x16xbf16, #tpu.memory_space<vmem>>, vector<1x1x3x16xbf16>
    %578 = vector.shape_cast %577 : vector<1x1x3x16xbf16> to vector<3x16xbf16>
    %579 = tpu.concatenate %562, %564, %566, %568, %570, %572, %574, %576, %578 in 1 : vector<3x16xbf16>, vector<3x16xbf16>, vector<3x16xbf16>, vector<3x16xbf16>, vector<3x16xbf16>, vector<3x16xbf16>, vector<3x16xbf16>, vector<3x16xbf16>, vector<3x16xbf16> -> vector<3x144xbf16>
    %cst_843 = arith.constant dense<0.000000e+00> : vector<3x32xf32>
    %580 = tpu.matmul %579, %2, %cst_843 {dimension_numbers = #tpu.dot_dimension_numbers<[1], [0], [0], [1], [0, 0, 1, 1], [], []>} : vector<3x144xbf16>, vector<144x32xbf16>, vector<3x32xf32> -> vector<3x32xf32>
    %581 = vector.broadcast %6 : vector<1x32xf32> to vector<3x32xf32>
    %582 = arith.addf %580, %581 : vector<3x32xf32>
    %cst_844 = arith.constant 0.000000e+00 : f32
    %583 = vector.broadcast %cst_844 : f32 to vector<3x32xf32>
    %584 = arith.cmpf oge, %582, %583 : vector<3x32xf32>
    %585 = vector.broadcast %10 : f32 to vector<3x32xf32>
    %586 = arith.mulf %585, %582 : vector<3x32xf32>
    %587 = arith.select %584, %582, %586 : vector<3x32xi1>, vector<3x32xf32>
    %588 = arith.truncf %587 : vector<3x32xf32> to vector<3x32xbf16>
    %cst_845 = arith.constant dense<0.000000e+00> : vector<3x5xf32>
    %589 = tpu.matmul %588, %3, %cst_845 {dimension_numbers = #tpu.dot_dimension_numbers<[1], [0], [0], [1], [0, 0, 1, 1], [], []>} : vector<3x32xbf16>, vector<32x5xbf16>, vector<3x5xf32> -> vector<3x5xf32>
    %590 = vector.broadcast %7 : vector<1x5xf32> to vector<3x5xf32>
    %591 = arith.addf %589, %590 : vector<3x5xf32>
    %c0_846 = arith.constant 0 : index
    %c1_847 = arith.constant 1 : index
    %c0_848 = arith.constant 0 : index
    %c0_849 = arith.constant 0 : index
    %592 = vector.load %arg14[%c0_846, %c1_847, %c0_848, %c0_849] : memref<1x5x5x16xbf16, #tpu.memory_space<vmem>>, vector<1x1x3x16xbf16>
    %593 = vector.shape_cast %592 : vector<1x1x3x16xbf16> to vector<3x16xbf16>
    %c0_850 = arith.constant 0 : index
    %c1_851 = arith.constant 1 : index
    %c1_852 = arith.constant 1 : index
    %c0_853 = arith.constant 0 : index
    %594 = vector.load %arg14[%c0_850, %c1_851, %c1_852, %c0_853] : memref<1x5x5x16xbf16, #tpu.memory_space<vmem>>, vector<1x1x3x16xbf16>
    %595 = vector.shape_cast %594 : vector<1x1x3x16xbf16> to vector<3x16xbf16>
    %c0_854 = arith.constant 0 : index
    %c1_855 = arith.constant 1 : index
    %c2_856 = arith.constant 2 : index
    %c0_857 = arith.constant 0 : index
    %596 = vector.load %arg14[%c0_854, %c1_855, %c2_856, %c0_857] : memref<1x5x5x16xbf16, #tpu.memory_space<vmem>>, vector<1x1x3x16xbf16>
    %597 = vector.shape_cast %596 : vector<1x1x3x16xbf16> to vector<3x16xbf16>
    %c0_858 = arith.constant 0 : index
    %c2_859 = arith.constant 2 : index
    %c0_860 = arith.constant 0 : index
    %c0_861 = arith.constant 0 : index
    %598 = vector.load %arg14[%c0_858, %c2_859, %c0_860, %c0_861] : memref<1x5x5x16xbf16, #tpu.memory_space<vmem>>, vector<1x1x3x16xbf16>
    %599 = vector.shape_cast %598 : vector<1x1x3x16xbf16> to vector<3x16xbf16>
    %c0_862 = arith.constant 0 : index
    %c2_863 = arith.constant 2 : index
    %c1_864 = arith.constant 1 : index
    %c0_865 = arith.constant 0 : index
    %600 = vector.load %arg14[%c0_862, %c2_863, %c1_864, %c0_865] : memref<1x5x5x16xbf16, #tpu.memory_space<vmem>>, vector<1x1x3x16xbf16>
    %601 = vector.shape_cast %600 : vector<1x1x3x16xbf16> to vector<3x16xbf16>
    %c0_866 = arith.constant 0 : index
    %c2_867 = arith.constant 2 : index
    %c2_868 = arith.constant 2 : index
    %c0_869 = arith.constant 0 : index
    %602 = vector.load %arg14[%c0_866, %c2_867, %c2_868, %c0_869] : memref<1x5x5x16xbf16, #tpu.memory_space<vmem>>, vector<1x1x3x16xbf16>
    %603 = vector.shape_cast %602 : vector<1x1x3x16xbf16> to vector<3x16xbf16>
    %c0_870 = arith.constant 0 : index
    %c3_871 = arith.constant 3 : index
    %c0_872 = arith.constant 0 : index
    %c0_873 = arith.constant 0 : index
    %604 = vector.load %arg14[%c0_870, %c3_871, %c0_872, %c0_873] : memref<1x5x5x16xbf16, #tpu.memory_space<vmem>>, vector<1x1x3x16xbf16>
    %605 = vector.shape_cast %604 : vector<1x1x3x16xbf16> to vector<3x16xbf16>
    %c0_874 = arith.constant 0 : index
    %c3_875 = arith.constant 3 : index
    %c1_876 = arith.constant 1 : index
    %c0_877 = arith.constant 0 : index
    %606 = vector.load %arg14[%c0_874, %c3_875, %c1_876, %c0_877] : memref<1x5x5x16xbf16, #tpu.memory_space<vmem>>, vector<1x1x3x16xbf16>
    %607 = vector.shape_cast %606 : vector<1x1x3x16xbf16> to vector<3x16xbf16>
    %c0_878 = arith.constant 0 : index
    %c3_879 = arith.constant 3 : index
    %c2_880 = arith.constant 2 : index
    %c0_881 = arith.constant 0 : index
    %608 = vector.load %arg14[%c0_878, %c3_879, %c2_880, %c0_881] : memref<1x5x5x16xbf16, #tpu.memory_space<vmem>>, vector<1x1x3x16xbf16>
    %609 = vector.shape_cast %608 : vector<1x1x3x16xbf16> to vector<3x16xbf16>
    %610 = tpu.concatenate %593, %595, %597, %599, %601, %603, %605, %607, %609 in 1 : vector<3x16xbf16>, vector<3x16xbf16>, vector<3x16xbf16>, vector<3x16xbf16>, vector<3x16xbf16>, vector<3x16xbf16>, vector<3x16xbf16>, vector<3x16xbf16>, vector<3x16xbf16> -> vector<3x144xbf16>
    %cst_882 = arith.constant dense<0.000000e+00> : vector<3x32xf32>
    %611 = tpu.matmul %610, %2, %cst_882 {dimension_numbers = #tpu.dot_dimension_numbers<[1], [0], [0], [1], [0, 0, 1, 1], [], []>} : vector<3x144xbf16>, vector<144x32xbf16>, vector<3x32xf32> -> vector<3x32xf32>
    %612 = vector.broadcast %6 : vector<1x32xf32> to vector<3x32xf32>
    %613 = arith.addf %611, %612 : vector<3x32xf32>
    %cst_883 = arith.constant 0.000000e+00 : f32
    %614 = vector.broadcast %cst_883 : f32 to vector<3x32xf32>
    %615 = arith.cmpf oge, %613, %614 : vector<3x32xf32>
    %616 = vector.broadcast %10 : f32 to vector<3x32xf32>
    %617 = arith.mulf %616, %613 : vector<3x32xf32>
    %618 = arith.select %615, %613, %617 : vector<3x32xi1>, vector<3x32xf32>
    %619 = arith.truncf %618 : vector<3x32xf32> to vector<3x32xbf16>
    %cst_884 = arith.constant dense<0.000000e+00> : vector<3x5xf32>
    %620 = tpu.matmul %619, %3, %cst_884 {dimension_numbers = #tpu.dot_dimension_numbers<[1], [0], [0], [1], [0, 0, 1, 1], [], []>} : vector<3x32xbf16>, vector<32x5xbf16>, vector<3x5xf32> -> vector<3x5xf32>
    %621 = vector.broadcast %7 : vector<1x5xf32> to vector<3x5xf32>
    %622 = arith.addf %620, %621 : vector<3x5xf32>
    %c0_885 = arith.constant 0 : index
    %c2_886 = arith.constant 2 : index
    %c0_887 = arith.constant 0 : index
    %c0_888 = arith.constant 0 : index
    %623 = vector.load %arg14[%c0_885, %c2_886, %c0_887, %c0_888] : memref<1x5x5x16xbf16, #tpu.memory_space<vmem>>, vector<1x1x3x16xbf16>
    %624 = vector.shape_cast %623 : vector<1x1x3x16xbf16> to vector<3x16xbf16>
    %c0_889 = arith.constant 0 : index
    %c2_890 = arith.constant 2 : index
    %c1_891 = arith.constant 1 : index
    %c0_892 = arith.constant 0 : index
    %625 = vector.load %arg14[%c0_889, %c2_890, %c1_891, %c0_892] : memref<1x5x5x16xbf16, #tpu.memory_space<vmem>>, vector<1x1x3x16xbf16>
    %626 = vector.shape_cast %625 : vector<1x1x3x16xbf16> to vector<3x16xbf16>
    %c0_893 = arith.constant 0 : index
    %c2_894 = arith.constant 2 : index
    %c2_895 = arith.constant 2 : index
    %c0_896 = arith.constant 0 : index
    %627 = vector.load %arg14[%c0_893, %c2_894, %c2_895, %c0_896] : memref<1x5x5x16xbf16, #tpu.memory_space<vmem>>, vector<1x1x3x16xbf16>
    %628 = vector.shape_cast %627 : vector<1x1x3x16xbf16> to vector<3x16xbf16>
    %c0_897 = arith.constant 0 : index
    %c3_898 = arith.constant 3 : index
    %c0_899 = arith.constant 0 : index
    %c0_900 = arith.constant 0 : index
    %629 = vector.load %arg14[%c0_897, %c3_898, %c0_899, %c0_900] : memref<1x5x5x16xbf16, #tpu.memory_space<vmem>>, vector<1x1x3x16xbf16>
    %630 = vector.shape_cast %629 : vector<1x1x3x16xbf16> to vector<3x16xbf16>
    %c0_901 = arith.constant 0 : index
    %c3_902 = arith.constant 3 : index
    %c1_903 = arith.constant 1 : index
    %c0_904 = arith.constant 0 : index
    %631 = vector.load %arg14[%c0_901, %c3_902, %c1_903, %c0_904] : memref<1x5x5x16xbf16, #tpu.memory_space<vmem>>, vector<1x1x3x16xbf16>
    %632 = vector.shape_cast %631 : vector<1x1x3x16xbf16> to vector<3x16xbf16>
    %c0_905 = arith.constant 0 : index
    %c3_906 = arith.constant 3 : index
    %c2_907 = arith.constant 2 : index
    %c0_908 = arith.constant 0 : index
    %633 = vector.load %arg14[%c0_905, %c3_906, %c2_907, %c0_908] : memref<1x5x5x16xbf16, #tpu.memory_space<vmem>>, vector<1x1x3x16xbf16>
    %634 = vector.shape_cast %633 : vector<1x1x3x16xbf16> to vector<3x16xbf16>
    %c0_909 = arith.constant 0 : index
    %c4_910 = arith.constant 4 : index
    %c0_911 = arith.constant 0 : index
    %c0_912 = arith.constant 0 : index
    %635 = vector.load %arg14[%c0_909, %c4_910, %c0_911, %c0_912] : memref<1x5x5x16xbf16, #tpu.memory_space<vmem>>, vector<1x1x3x16xbf16>
    %636 = vector.shape_cast %635 : vector<1x1x3x16xbf16> to vector<3x16xbf16>
    %c0_913 = arith.constant 0 : index
    %c4_914 = arith.constant 4 : index
    %c1_915 = arith.constant 1 : index
    %c0_916 = arith.constant 0 : index
    %637 = vector.load %arg14[%c0_913, %c4_914, %c1_915, %c0_916] : memref<1x5x5x16xbf16, #tpu.memory_space<vmem>>, vector<1x1x3x16xbf16>
    %638 = vector.shape_cast %637 : vector<1x1x3x16xbf16> to vector<3x16xbf16>
    %c0_917 = arith.constant 0 : index
    %c4_918 = arith.constant 4 : index
    %c2_919 = arith.constant 2 : index
    %c0_920 = arith.constant 0 : index
    %639 = vector.load %arg14[%c0_917, %c4_918, %c2_919, %c0_920] : memref<1x5x5x16xbf16, #tpu.memory_space<vmem>>, vector<1x1x3x16xbf16>
    %640 = vector.shape_cast %639 : vector<1x1x3x16xbf16> to vector<3x16xbf16>
    %641 = tpu.concatenate %624, %626, %628, %630, %632, %634, %636, %638, %640 in 1 : vector<3x16xbf16>, vector<3x16xbf16>, vector<3x16xbf16>, vector<3x16xbf16>, vector<3x16xbf16>, vector<3x16xbf16>, vector<3x16xbf16>, vector<3x16xbf16>, vector<3x16xbf16> -> vector<3x144xbf16>
    %cst_921 = arith.constant dense<0.000000e+00> : vector<3x32xf32>
    %642 = tpu.matmul %641, %2, %cst_921 {dimension_numbers = #tpu.dot_dimension_numbers<[1], [0], [0], [1], [0, 0, 1, 1], [], []>} : vector<3x144xbf16>, vector<144x32xbf16>, vector<3x32xf32> -> vector<3x32xf32>
    %643 = vector.broadcast %6 : vector<1x32xf32> to vector<3x32xf32>
    %644 = arith.addf %642, %643 : vector<3x32xf32>
    %cst_922 = arith.constant 0.000000e+00 : f32
    %645 = vector.broadcast %cst_922 : f32 to vector<3x32xf32>
    %646 = arith.cmpf oge, %644, %645 : vector<3x32xf32>
    %647 = vector.broadcast %10 : f32 to vector<3x32xf32>
    %648 = arith.mulf %647, %644 : vector<3x32xf32>
    %649 = arith.select %646, %644, %648 : vector<3x32xi1>, vector<3x32xf32>
    %650 = arith.truncf %649 : vector<3x32xf32> to vector<3x32xbf16>
    %cst_923 = arith.constant dense<0.000000e+00> : vector<3x5xf32>
    %651 = tpu.matmul %650, %3, %cst_923 {dimension_numbers = #tpu.dot_dimension_numbers<[1], [0], [0], [1], [0, 0, 1, 1], [], []>} : vector<3x32xbf16>, vector<32x5xbf16>, vector<3x5xf32> -> vector<3x5xf32>
    %652 = vector.broadcast %7 : vector<1x5xf32> to vector<3x5xf32>
    %653 = arith.addf %651, %652 : vector<3x5xf32>
    %654 = vector.shape_cast %591 : vector<3x5xf32> to vector<1x3x5xf32>
    %655 = vector.shape_cast %622 : vector<3x5xf32> to vector<1x3x5xf32>
    %656 = vector.shape_cast %653 : vector<3x5xf32> to vector<1x3x5xf32>
    %657 = tpu.concatenate %654, %655, %656 in 0 : vector<1x3x5xf32>, vector<1x3x5xf32>, vector<1x3x5xf32> -> vector<3x3x5xf32>
    %658 = arith.negf %657 : vector<3x3x5xf32>
    %659 = math.exp %658 : vector<3x3x5xf32>
    %cst_924 = arith.constant 1.000000e+00 : f32
    %660 = vector.broadcast %cst_924 : f32 to vector<3x3x5xf32>
    %661 = arith.addf %660, %659 : vector<3x3x5xf32>
    %662 = arith.divf %660, %661 : vector<3x3x5xf32>
    %663 = arith.select %13, %662, %657 : vector<3x3x5xi1>, vector<3x3x5xf32>
    %c0_925 = arith.constant 0 : index
    %c0_926 = arith.constant 0 : index
    %c0_927 = arith.constant 0 : index
    %c0_928 = arith.constant 0 : index
    %664 = vector.load %arg11[%c0_925, %c0_926, %c0_927, %c0_928] : memref<1x3x3x5xf32, #tpu.memory_space<vmem>>, vector<1x3x3x5xf32>
    %665 = vector.shape_cast %664 : vector<1x3x3x5xf32> to vector<3x3x5xf32>
    %666 = vector.shape_cast %663 : vector<3x3x5xf32> to vector<1x3x3x5xf32>
    tpu.vector_store %arg11[%c0_925, %c0_926, %c0_927, %c0_928], %666 {strides = array<i32>} : memref<1x3x3x5xf32, #tpu.memory_space<vmem>>, vector<1x3x3x5xf32>,
    return
  }
  func.func @transform_0(%arg0: i32) -> (i32, i32, i32, i32) {
    %c0_i32 = arith.constant 0 : i32
    %c0_i32_0 = arith.constant 0 : i32
    %c0_i32_1 = arith.constant 0 : i32
    %c0_i32_2 = arith.constant 0 : i32
    return %arg0, %c0_i32, %c0_i32_0, %c0_i32_1 : i32, i32, i32, i32
  }
  func.func @transform_1(%arg0: i32) -> (i32, i32) {
    %c0_i32 = arith.constant 0 : i32
    %c0_i32_0 = arith.constant 0 : i32
    %c0_i32_1 = arith.constant 0 : i32
    return %c0_i32, %c0_i32_0 : i32, i32
  }
  func.func @transform_2(%arg0: i32) -> (i32, i32) {
    %c0_i32 = arith.constant 0 : i32
    %c0_i32_0 = arith.constant 0 : i32
    %c0_i32_1 = arith.constant 0 : i32
    return %c0_i32, %c0_i32_0 : i32, i32
  }
  func.func @transform_3(%arg0: i32) -> (i32, i32) {
    %c0_i32 = arith.constant 0 : i32
    %c0_i32_0 = arith.constant 0 : i32
    %c0_i32_1 = arith.constant 0 : i32
    return %c0_i32, %c0_i32_0 : i32, i32
  }
  func.func @transform_4(%arg0: i32) -> (i32, i32) {
    %c0_i32 = arith.constant 0 : i32
    %c0_i32_0 = arith.constant 0 : i32
    %c0_i32_1 = arith.constant 0 : i32
    return %c0_i32, %c0_i32_0 : i32, i32
  }
  func.func @transform_5(%arg0: i32) -> (i32, i32) {
    %c0_i32 = arith.constant 0 : i32
    %c0_i32_0 = arith.constant 0 : i32
    %c0_i32_1 = arith.constant 0 : i32
    return %c0_i32, %c0_i32_0 : i32, i32
  }
  func.func @transform_6(%arg0: i32) -> (i32, i32) {
    %c0_i32 = arith.constant 0 : i32
    %c0_i32_0 = arith.constant 0 : i32
    %c0_i32_1 = arith.constant 0 : i32
    return %c0_i32, %c0_i32_0 : i32, i32
  }
  func.func @transform_7(%arg0: i32) -> (i32, i32) {
    %c0_i32 = arith.constant 0 : i32
    %c0_i32_0 = arith.constant 0 : i32
    %c0_i32_1 = arith.constant 0 : i32
    return %c0_i32, %c0_i32_0 : i32, i32
  }
  func.func @transform_8(%arg0: i32) -> (i32, i32) {
    %c0_i32 = arith.constant 0 : i32
    %c0_i32_0 = arith.constant 0 : i32
    %c0_i32_1 = arith.constant 0 : i32
    return %c0_i32, %c0_i32_0 : i32, i32
  }
  func.func @transform_9(%arg0: i32) -> i32 {
    %c0_i32 = arith.constant 0 : i32
    %c0_i32_0 = arith.constant 0 : i32
    return %c0_i32 : i32
  }
  func.func @transform_10(%arg0: i32) -> (i32, i32, i32, i32) {
    %c0_i32 = arith.constant 0 : i32
    %c0_i32_0 = arith.constant 0 : i32
    %c0_i32_1 = arith.constant 0 : i32
    %c0_i32_2 = arith.constant 0 : i32
    return %arg0, %c0_i32, %c0_i32_0, %c0_i32_1 : i32, i32, i32, i32
  }
}

</mosaic_0001>

<bundles_post_ra>
// kernel: tpu_custom_call.1
= control target key start
LH: loop header
LB: loop body
LE: loop exit
PB: predicated region body
PF: predicated region fallthrough
CT: control target
= control target key end

     0   :  { %15 = vsyncpa [#allocation6], 0  ;;  %s3789_s13 = smov 0   ;;  %s4758_s0 = inlined_call_operand.vmem [shape: bf16[2,16,16,3], index: 0, kind: input, shape index: {}]   ;;  %s4759_s1 = inlined_call_operand.vmem [shape: bf16[27,10], index: 1, kind: input, shape index: {}]   ;;  %s4760_s2 = inlined_call_operand.vmem [shape: f32[1,10], index: 2, kind: input, shape index: {}]   ;;  %s4761_s3 = inlined_call_operand.vmem [shape: bf16[90,16], index: 3, kind: input, shape index: {}]   ;;  %s4762_s4 = inlined_call_operand.vmem [shape: f32[1,16], index: 4, kind: input, shape index: {}]   ;;  %s4763_s5 = inlined_call_operand.vmem [shape: bf16[144,32], index: 5, kind: input, shape index: {}]   ;;  %s4764_s6 = inlined_call_operand.vmem [shape: f32[1,32], index: 6, kind: input, shape index: {}]   ;;  %s4765_s7 = inlined_call_operand.vmem [shape: bf16[32,5], index: 7, kind: input, shape index: {}]   ;;  %s4766_s8 = inlined_call_operand.vmem [shape: f32[1,5], index: 8, kind: input, shape index: {}]   ;;  %s4767_s9 = inlined_call_operand.vmem [shape: f32[3], index: 9, kind: input, shape index: {}]   ;;  %s4768_s10 = inlined_call_operand.vmem [shape: f32[2,3,3,5], index: 10, kind: output, shape index: {}]  }
   0x1 LB: > { %s3015_s14 = sadd.s32 4294967295, %s3708_s13   ;;  %p3017_p0 = scmp.ge.s32.totalorder %s3708_s13, 1  ;;  %s3708_s13 = sphi %s3789_s13, %s21_s13  }
   0x2   : > { %p267_p1 = scmp.lt.s32.totalorder %s3708_s13, 3  ;;  %s303_s17 = sshll.u32 %s4767_s9, 4  ;;  %s304_s17 = int_to_ptr.vmem [resolvable:$true] %s303_s17 }
   0x3   : > { %p3633_p3 = scmp.eq.s32.totalorder %s3015_s14, 0  ;;  %s3710_s18 = smov [#allocation5]  }
   0x4   : > { %p268_p2 = pnand %p3017_p0, %p267_p1 }
   0x6   : > { %p3629_p4 = pneg %p268_p2  ;;  %324 = sbr.rel (%p268_p2) target bundleno = 1301 (0x515), region = 60 }
   0x8   : > { %p3630_p5 = pnand %p3633_p3, %p3629_p4 }
   0xa   : > { %3632 = dma.vmem_to_smem (!%p3630_p5), %s304_s17, 16, %s3710_s18, [#allocation6]  }
   0xb   : > { %3703 = dma.done.wait (%p3633_p3), [#allocation6], 16  }
   0xc   : > { %3705 = vsyncadd (%p3633_p3), [#allocation6], 4294967280 }
   0xd   : > { %331 = sfence }
   0xe   : > { %p364_p6 = scmp.lt.s32.totalorder %s3015_s14, 1  ;;  %s3711_s23 = smov 6   ;;  %vm549_vm0 = vcmask 1044480   ;;  %vm550_vm1 = vcmask 1045504   ;;  %vm510_vm2 = vcmask 23552   ;;  %vm514_vm3 = vcmask 48128  }
   0xf   : > { %s3712_s24 = smov 9   ;;  %s3713_s25 = smov 3   ;;  %vm517_vm4 = vcmask 72704   ;;  %vm523_vm5 = vcmask 121856   ;;  %vm520_vm6 = vcmask 97280   ;;  %vm526_vm7 = vcmask 146432  }
  0x10   : > { %s4774_s14 = smov (!%p364_p6, %s3015_s14), 1  ;;  %s3714_s26 = smov 12   ;;  %vm532_vm8 = vcmask 195584   ;;  %vm529_vm9 = vcmask 171008   ;;  %vm546_vm10 = vcmask 220160   ;;  %vm645_vm11 = vcmask 80896  }
  0x11   : > { %s3241_s19 = sshll.u32 %s4774_s14, 7  ;;  %s3715_s27 = smov 15   ;;  %vm647_vm12 = vcmask 78848   ;;  %vm662_vm13 = vcmask 76800   ;;  %vm663_vm14 = vsmask.f32 3328 }
  0x12   : > { %s3806_s22 = scalar_lea.vmem %s4758_s0, %s3241_s19  ;;  %s3716_s28 = smov 18  }
  0x13   : > { %v3375_v0 = vld [vmem:[%s3806_s22] sm:$0xf0]  ;;  %v3376_v1 = vld [vmem:[%s3806_s22] sm:$0xe]  ;;  %v3378_v6 = vld [vmem:[%s3806_s22 + $0x8] sm:$0xf0] }
  0x14   : > { %v3262_v2 = vld [vmem:[%s3806_s22] sm:$0xff]   ;;  %v3377_v3 = vor.u32 %v3376_v1, %v3375_v0  ;;  %v3379_v7 = vld [vmem:[%s3806_s22 + $0x8] sm:$0xe]  ;;  %v3597_v10 = vld [vmem:[%s3806_s22 + $0x8] sm:$0x70]  ;;  %s3717_s29 = smov 21  }
  0x15   : > { %v446_v4 = vshrl.u32 %v3262_v2, 16  ;;  %v448_v5 = vshll.u32 %v3262_v2, 16  ;;  %v3373_v8 = vld [vmem:[%s3806_s22 + $0x8] sm:$0xff]   ;;  %v3380_v16 = vor.u32 %v3379_v7, %v3378_v6  ;;  %v3389_v17 = vld [vmem:[%s3806_s22 + $0x18] sm:$0xff]   ;;  %v3494_v20 = vld [vmem:[%s3806_s22 + $0x10] sm:$0xf]  }
  0x16   : > { %v3490_v9 = vld [vmem:[%s3806_s22 + $0x8] sm:$0xf]   ;;  %v457_v11 = vrot.slane %v3377_v3, 1  ;;  %v473_v13 = vshll.u32 %v3373_v8, 16  ;;  %v471_v18 = vshrl.u32 %v3373_v8, 16  ;;  %v3388_v22 = vld [vmem:[%s3806_s22 + $0x10] sm:$0xff]  }
  0x17   : > { %v450_v12 = vrot.slane %v448_v5, 1  ;;  %v3816_v14 = vor.u32 %v3597_v10, %v3490_v9  ;;  %v3598_v21 = vld [vmem:[%s3806_s22 + $0x10] sm:$0x70]  ;;  %v482_v23 = vrot.slane %v3380_v16, 1  ;;  %v717_v24 = vshll.u32 %v3389_v17, 16  ;;  %v3390_v49 = vld [vmem:[%s3806_s22 + $0x20] sm:$0xff]  }
  0x18   : > { %458 = vrot.lane.b32.xlu1 %v457_v11, %s3711_s23  ;;  %v475_v19 = vrot.slane %v473_v13, 1  ;;  %v3495_v25 = vor.u32 %v3598_v21, %v3494_v20  ;;  %v692_v27 = vshll.u32 %v3388_v22, 16  ;;  %v715_v28 = vshrl.u32 %v3389_v17, 16  ;;  %v3391_v33 = vld [vmem:[%s3806_s22 + $0x10] sm:$0xf0]  ;;  %v3400_v3 = vld [vmem:[%s3806_s22 + $0x28] sm:$0xff]  }
  0x19   : > { %v451_v15 = vor.u32 %v450_v12, %v446_v4  ;;  %465 = vrot.lane.b32.xlu2 %v3816_v14, %s3712_s24  ;;  %v719_v29 = vrot.slane %v717_v24, 1  ;;  %v690_v30 = vshrl.u32 %v3388_v22, 16  ;;  %v3392_v34 = vld [vmem:[%s3806_s22 + $0x10] sm:$0xe]  ;;  %v3394_v36 = vld [vmem:[%s3806_s22 + $0x18] sm:$0xf0] }
  0x1a   : > { %v476_v26 = vor.u32 %v475_v19, %v471_v18  ;;  %v694_v31 = vrot.slane %v692_v27, 1  ;;  %v3395_v37 = vld [vmem:[%s3806_s22 + $0x18] sm:$0xe]  ;;  %v3393_v38 = vor.u32 %v3392_v34, %v3391_v33  ;;  %v3381_v41 = vld [vmem:[%s3806_s22 + $0x10] sm:$0xf0]  ;;  %v742_v54 = vshll.u32 %v3390_v49, 16 }
  0x1b   : > { %452 = vrot.lane.b32.xlu0 %v451_v15, %s3713_s25  ;;  %v720_v32 = vor.u32 %v719_v29, %v715_v28  ;;  %v3396_v39 = vor.u32 %v3395_v37, %v3394_v36  ;;  %v3382_v42 = vld [vmem:[%s3806_s22 + $0x10] sm:$0xe]  ;;  %v3506_v45 = vld [vmem:[%s3806_s22 + $0x18] sm:$0xf]   ;;  %v3601_v46 = vld [vmem:[%s3806_s22 + $0x18] sm:$0x70] }
  0x1c   : > { %v695_v35 = vor.u32 %v694_v31, %v690_v30  ;;  %v701_v40 = vrot.slane %v3393_v38, 1  ;;  %v3383_v44 = vor.u32 %v3382_v42, %v3381_v41  ;;  %v3843_v48 = vor.u32 %v3601_v46, %v3506_v45  ;;  %v3498_v50 = vld [vmem:[%s3806_s22 + $0x18] sm:$0xf]   ;;  %v3599_v51 = vld [vmem:[%s3806_s22 + $0x18] sm:$0x70]  ;;  %s3718_s30 = smov 24  }
  0x1d   : > { %v726_v43 = vrot.slane %v3396_v39, 1  ;;  %v3510_v52 = vld [vmem:[%s3806_s22 + $0x20] sm:$0xf]   ;;  %v3602_v53 = vld [vmem:[%s3806_s22 + $0x20] sm:$0x70]  ;;  %v3499_v55 = vor.u32 %v3599_v51, %v3498_v50  ;;  %v740_v57 = vshrl.u32 %v3390_v49, 16 }
  0x1e   : > { %v507_v47 = vrot.slane %v3383_v44, 1  ;;  %v3511_v56 = vor.u32 %v3602_v53, %v3510_v52  ;;  %v744_v58 = vrot.slane %v742_v54, 1  ;;  %v3397_v60 = vld [vmem:[%s3806_s22 + $0x20] sm:$0xf0]  ;;  %v3398_v61 = vld [vmem:[%s3806_s22 + $0x20] sm:$0xe] }
  0x1f   : > { %v3399_v62 = vor.u32 %v3398_v61, %v3397_v60  ;;  %v3385_v63 = vld [vmem:[%s3806_s22 + $0x18] sm:$0xf0]  ;;  %v3386_v0 = vld [vmem:[%s3806_s22 + $0x18] sm:$0xe]  ;;  %v815_v5 = vshll.u32 %v3400_v3, 16  ;;  %v813_v6 = vshrl.u32 %v3400_v3, 16 }
  0x20   : > { %577 = vrot.lane.b32.xlu1 %v482_v23, %s3711_s23  ;;  %v745_v59 = vor.u32 %v744_v58, %v740_v57  ;;  %v3387_v2 = vor.u32 %v3386_v0, %v3385_v63  ;;  %v3514_v8 = vld [vmem:[%s3806_s22 + $0x28] sm:$0xf]   ;;  %v3603_v9 = vld [vmem:[%s3806_s22 + $0x28] sm:$0x70]  ;;  %v3407_v17 = vld [vmem:[%s3806_s22 + $0x20] sm:$0xf0] }
  0x21   : > { %579 = vrot.lane.b32.xlu2 %v3495_v25, %s3712_s24  ;;  %v751_v1 = vrot.slane %v3399_v62, 1  ;;  %v817_v7 = vrot.slane %v815_v5, 1  ;;  %v3401_v10 = vld [vmem:[%s3806_s22 + $0x28] sm:$0xf0]  ;;  %v3402_v11 = vld [vmem:[%s3806_s22 + $0x28] sm:$0xe]  ;;  %v3515_v13 = vor.u32 %v3603_v9, %v3514_v8 }
  0x22   : > { %v607_v4 = vrot.slane %v3387_v2, 1  ;;  %v3403_v15 = vor.u32 %v3402_v11, %v3401_v10  ;;  %v3408_v18 = vld [vmem:[%s3806_s22 + $0x20] sm:$0xe]  ;;  %v3410_v19 = vld [vmem:[%s3806_s22 + $0x28] sm:$0xf0]  ;;  %v3421_v34 = vld [vmem:[%s3806_s22 + $0x38] sm:$0xff]  }
  0x23   : > { %575 = vrot.lane.b32.xlu0 %v476_v26, %s3713_s25  ;;  %v818_v12 = vor.u32 %v817_v7, %v813_v6  ;;  %v3411_v20 = vld [vmem:[%s3806_s22 + $0x28] sm:$0xe]  ;;  %v3409_v21 = vor.u32 %v3408_v18, %v3407_v17  ;;  %v3526_v27 = vld [vmem:[%s3806_s22 + $0x30] sm:$0xf]   ;;  %v3606_v28 = vld [vmem:[%s3806_s22 + $0x30] sm:$0x70] }
  0x24   : > { %v824_v16 = vrot.slane %v3403_v15, 1  ;;  %v3412_v22 = vor.u32 %v3411_v20, %v3410_v19  ;;  %v3522_v31 = vld [vmem:[%s3806_s22 + $0x28] sm:$0xf]   ;;  %v1133_v38 = vshll.u32 %v3421_v34, 16  ;;  %v1131_v39 = vshrl.u32 %v3421_v34, 16  ;;  %v3422_v5 = vld [vmem:[%s3806_s22 + $0x40] sm:$0xff]  }
  0x25   : > { %v909_v24 = vrot.slane %v3409_v21, 1  ;;  %v3426_v42 = vld [vmem:[%s3806_s22 + $0x38] sm:$0xf0]  ;;  %v3423_v45 = vld [vmem:[%s3806_s22 + $0x30] sm:$0xf0]  ;;  %v1158_v9 = vshll.u32 %v3422_v5, 16 }
  0x26   : > { %v3424_v46 = vld [vmem:[%s3806_s22 + $0x30] sm:$0xe]  ;;  %v3413_v53 = vld [vmem:[%s3806_s22 + $0x30] sm:$0xf0]  ;;  %v3610_v60 = vld [vmem:[%s3806_s22 + $0x40] sm:$0x70] }
  0x27   : > { %v3425_v49 = vor.u32 %v3424_v46, %v3423_v45  ;;  %v3414_v54 = vld [vmem:[%s3806_s22 + $0x30] sm:$0xe]  ;;  %v3530_v2 = vld [vmem:[%s3806_s22 + $0x38] sm:$0xf]   ;;  %v3607_v3 = vld [vmem:[%s3806_s22 + $0x38] sm:$0x70] }
  0x28   : > { %792 = vrot.lane.b32.xlu1 %v720_v32, %s3713_s25  ;;  %v3415_v58 = vor.u32 %v3414_v54, %v3413_v53  ;;  %v3531_v8 = vor.u32 %v3607_v3, %v3530_v2  ;;  %v1156_v11 = vshrl.u32 %v3422_v5, 16  ;;  %v3430_v17 = vld [vmem:[%s3806_s22 + $0x40] sm:$0xe]  ;;  %v3041_v20 = vld [vmem:[%s4759_s1 + $0x8] sm:$0xf]  ;;  %s417_s19 = sld [smem:[#allocation5]] }
  0x29   : > { %477 = vrot.lane.b32.xlu2 %v476_v26, %s3714_s26  ;;  %v1117_v52 = vrot.slane %v3425_v49, 1  ;;  %v3243_v21 = vld [vmem:[%s4759_s1 + $0x8] sm:$0x30]  ;;  %v3988_v34 = vld [vmem:[%s4759_s1] sm:$0xff]  ;;  %s3730_s16 = smov 48   ;;  %s3731_s17 = smov 64  }
  0x2a   : > { %v3442_v5 = vld [vmem:[%s3806_s22 + $0x48] sm:$0xf0]  ;;  %s3732_s18 = smov 96  }
  0x2b   : > { %696 = vrot.lane.b32.xlu0 %v695_v35, %s3713_s25 }
  0x30   : > { %702 = vrot.lane.b32.xlu1 %v701_v40, %s3711_s23  ;;  %v1135_v40 = vrot.slane %v1133_v38, 1 }
  0x31   : > { %794 = vrot.lane.b32.xlu2 %v726_v43, %s3711_s23 }
  0x32   : > { %v1136_v44 = vor.u32 %v1135_v40, %v1131_v39  ;;  %v3546_v39 = vld [vmem:[%s3806_s22 + $0x48] sm:$0xf]   ;;  %v3611_v40 = vld [vmem:[%s3806_s22 + $0x48] sm:$0x70] }
  0x33   : > { %581 = vrot.lane.b32.xlu0 %v695_v35, %s3714_s26  ;;  %v3547_v45 = vor.u32 %v3611_v40, %v3546_v39  ;;  %v3600_v39 = vld [vmem:[%s3806_s22 + $0x10] sm:$0x70] }
  0x38   : > { %583 = vrot.lane.b32.xlu1 %v507_v47, %s3715_s27 }
  0x39   : > { %709 = vrot.lane.b32.xlu2 %v3843_v48, %s3712_s24 }
  0x3b   : > { %483 = vrot.lane.b32.xlu0 %v482_v23, %s3715_s27  ;;  %v3420_v23 = vld [vmem:[%s3806_s22 + $0x30] sm:$0xff]  }
  0x3c   : > { %v1108_v26 = vshll.u32 %v3420_v23, 16  ;;  %v1106_v29 = vshrl.u32 %v3420_v23, 16 }
  0x3e   : > { %v1110_v30 = vrot.slane %v1108_v26, 1 }
  0x40   : > { %490 = vrot.lane.b32.xlu1 %v3495_v25, %s3716_s28  ;;  %v934_v25 = vrot.slane %v3412_v22, 1  ;;  %v1111_v36 = vor.u32 %v1110_v30, %v1106_v29  ;;  %v3042_v22 = vor.u32 %v3243_v21, %v3041_v20 }
  0x41   : > { %590 = vrot.lane.b32.xlu2 %v3499_v55, %s3716_s28  ;;  %v3538_v55 = vld [vmem:[%s3806_s22 + $0x38] sm:$0xf]  }
  0x43   : > { %796 = vrot.lane.b32.xlu0 %v3511_v56, %s3712_s24 }
  0x48   : > { %798 = vrot.lane.b32.xlu1 %v745_v59, %s3714_s26 }
  0x49   : > { %502 = vrot.lane.b32.xlu2 %v695_v35, %s3717_s29  ;;  %v3527_v35 = vor.u32 %v3606_v28, %v3526_v27 }
  0x4b   : > { %721 = vrot.lane.b32.xlu0 %v720_v32, %s3714_s26 }
  0x50   : > { %727 = vrot.lane.b32.xlu1 %v726_v43, %s3715_s27  ;;  %v3427_v43 = vld [vmem:[%s3806_s22 + $0x38] sm:$0xe] }
  0x51   : > { %800 = vrot.lane.b32.xlu2 %v751_v1, %s3715_s27 }
  0x53   : > { %602 = vrot.lane.b32.xlu0 %v720_v32, %s3717_s29  ;;  %v3605_v32 = vld [vmem:[%s3806_s22 + $0x28] sm:$0x70] }
  0x54   : > { %v3896_v37 = vor.u32 %v3605_v32, %v3522_v31  ;;  %v3417_v31 = vld [vmem:[%s3806_s22 + $0x38] sm:$0xf0]  ;;  %v3418_v32 = vld [vmem:[%s3806_s22 + $0x38] sm:$0xe] }
  0x55   : > { %v3419_v38 = vor.u32 %v3418_v32, %v3417_v31 }
  0x57   : > { %v1032_v46 = vrot.slane %v3419_v38, 1 }
  0x58   : > { %608 = vrot.lane.b32.xlu1 %v607_v4, %s3718_s30 }
  0x59   : > { %734 = vrot.lane.b32.xlu2 %v3511_v56, %s3716_s28  ;;  %v3609_v56 = vld [vmem:[%s3806_s22 + $0x38] sm:$0x70] }
  0x5a   : > { %v3931_v63 = vor.u32 %v3609_v56, %v3538_v55  ;;  %v3486_v55 = vld [vmem:[%s3806_s22] sm:$0xf]   ;;  %v3596_v56 = vld [vmem:[%s3806_s22] sm:$0x70] }
  0x5b   : > { %508 = vrot.lane.b32.xlu0 %v507_v47, %s3718_s30  ;;  %v3428_v47 = vor.u32 %v3427_v43, %v3426_v42 }
  0x5d   : > { %v3913_v51 = vrot.slane %v3428_v47, 1 }
  0x60   : > { %746 = vrot.lane.b32.xlu1 %v745_v59, %s3717_s29 }
  0x61   : > { %819 = vrot.lane.b32.xlu2 %v818_v12, %s3717_s29 }
  0x63   : > { %807 = vrot.lane.b32.xlu0 %v3515_v13, %s3716_s28 }
  0x68   : > { %825 = vrot.lane.b32.xlu1 %v824_v16, %s3718_s30  ;;  %v3429_v16 = vld [vmem:[%s3806_s22 + $0x40] sm:$0xf0] }
  0x69   : > { %904 = vrot.lane.b32.xlu2 %v745_v59, %s3713_s25  ;;  %v3542_v59 = vld [vmem:[%s3806_s22 + $0x40] sm:$0xf]   ;;  %v3431_v19 = vor.u32 %v3430_v17, %v3429_v16  ;;  %v3439_v16 = vld [vmem:[%s3806_s22 + $0x40] sm:$0xf0] }
  0x6a   : > { %v3933_v0 = vor.u32 %v3610_v60, %v3542_v59  ;;  %v3434_v59 = vld [vmem:[%s3806_s22 + $0x48] sm:$0xe]  ;;  %v3487_v60 = vor.u32 %v3596_v56, %v3486_v55  ;;  %v3440_v17 = vld [vmem:[%s3806_s22 + $0x40] sm:$0xe] }
  0x6b   : > { %752 = vrot.lane.b32.xlu0 %v751_v1, %s3718_s30  ;;  %v959_v1 = vrot.slane %v3415_v58, 1  ;;  %v1167_v29 = vrot.slane %v3431_v19, 1  ;;  %v3433_v58 = vld [vmem:[%s3806_s22 + $0x48] sm:$0xf0] }
  0x70   : > { %910 = vrot.lane.b32.xlu1 %v909_v24, %s3711_s23  ;;  %v3719_v24 = vmov 65535  }
  0x71   : > { %1002 = vrot.lane.b32.xlu2 %v934_v25, %s3711_s23 }
  0x73   : > { %1000 = vrot.lane.b32.xlu0 %v818_v12, %s3713_s25  ;;  %v3893_v33 = vpop.permute.xlu2 %465 }
  0x78   : > { %1004 = vrot.lane.b32.xlu1 %v3527_v35, %s3712_s24 }
  0x79   : > { %1112 = vrot.lane.b32.xlu2 %v1111_v36, %s3713_s25 }
  0x7b   : > { %917 = vrot.lane.b32.xlu0 %v3896_v37, %s3712_s24  ;;  %v3902_v41 = vpop.permute.xlu2 %579 }
  0x80   : > { %929 = vrot.lane.b32.xlu1 %v818_v12, %s3714_s26  ;;  %v1160_v12 = vrot.slane %v1158_v9, 1 }
  0x81   : > { %1006 = vrot.lane.b32.xlu2 %v1111_v36, %s3714_s26 }
  0x82   : > { %v3960_v18 = vor.u32 %v1160_v12, %v1156_v11 }
  0x83   : > { %1208 = vrot.lane.b32.xlu0 %v1136_v44, %s3713_s25  ;;  %v3911_v50 = vpop.permute.xlu2 %477 }
  0x88   : > { %1210 = vrot.lane.b32.xlu1 %v3913_v51, %s3711_s23 }
  0x89   : > { %935 = vrot.lane.b32.xlu2 %v934_v25, %s3715_s27  ;;  %v551_v25 = vsel %vm549_vm0, 4294967295, %v3719_v24 }
  0x8a   : > { %v3922_v57 = vpop.permute.xlu1 %458  ;;  %v552_v27 = vsel %vm550_vm1, %v551_v25, 0  ;;  %vm4388_vm1 = vmand %vm662_vm13, %vm663_vm14  ;;  %vm2042_vm14 = vcmask 736256  }
  0x8b   : > { %1118 = vrot.lane.b32.xlu0 %v1117_v52, %s3711_s23  ;;  %v3927_v61 = vpop.permute.xlu2 %794  ;;  %v3979_v30 = vand.u32 %v3042_v22, %v552_v27  ;;  %v3613_v22 = vld [vmem:[%s3806_s22 + $0x48] sm:$0x70]  ;;  %v3438_v27 = vld [vmem:[%s3806_s22 + $0x50] sm:$0xff]  }
  0x8d   : > { %v3929_v62 = vpop.permute.xlu0 %452  ;;  %635 = vmatpush.bf16.msra.mxu1 %v3979_v30  ;;  %562 = vmatpush.bf16.msra.mxu0 %v3979_v30 }
  0x8e   : > { %852 = vmatpush.bf16.msra.mxu3 %v3979_v30  ;;  %779 = vmatpush.bf16.msra.mxu2 %v3979_v30  ;;  %v513_v9 = vsel %vm510_vm2, %v3487_v60, %v3929_v62 }
  0x8f   : > { %v516_v20 = vsel %vm514_vm3, %v513_v9, %v3922_v57 }
  0x90   : > { %1125 = vrot.lane.b32.xlu1 %v3931_v63, %s3712_s24  ;;  %v519_v57 = vsel %vm517_vm4, %v516_v20, %v3893_v33 }
  0x91   : > { %1212 = vrot.lane.b32.xlu2 %v3933_v0, %s3712_s24  ;;  %636 = vmatpush.bf16.msra.mxu1 %v3988_v34  ;;  %v522_v33 = vsel %vm520_vm6, %v519_v57, %v3911_v50  ;;  %v3502_v50 = vld [vmem:[%s3806_s22 + $0x10] sm:$0xf]  }
  0x92   : > { %v3941_v4 = vpop.permute.xlu1 %577  ;;  %563 = vmatpush.bf16.msra.mxu0 %v3988_v34  ;;  %853 = vmatpush.bf16.msra.mxu3 %v3988_v34 }
  0x93   : > { %1008 = vrot.lane.b32.xlu0 %v959_v1, %s3715_s27  ;;  %v3945_v6 = vpop.permute.xlu2 %709  ;;  %780 = vmatpush.bf16.msra.mxu2 %v3988_v34 }
  0x95   : > { %v3947_v7 = vpop.permute.xlu0 %575  ;;  %1060 = vmatpush.bf16.msrb.mxu1 %v3979_v30 }
  0x96   : > { %987 = vmatpush.bf16.msrb.mxu0 %v3979_v30  ;;  %1268 = vmatpush.bf16.msrb.mxu3 %v3979_v30  ;;  %v612_v11 = vsel %vm510_vm2, %v3816_v14, %v3947_v7  ;;  %v3441_v14 = vor.u32 %v3440_v17, %v3439_v16  ;;  %v3554_v7 = vld [vmem:[%s3806_s22 + $0x48] sm:$0xf]  }
  0x97   : > { %1195 = vmatpush.bf16.msrb.mxu2 %v3979_v30  ;;  %v614_v21 = vsel %vm514_vm3, %v612_v11, %v3941_v4  ;;  %v4075_v31 = vor.u32 %v3613_v22, %v3554_v7  ;;  %v3562_v7 = vld [vmem:[%s3806_s22 + $0x58] sm:$0xf]  }
  0x98   : > { %1015 = vrot.lane.b32.xlu1 %v3531_v8, %s3716_s28  ;;  %v3443_v8 = vld [vmem:[%s3806_s22 + $0x48] sm:$0xe]  ;;  %v616_v4 = vsel %vm517_vm4, %v614_v21, %v3902_v41  ;;  %v1366_v41 = vshll.u32 %v3438_v27, 16 }
  0x99   : > { %1137 = vrot.lane.b32.xlu2 %v1136_v44, %s3714_s26  ;;  %1061 = vmatpush.bf16.msrb.mxu1 %v3988_v34  ;;  %v3444_v19 = vor.u32 %v3443_v8, %v3442_v5 }
  0x9a   : > { %v3951_v10 = vpop.permute.xlu1 %792  ;;  %988 = vmatpush.bf16.msrb.mxu0 %v3988_v34  ;;  %1269 = vmatpush.bf16.msrb.mxu3 %v3988_v34 }
  0x9b   : > { %942 = vrot.lane.b32.xlu0 %v3527_v35, %s3716_s28  ;;  %v3954_v13 = vpop.permute.xlu2 %590  ;;  %v3432_v35 = vld [vmem:[%s3806_s22 + $0x48] sm:$0xff]   ;;  %1196 = vmatpush.bf16.msrb.mxu2 %v3988_v34  ;;  %v4070_v25 = vrot.slane %v3444_v19, 1  ;;  %v829_v60 = vsel %vm510_vm2, %v3843_v48, %v3951_v10 }
  0x9c   : > { %v1229_v47 = vshrl.u32 %v3432_v35, 16  ;;  %v831_v9 = vsel %vm514_vm3, %v829_v60, %v3927_v61  ;;  %v3617_v60 = vld [vmem:[%s3806_s22 + $0x58] sm:$0x70] }
  0x9d   : > { %v3956_v15 = vpop.permute.xlu0 %696 }
  0xa0   : > { %954 = vrot.lane.b32.xlu1 %v1111_v36, %s3717_s29 }
  0xa1   : > { %1027 = vrot.lane.b32.xlu2 %v1136_v44, %s3717_s29  ;;  %v1231_v44 = vshll.u32 %v3432_v35, 16  ;;  %v1325_v35 = vrot.slane %v3441_v14, 1 }
  0xa2   : > { %v3970_v23 = vpop.permute.xlu1 %702 }
  0xa3   : > { %1214 = vrot.lane.b32.xlu0 %v3960_v18, %s3714_s26  ;;  %v3975_v26 = vpop.permute.xlu2 %502  ;;  %v1233_v49 = vrot.slane %v1231_v44, 1 }
  0xa5   : > { %v3977_v28 = vpop.permute.xlu0 %581  ;;  %v4025_v54 = vor.u32 %v1233_v49, %v1229_v47  ;;  %v1364_v47 = vshrl.u32 %v3438_v27, 16  ;;  %v1368_v49 = vrot.slane %v1366_v41, 1 }
  0xa7   : > { %v1369_v8 = vor.u32 %v1368_v49, %v1364_v47 }
  0xa8   : > { %1216 = vrot.lane.b32.xlu1 %v1167_v29, %s3715_s27 }
  0xa9   : > { %960 = vrot.lane.b32.xlu2 %v959_v1, %s3718_s30  ;;  %v3435_v1 = vor.u32 %v3434_v59, %v3433_v58  ;;  %v3445_v58 = vld [vmem:[%s3806_s22 + $0x50] sm:$0xf0]  ;;  %v3446_v59 = vld [vmem:[%s3806_s22 + $0x50] sm:$0xe] }
  0xaa   : > { %v3995_v36 = vpop.permute.xlu1 %583 }
  0xab   : > { %1143 = vrot.lane.b32.xlu0 %v3913_v51, %s3715_s27  ;;  %v4002_v42 = vpop.permute.xlu2 %800  ;;  %v1240_v12 = vrot.slane %v3435_v1, 1  ;;  %v3503_v1 = vor.u32 %v3600_v39, %v3502_v50  ;;  %v3456_v50 = vld [vmem:[%s3806_s22 + $0x50] sm:$0xe] }
  0xad   : > { %v4006_v43 = vpop.permute.xlu0 %483  ;;  %v756_v48 = vsel %vm510_vm2, %v3503_v1, %v3956_v15  ;;  %v3453_v15 = vld [vmem:[%s3806_s22 + $0x58] sm:$0xff]   ;;  %v3454_v1 = vld [vmem:[%s3806_s22 + $0x60] sm:$0xff]  }
  0xae   : > { %v525_v38 = vsel %vm523_vm5, %v522_v33, %v4006_v43  ;;  %v1549_v20 = vshll.u32 %v3453_v15, 16  ;;  %v1547_v57 = vshrl.u32 %v3453_v15, 16 }
  0xb0   : > { %1150 = vrot.lane.b32.xlu1 %v3933_v0, %s3716_s28 }
  0xb1   : > { %1223 = vrot.lane.b32.xlu2 %v3547_v45, %s3716_s28  ;;  %v3558_v45 = vld [vmem:[%s3806_s22 + $0x50] sm:$0xf]  }
  0xb2   : > { %v491_v51 = vpop.permute.xlu1 %490 }
  0xb3   : > { %1033 = vrot.lane.b32.xlu0 %v1032_v46, %s3718_s30  ;;  %v4020_v52 = vpop.permute.xlu2 %734 }
  0xb5   : > { %v4023_v53 = vpop.permute.xlu0 %796 }
  0xb6   : > { %v833_v10 = vsel %vm517_vm4, %v831_v9, %v4023_v53 }
  0xb8   : > { %1235 = vrot.lane.b32.xlu1 %v4025_v54, %s3717_s29 }
  0xb9   : > { %1168 = vrot.lane.b32.xlu2 %v1167_v29, %s3718_s30  ;;  %v618_v29 = vsel %vm520_vm6, %v616_v4, %v3977_v28  ;;  %v1551_v4 = vrot.slane %v1549_v20, 1  ;;  %v3619_v20 = vld [vmem:[%s3806_s22 + $0x68] sm:$0x70] }
  0xba   : > { %v4034_v0 = vpop.permute.xlu1 %798  ;;  %v620_v32 = vsel %vm523_vm5, %v618_v29, %v3995_v36  ;;  %v528_v36 = vsel %vm526_vm7, %v525_v38, %v491_v51  ;;  %v3449_v29 = vld [vmem:[%s3806_s22 + $0x58] sm:$0xf0] }
  0xbb   : > { %1162 = vrot.lane.b32.xlu0 %v3960_v18, %s3717_s29  ;;  %v4038_v2 = vpop.permute.xlu2 %819  ;;  %v622_v28 = vsel %vm526_vm7, %v620_v32, %v3954_v13  ;;  %v3614_v13 = vld [vmem:[%s3806_s22 + $0x50] sm:$0x70]  ;;  %v531_v51 = vsel %vm529_vm9, %v528_v36, %v3975_v26  ;;  %v3447_v26 = vor.u32 %v3446_v59, %v3445_v58  ;;  %v1552_v32 = vor.u32 %v1551_v4, %v1547_v57  ;;  %v3570_v59 = vld [vmem:[%s3806_s22 + $0x58] sm:$0xf]  }
  0xbc   : > { %v3559_v5 = vor.u32 %v3614_v13, %v3558_v45  ;;  %v3455_v36 = vld [vmem:[%s3806_s22 + $0x50] sm:$0xf0]  ;;  %v4194_v9 = vor.u32 %v3617_v60, %v3570_v59  ;;  %v3474_v60 = vld [vmem:[%s3806_s22 + $0x68] sm:$0xf0] }
  0xbd   : > { %v4040_v3 = vpop.permute.xlu0 %721  ;;  %v1375_v17 = vrot.slane %v3447_v26, 1  ;;  %v3457_v39 = vor.u32 %v3456_v50, %v3455_v36 }
  0xbf   : > { %v1533_v49 = vrot.slane %v3457_v39, 1 }
  0xc0   : > { %1320 = vrot.lane.b32.xlu1 %v3960_v18, %s3713_s25 }
  0xc1   : > { %1416 = vrot.lane.b32.xlu2 %v4025_v54, %s3713_s25 }
  0xc2   : > { %v4059_v62 = vpop.permute.xlu1 %727 }
  0xc3   : > { %1241 = vrot.lane.b32.xlu0 %v1240_v12, %s3718_s30  ;;  %v4064_v18 = vpop.permute.xlu2 %904  ;;  %v835_v12 = vsel %vm520_vm6, %v833_v10, %v4034_v0  ;;  %v3461_v10 = vld [vmem:[%s3806_s22 + $0x60] sm:$0xf0] }
  0xc4   : > { %v837_v19 = vsel %vm523_vm5, %v835_v12, %v4002_v42  ;;  %v1572_v12 = vshrl.u32 %v3454_v1, 16 }
  0xc5   : > { %v603_v24 = vpop.permute.xlu0 %602 }
  0xc6   : > { %v624_v40 = vsel %vm529_vm9, %v622_v28, %v603_v24 }
  0xc8   : > { %1418 = vrot.lane.b32.xlu1 %v4070_v25, %s3711_s23 }
  0xc9   : > { %1333 = vrot.lane.b32.xlu2 %v4075_v31, %s3712_s24 }
  0xca   : > { %v609_v43 = vpop.permute.xlu1 %608 }
  0xcb   : > { %1326 = vrot.lane.b32.xlu0 %v1325_v35, %s3711_s23  ;;  %v626_v44 = vsel %vm532_vm8, %v624_v40, %v609_v43  ;;  %v4097_v46 = vpop.permute.xlu2 %1002  ;;  %v3458_v40 = vld [vmem:[%s3806_s22 + $0x58] sm:$0xf0]  ;;  %v3459_v43 = vld [vmem:[%s3806_s22 + $0x58] sm:$0xe] }
  0xcc   : > { %3048 = vmatmul.msk.bf16.vlgmr.msra.gmra.mxu1 %vm546_vm10, %v626_v44  ;;  %v3460_v13 = vor.u32 %v3459_v43, %v3458_v40  ;;  %v3471_v43 = vld [vmem:[%s3806_s22 + $0x60] sm:$0xf0] }
  0xcd   : > { %v509_v55 = vpop.permute.xlu0 %508  ;;  %1476 = vmatpush.bf16.msra.mxu1 %v3979_v30 }
  0xce   : > { %v534_v56 = vsel %vm532_vm8, %v531_v51, %v509_v55  ;;  %v1558_v51 = vrot.slane %v3460_v13, 1  ;;  %v3574_v55 = vld [vmem:[%s3806_s22 + $0x60] sm:$0xf]  }
  0xcf   : > { %3043 = vmatmul.msk.bf16.vlgmr.msra.gmra.mxu0 %vm546_vm10, %v534_v56  ;;  %v3618_v56 = vld [vmem:[%s3806_s22 + $0x60] sm:$0x70]  ;;  %v3472_v13 = vld [vmem:[%s3806_s22 + $0x60] sm:$0xe] }
  0xd0   : > { %1403 = vmatpush.bf16.msra.mxu0 %v3979_v30  ;;  %1345 = vrot.lane.b32.xlu1 %v4025_v54, %s3714_s26  ;;  %v758_v54 = vsel %vm514_vm3, %v756_v48, %v3970_v23  ;;  %v3575_v26 = vor.u32 %v3618_v56, %v3574_v55  ;;  %v1574_v48 = vshll.u32 %v3454_v1, 16  ;;  %v3475_v1 = vld [vmem:[%s3806_s22 + $0x68] sm:$0xe] }
  0xd1   : > { %1422 = vrot.lane.b32.xlu2 %v1369_v8, %s3714_s26  ;;  %1477 = vmatpush.bf16.msra.mxu1 %v3988_v34  ;;  %v760_v53 = vsel %vm517_vm4, %v758_v54, %v3945_v6 }
  0xd2   : > { %v747_v11 = vpop.permute.xlu1 %746  ;;  %v762_v23 = vsel %vm520_vm6, %v760_v53, %v4040_v3 }
  0xd3   : > { %1420 = vrot.lane.b32.xlu0 %v3559_v5, %s3712_s24  ;;  %v4126_v61 = vpop.permute.xlu2 %1112  ;;  %v764_v21 = vsel %vm523_vm5, %v762_v23, %v4059_v62  ;;  %v3615_v62 = vld [vmem:[%s3806_s22 + $0x58] sm:$0x70] }
  0xd4   : > { %1404 = vmatpush.bf16.msra.mxu0 %v3988_v34  ;;  %v766_v42 = vsel %vm526_vm7, %v764_v21, %v4020_v52  ;;  %v3563_v52 = vor.u32 %v3615_v62, %v3562_v7  ;;  %v3518_v21 = vld [vmem:[%s3806_s22 + $0x20] sm:$0xf]  }
  0xd5   : > { %v808_v16 = vpop.permute.xlu0 %807  ;;  %v768_v24 = vsel %vm529_vm9, %v766_v42, %v747_v11  ;;  %v3462_v11 = vld [vmem:[%s3806_s22 + $0x60] sm:$0xe]  ;;  %v3464_v42 = vld [vmem:[%s3806_s22 + $0x68] sm:$0xff]  }
  0xd6   : > { %v839_v0 = vsel %vm526_vm7, %v837_v19, %v808_v16  ;;  %v1576_v16 = vrot.slane %v1574_v48, 1  ;;  %v3463_v15 = vor.u32 %v3462_v11, %v3461_v10  ;;  %v1647_v4 = vshll.u32 %v3464_v42, 16  ;;  %v3586_v48 = vld [vmem:[%s3806_s22 + $0x68] sm:$0xf]   ;;  %v3621_v10 = vld [vmem:[%s3806_s22 + $0x68] sm:$0x70] }
  0xd7   : > { %v841_v6 = vsel %vm529_vm9, %v839_v0, %v4038_v2  ;;  %v3450_v2 = vld [vmem:[%s3806_s22 + $0x58] sm:$0xe]  ;;  %v3578_v0 = vld [vmem:[%s3806_s22 + $0x68] sm:$0xf]   ;;  %v3470_v11 = vld [vmem:[%s3806_s22 + $0x70] sm:$0xff]  }
  0xd8   : > { %1424 = vrot.lane.b32.xlu1 %v1375_v17, %s3715_s27  ;;  %v3451_v35 = vor.u32 %v3450_v2, %v3449_v29  ;;  %v1577_v19 = vor.u32 %v1576_v16, %v1572_v12  ;;  %v1583_v23 = vrot.slane %v3463_v15, 1  ;;  %v3579_v62 = vor.u32 %v3619_v20, %v3578_v0 }
  0xd9   : > { %1358 = vrot.lane.b32.xlu2 %v3559_v5, %s3716_s28  ;;  %v3476_v16 = vor.u32 %v3475_v1, %v3474_v60  ;;  %v4273_v0 = vor.u32 %v3621_v10, %v3586_v48  ;;  %v1782_v20 = vshll.u32 %v3470_v11, 16 }
  0xda   : > { %v826_v14 = vpop.permute.xlu1 %825  ;;  %v1448_v28 = vrot.slane %v3451_v35, 1 }
  0xdb   : > { %1351 = vrot.lane.b32.xlu0 %v4070_v25, %s3715_s27  ;;  %v843_v3 = vsel %vm532_vm8, %v841_v6, %v826_v14  ;;  %v4150_v22 = vpop.permute.xlu2 %1006  ;;  %v3604_v14 = vld [vmem:[%s3806_s22 + $0x20] sm:$0x70] }
  0xdc   : > { %3066 = vmatmul.msk.bf16.vlgmr.msra.gmra.mxu3 %vm546_vm10, %v843_v3  ;;  %v3519_v57 = vor.u32 %v3604_v14, %v3518_v21  ;;  %v3590_v21 = vld [vmem:[%s3806_s22 + $0x70] sm:$0xf]   ;;  %v3622_v14 = vld [vmem:[%s3806_s22 + $0x70] sm:$0x70] }
  0xdd   : > { %v753_v27 = vpop.permute.xlu0 %752  ;;  %1684 = vmatpush.bf16.msra.mxu3 %v3979_v30 }
  0xde   : > { %v770_v25 = vsel %vm532_vm8, %v768_v24, %v753_v27  ;;  %v3465_v24 = vld [vmem:[%s3806_s22 + $0x68] sm:$0xf0]  ;;  %v3466_v27 = vld [vmem:[%s3806_s22 + $0x68] sm:$0xe] }
  0xdf   : > { %3061 = vmatmul.msk.bf16.vlgmr.msra.gmra.mxu2 %vm546_vm10, %v770_v25  ;;  %v964_v25 = vsel %vm510_vm2, %v3519_v57, %v4064_v18  ;;  %v3467_v29 = vor.u32 %v3466_v27, %v3465_v24  ;;  %v3591_v57 = vor.u32 %v3622_v14, %v3590_v21 }
  0xe0   : > { %1611 = vmatpush.bf16.msra.mxu2 %v3979_v30  ;;  %1370 = vrot.lane.b32.xlu1 %v1369_v8, %s3717_s29 }
  0xe1   : > { %1443 = vrot.lane.b32.xlu2 %v1552_v32, %s3717_s29  ;;  %1685 = vmatpush.bf16.msra.mxu3 %v3988_v34  ;;  %v1656_v39 = vrot.slane %v3467_v29, 1 }
  0xe2   : > { %v4163_v33 = vpop.permute.xlu1 %910 }
  0xe3   : > { %1431 = vrot.lane.b32.xlu0 %v3563_v52, %s3716_s28  ;;  %v4166_v41 = vpop.permute.xlu2 %935  ;;  %v1645_v52 = vshrl.u32 %v3464_v42, 16  ;;  %v3534_v42 = vld [vmem:[%s3806_s22 + $0x30] sm:$0xf]  }
  0xe4   : > { %1612 = vmatpush.bf16.msra.mxu2 %v3988_v34 }
  0xe5   : > { %v4169_v38 = vpop.permute.xlu0 %1000 }
  0xe8   : > { %1449 = vrot.lane.b32.xlu1 %v1448_v28, %s3718_s30  ;;  %v966_v28 = vsel %vm514_vm3, %v964_v25, %v4163_v33  ;;  %v3473_v33 = vor.u32 %v3472_v13, %v3471_v43  ;;  %v3594_v43 = vld [vmem:[%s3806_s22 + $0x78] sm:$0xf]   ;;  %v3623_v13 = vld [vmem:[%s3806_s22 + $0x78] sm:$0x70] }
  0xe9   : > { %1528 = vrot.lane.b32.xlu2 %v1369_v8, %s3713_s25 }
  0xea   : > { %v4177_v44 = vpop.permute.xlu1 %1004 }
  0xeb   : > { %1376 = vrot.lane.b32.xlu0 %v1375_v17, %s3718_s30  ;;  %v4180_v45 = vpop.permute.xlu2 %1212 }
  0xed   : > { %v918_v47 = vpop.permute.xlu0 %917 }
  0xee   : > { %v968_v50 = vsel %vm517_vm4, %v966_v28, %v918_v47 }
  0xf0   : > { %1534 = vrot.lane.b32.xlu1 %v1533_v49, %s3711_s23 }
  0xf1   : > { %1626 = vrot.lane.b32.xlu2 %v1558_v51, %s3711_s23 }
  0xf2   : > { %v930_v58 = vpop.permute.xlu1 %929 }
  0xf3   : > { %1624 = vrot.lane.b32.xlu0 %v1552_v32, %s3713_s25  ;;  %v4190_v5 = vpop.permute.xlu2 %1137  ;;  %v970_v40 = vsel %vm520_vm6, %v968_v50, %v930_v58  ;;  %v3477_v50 = vld [vmem:[%s3806_s22 + $0x70] sm:$0xf0] }
  0xf4   : > { %v972_v49 = vsel %vm523_vm5, %v970_v40, %v4166_v41  ;;  %v1741_v41 = vrot.slane %v3473_v33, 1 }
  0xf5   : > { %v4192_v8 = vpop.permute.xlu0 %1208 }
  0xf8   : > { %1628 = vrot.lane.b32.xlu1 %v3575_v26, %s3712_s24 }
  0xf9   : > { %1553 = vrot.lane.b32.xlu2 %v1552_v32, %s3714_s26  ;;  %v1649_v32 = vrot.slane %v1647_v4, 1  ;;  %v1784_v4 = vrot.slane %v1782_v20, 1 }
  0xfa   : > { %v4200_v54 = vpop.permute.xlu1 %1210 }
  0xfb   : > { %1541 = vrot.lane.b32.xlu0 %v4194_v9, %s3712_s24  ;;  %v4204_v17 = vpop.permute.xlu2 %1027  ;;  %v4233_v18 = vor.u32 %v1649_v32, %v1645_v52 }
  0xfd   : > { %v4206_v53 = vpop.permute.xlu0 %1118 }
 0x100   : > { %1559 = vrot.lane.b32.xlu1 %v1558_v51, %s3715_s27 }
 0x101   : > { %1632 = vrot.lane.b32.xlu2 %v1583_v23, %s3715_s27 }
 0x102   : > { %v4214_v6 = vpop.permute.xlu1 %1125 }
 0x103   : > { %1630 = vrot.lane.b32.xlu0 %v1577_v19, %s3714_s26  ;;  %v961_v3 = vpop.permute.xlu2 %960 }
 0x105   : > { %v4218_v7 = vpop.permute.xlu0 %1008 }
 0x108   : > { %1639 = vrot.lane.b32.xlu1 %v3579_v62, %s3716_s28 }
 0x109   : > { %1578 = vrot.lane.b32.xlu2 %v1577_v19, %s3717_s29 }
 0x10a   : > { %v1016_v2 = vpop.permute.xlu1 %1015 }
 0x10b   : > { %1566 = vrot.lane.b32.xlu0 %v3575_v26, %s3716_s28  ;;  %v4227_v35 = vpop.permute.xlu2 %1223  ;;  %v1037_v26 = vsel %vm510_vm2, %v3896_v37, %v4169_v38 }
 0x10c   : > { %v1039_v37 = vsel %vm514_vm3, %v1037_v26, %v4097_v46 }
 0x10d   : > { %v943_v36 = vpop.permute.xlu0 %942  ;;  %v1041_v15 = vsel %vm517_vm4, %v1039_v37, %v4177_v44  ;;  %v1780_v44 = vshrl.u32 %v3470_v11, 16  ;;  %v3481_v11 = vld [vmem:[%s3806_s22 + $0x78] sm:$0xf0] }
 0x10e   : > { %v974_v47 = vsel %vm526_vm7, %v972_v49, %v943_v36  ;;  %v1043_v62 = vsel %vm520_vm6, %v1041_v15, %v4150_v22 }
 0x10f   : > { %v1045_v46 = vsel %vm523_vm5, %v1043_v62, %v4218_v7  ;;  %v1785_v52 = vor.u32 %v1784_v4, %v1780_v44 }
 0x110   : > { %1584 = vrot.lane.b32.xlu1 %v1583_v23, %s3718_s30  ;;  %v1047_v27 = vsel %vm526_vm7, %v1045_v46, %v1016_v2 }
 0x111   : > { %1657 = vrot.lane.b32.xlu2 %v1656_v39, %s3718_s30  ;;  %v1049_v7 = vsel %vm529_vm9, %v1047_v27, %v4204_v17  ;;  %v3478_v39 = vld [vmem:[%s3806_s22 + $0x70] sm:$0xe]  ;;  %v3480_v17 = vld [vmem:[%s3806_s22 + $0x78] sm:$0xff]  }
 0x112   : > { %v955_v51 = vpop.permute.xlu1 %954 }
 0x113   : > { %1651 = vrot.lane.b32.xlu0 %v4233_v18, %s3717_s29  ;;  %v976_v55 = vsel %vm529_vm9, %v974_v47, %v955_v51  ;;  %v4245_v56 = vpop.permute.xlu2 %1168  ;;  %v3595_v51 = vor.u32 %v3623_v13, %v3594_v43 }
 0x114   : > { %v978_v58 = vsel %vm532_vm8, %v976_v55, %v961_v3  ;;  %v3608_v3 = vld [vmem:[%s3806_s22 + $0x30] sm:$0x70] }
 0x115   : > { %v4248_v59 = vpop.permute.xlu0 %1214  ;;  %3079 = vmatmul.msk.bf16.vlgmr.msrb.gmra.mxu0 %vm546_vm10, %v978_v58  ;;  %v3535_v24 = vor.u32 %v3608_v3, %v3534_v42  ;;  %v3550_v42 = vld [vmem:[%s3806_s22 + $0x40] sm:$0xf]   ;;  %v3612_v3 = vld [vmem:[%s3806_s22 + $0x40] sm:$0x70] }
 0x116   : > { %1819 = vmatpush.bf16.msrb.mxu0 %v3979_v30  ;;  %v3551_v46 = vor.u32 %v3612_v3, %v3550_v42 }
 0x117   : > { %v1172_v32 = vsel %vm510_vm2, %v3535_v24, %v4126_v61  ;;  %v1245_v61 = vsel %vm510_vm2, %v3931_v63, %v4192_v8 }
 0x118   : > { %1832 = vrot.lane.b32.xlu1 %v4233_v18, %s3713_s25  ;;  %v1174_v2 = vsel %vm514_vm3, %v1172_v32, %v4206_v53 }
 0x119   : > { %1742 = vrot.lane.b32.xlu2 %v1741_v41, %s3711_s23  ;;  %v1176_v36 = vsel %vm517_vm4, %v1174_v2, %v4214_v6  ;;  %v3479_v6 = vor.u32 %v3478_v39, %v3477_v50  ;;  %v1853_v41 = vshrl.u32 %v3480_v17, 16 }
 0x11a   : > { %v4263_v12 = vpop.permute.xlu1 %1216  ;;  %1820 = vmatpush.bf16.msrb.mxu0 %v3988_v34  ;;  %v1178_v53 = vsel %vm520_vm6, %v1176_v36, %v4190_v5  ;;  %v1855_v5 = vshll.u32 %v3480_v17, 16 }
 0x11b   : > { %1736 = vrot.lane.b32.xlu0 %v1577_v19, %s3713_s25  ;;  %v4269_v38 = vpop.permute.xlu2 %1416  ;;  %v1766_v19 = vrot.slane %v3476_v16, 1  ;;  %s3722_s25 = smov 30  }
 0x11c   : > { %v1857_v60 = vrot.slane %v1855_v5, 1  ;;  %v1453_v24 = vsel %vm510_vm2, %v4075_v31, %v4269_v38 }
 0x11d   : > { %v1144_v23 = vpop.permute.xlu0 %1143 }
 0x11e   : > { %v1180_v49 = vsel %vm523_vm5, %v1178_v53, %v1144_v23  ;;  %v1858_v48 = vor.u32 %v1857_v60, %v1853_v41 }
 0x120   : > { %1749 = vrot.lane.b32.xlu1 %v4273_v0, %s3712_s24 }
 0x121   : > { %1836 = vrot.lane.b32.xlu2 %v3591_v57, %s3712_s24  ;;  %s3721_s24 = smov 10  }
 0x122   : > { %v1151_v25 = vpop.permute.xlu1 %1150 }
 0x123   : > { %1834 = vrot.lane.b32.xlu0 %v1766_v19, %s3711_s23  ;;  %v4288_v22 = vpop.permute.xlu2 %1333  ;;  %v1182_v63 = vsel %vm526_vm7, %v1180_v49, %v1151_v25  ;;  %s3720_s23 = smov 20  }
 0x125   : > { %v1034_v29 = vpop.permute.xlu0 %1033 }
 0x126   : > { %v1051_v28 = vsel %vm532_vm8, %v1049_v7, %v1034_v29 }
 0x127   : > { %3084 = vmatmul.msk.bf16.vlgmr.msrb.gmra.mxu1 %vm546_vm10, %v1051_v28 }
 0x128   : > { %1892 = vmatpush.bf16.msrb.mxu1 %v3979_v30  ;;  %1838 = vrot.lane.b32.xlu1 %v1785_v52, %s3714_s26  ;;  %v1247_v30 = vsel %vm514_vm3, %v1245_v61, %v4200_v54  ;;  %v1791_v54 = vrot.slane %v3479_v6, 1 }
 0x129   : > { %1767 = vrot.lane.b32.xlu2 %v1766_v19, %s3715_s27 }
 0x12a   : > { %v1236_v40 = vpop.permute.xlu1 %1235 }
 0x12b   : > { %1761 = vrot.lane.b32.xlu0 %v4233_v18, %s3714_s26  ;;  %v4318_v33 = vpop.permute.xlu2 %1422  ;;  %v1249_v18 = vsel %vm517_vm4, %v1247_v30, %v4180_v45  ;;  %s3723_s26 = smov 50  }
 0x12c   : > { %1893 = vmatpush.bf16.msrb.mxu1 %v3988_v34  ;;  %v1251_v58 = vsel %vm520_vm6, %v1249_v18, %v4248_v59  ;;  %v4383_v18 = vstv %s417_s19  ;;  %s3733_s19 = smov 112  }
 0x12d   : > { %v1163_v8 = vpop.permute.xlu0 %1162  ;;  %v1253_v34 = vsel %vm523_vm5, %v1251_v58, %v4263_v12  ;;  %v3482_v12 = vld [vmem:[%s3806_s22 + $0x78] sm:$0xe] }
 0x12e   : > { %v1184_v47 = vsel %vm529_vm9, %v1182_v63, %v1163_v8 }
 0x12f   : > { %v1186_v55 = vsel %vm532_vm8, %v1184_v47, %v4245_v56  ;;  %v1255_v56 = vsel %vm526_vm7, %v1253_v34, %v4227_v35  ;;  %v3483_v35 = vor.u32 %v3482_v12, %v3481_v11 }
 0x130   : > { %3097 = vmatmul.msk.bf16.vlgmr.msrb.gmra.mxu2 %vm546_vm10, %v1186_v55  ;;  %1774 = vrot.lane.b32.xlu1 %v3591_v57, %s3716_s28  ;;  %v1257_v1 = vsel %vm529_vm9, %v1255_v56, %v1236_v40 }
 0x131   : > { %1847 = vrot.lane.b32.xlu2 %v3595_v51, %s3716_s28  ;;  %v1864_v23 = vrot.slane %v3483_v35, 1  ;;  %s3726_s28 = smov 70  }
 0x132   : > { %v1321_v45 = vpop.permute.xlu1 %1320 }
 0x133   : > { %1840 = vrot.lane.b32.xlu0 %v1791_v54, %s3715_s27  ;;  %v1359_v59 = vpop.permute.xlu2 %1358  ;;  %v1380_v27 = vsel %vm510_vm2, %v3551_v46, %v1321_v45  ;;  %s3724_s27 = smov 40  }
 0x135   : > { %v1242_v26 = vpop.permute.xlu0 %1241 }
 0x136   : > { %v1259_v10 = vsel %vm532_vm8, %v1257_v1, %v1242_v26  ;;  %v665_v1 = vld [vmem:[#allocation3] sm:$0xf] }
 0x137   : > { %3102 = vmatmul.msk.bf16.vlgmr.msrb.gmra.mxu3 %vm546_vm10, %v1259_v10 }
 0x138   : > { %1859 = vrot.lane.b32.xlu1 %v1858_v48, %s3717_s29 }
 0x139   : > { %1792 = vrot.lane.b32.xlu2 %v1791_v54, %s3718_s30 }
 0x13a   : > { %v1419_v16 = vpop.permute.xlu1 %1418 }
 0x13b   : > { %1786 = vrot.lane.b32.xlu0 %v1785_v52, %s3717_s29  ;;  %v1444_v15 = vpop.permute.xlu2 %1443  ;;  %v1455_v7 = vsel %vm514_vm3, %v1453_v24, %v1419_v16  ;;  %s3727_s29 = smov 80  }
 0x13d   : > { %v1327_v37 = vpop.permute.xlu0 %1326 }
 0x13e   : > { %v1382_v32 = vsel %vm514_vm3, %v1380_v27, %v1327_v37  ;;  %v3566_v37 = vld [vmem:[%s3806_s22 + $0x50] sm:$0xf]  }
 0x13f   : > { %v1384_v38 = vsel %vm517_vm4, %v1382_v32, %v4288_v22 }
 0x142   : > { %v1346_v20 = vpop.permute.xlu1 %1345 }
 0x143   : > { %1865 = vrot.lane.b32.xlu0 %v1864_v23, %s3718_s30  ;;  %v4346_v14 = vpop.permute.xlu2 %1528  ;;  %v1386_v17 = vsel %vm520_vm6, %v1384_v38, %v1346_v20  ;;  %v3616_v23 = vld [vmem:[%s3806_s22 + $0x50] sm:$0x70]  ;;  %s3026_s30 = sld [smem:[#allocation5 + $0x2]] }
 0x145   : > { %v1421_v21 = vpop.permute.xlu0 %1420 }
 0x146   : > { %v1457_v29 = vsel %vm517_vm4, %v1455_v7, %v1421_v21 }
 0x147   : > { %v1459_v31 = vsel %vm520_vm6, %v1457_v29, %v4318_v33  ;;  %v4379_v33 = vld [vmem:[%s4760_s2] ss:$0 sm:$0xff] }
 0x149   : > { %v638_v19 = vpop.f32.mrf.mxu1 }
 0x14a   : > { %v1425_v62 = vpop.permute.xlu1 %1424 }
 0x14b   : > { %v4355_v25 = vpop.permute.xlu2 %1626  ;;  %v1461_v39 = vsel %vm523_vm5, %v1459_v31, %v1425_v62 }
 0x14c   : > { %v565_v57 = vpop.f32.mrf.mxu0 }
 0x14d   : > { %v643_v44 = vmax.f32 %v565_v57, %v638_v19  ;;  %v1352_v4 = vpop.permute.xlu0 %1351  ;;  %v3567_v19 = vor.u32 %v3616_v23, %v3566_v37 }
 0x14e   : > { %v1388_v53 = vsel %vm523_vm5, %v1386_v17, %v1352_v4 }
 0x14f   : > { %646 = vst.msk [vmem:[#allocation2] sm:$0xff] %vm645_vm11, %v643_v44  ;;  %v1390_v13 = vsel %vm526_vm7, %v1388_v53, %v1359_v59 }
 0x151   : > { %v640_v28 = vpop.f32.mrf.mxu1 }
 0x152   : > { %v1371_v52 = vpop.permute.xlu1 %1370 }
 0x153   : > { %v4370_v43 = vpop.permute.xlu2 %1553  ;;  %v1392_v30 = vsel %vm529_vm9, %v1390_v13, %v1371_v52  ;;  %v1588_v52 = vsel %vm510_vm2, %v3567_v19, %v4346_v14 }
 0x154   : > { %v567_v2 = vpop.f32.mrf.mxu0 }
 0x155   : > { %v644_v36 = vmax.f32 %v567_v2, %v640_v28  ;;  %v1432_v50 = vpop.permute.xlu0 %1431 }
 0x156   : > { %v1463_v61 = vsel %vm526_vm7, %v1461_v39, %v1432_v50 }
 0x157   : > { %648 = vst.msk [vmem:[#allocation2 + $0x8] sm:$0x3f] %vm647_vm12, %v644_v36  ;;  %v1465_v40 = vsel %vm529_vm9, %v1463_v61, %v1444_v15  ;;  %v873_v61 = vld [vmem:[#allocation3 + $0x4] sm:$0xf] }
 0x15a   : > { %v1450_v6 = vpop.permute.xlu1 %1449 }
 0x15b   : > { %v1467_v22 = vsel %vm532_vm8, %v1465_v40, %v1450_v6  ;;  %v1633_v45 = vpop.permute.xlu2 %1632 }
 0x15c   : > { %3120 = vmatmul.msk.bf16.vlgmr.msra.gmra.mxu1 %vm546_vm10, %v1467_v22 }
 0x15d   : > { %v1377_v49 = vpop.permute.xlu0 %1376 }
 0x15e   : > { %v649_v63 = vld [vmem:[#allocation2] ss:$2 sm:$0x7f]  ;;  %v651_v8 = vld [vmem:[#allocation2 + $0x1] ss:$2 sm:$0x7f]  ;;  %v1394_v5 = vsel %vm532_vm8, %v1392_v30, %v1377_v49 }
 0x15f   : > { %3115 = vmatmul.msk.bf16.vlgmr.msra.gmra.mxu0 %vm546_vm10, %v1394_v5  ;;  %v652_v47 = vmax.f32 %v649_v63, %v651_v8  ;;  %v855_v51 = vpop.f32.mrf.mxu3 }
 0x161   : > { %v656_v55 = vadd.f32 %v4379_v33, %v652_v47 }
 0x162   : > { %v782_v54 = vpop.f32.mrf.mxu2  ;;  %v1535_v34 = vpop.permute.xlu1 %1534 }
 0x163   : > { %v860_v58 = vmax.f32 %v782_v54, %v855_v51  ;;  %vm657_vm15 = vcmp.ge.f32.partialorder %v656_v55, 0.0  ;;  %v659_v41 = vmul.f32 %v4383_v18, %v656_v55  ;;  %v1579_v15 = vpop.permute.xlu2 %1578  ;;  %v1590_v38 = vsel %vm514_vm3, %v1588_v52, %v1535_v34  ;;  %v3582_v52 = vld [vmem:[%s3806_s22 + $0x60] sm:$0xf]  }
 0x165   : > { %862 = vst.msk [vmem:[#allocation2] sm:$0xff] %vm645_vm11, %v860_v58  ;;  %v1625_v60 = vpop.permute.xlu0 %1624  ;;  %v660_v56 = vsel %vm657_vm15, %v656_v55, %v659_v41 }
 0x166   : > { %v661_v26 = vpack.c.bf16 %v660_v56, %v660_v56  ;;  %v1661_v53 = vsel %vm510_vm2, %v4194_v9, %v1625_v60 }
 0x167   : > { %v857_v10 = vpop.f32.mrf.mxu3  ;;  %v1663_v30 = vsel %vm514_vm3, %v1661_v53, %v4355_v25 }
 0x168   : > { %v666_v48 = vsel %vm4388_vm1, %v661_v26, %v665_v1 }
 0x169   : > { %667 = vst [vmem:[#allocation3] sm:$0xf] %v666_v48 }
 0x16a   : > { %v784_v11 = vpop.f32.mrf.mxu2  ;;  %v1629_v16 = vpop.permute.xlu1 %1628 }
 0x16b   : > { %v861_v12 = vmax.f32 %v784_v11, %v857_v10  ;;  %v1658_v50 = vpop.permute.xlu2 %1657  ;;  %v1665_v63 = vsel %vm517_vm4, %v1663_v30, %v1629_v16 }
 0x16d   : > { %863 = vst.msk [vmem:[#allocation2 + $0x8] sm:$0x3f] %vm647_vm12, %v861_v12  ;;  %v1542_v35 = vpop.permute.xlu0 %1541 }
 0x16e   : > { %v1592_v39 = vsel %vm517_vm4, %v1590_v38, %v1542_v35 }
 0x16f   : > { %v1594_v13 = vsel %vm520_vm6, %v1592_v39, %v4370_v43 }
 0x170   : > { %v1917_v20 = vld [vmem:[#allocation3] sm:$0xe] }
 0x171   : > { %v4397_v21 = vld [vmem:[#allocation3] sm:$0x7]  ;;  %v1935_v42 = vunpack.c.l.b16 %v1917_v20 }
 0x172   : > { %v1923_v3 = vunpack.c.l.b16 %v4397_v21  ;;  %v1560_v62 = vpop.permute.xlu1 %1559 }
 0x173   : > { %v1936_v57 = vpack.c.b16 %v1935_v42, %v1935_v42  ;;  %v1596_v49 = vsel %vm523_vm5, %v1594_v13, %v1560_v62  ;;  %v1743_v51 = vpop.permute.xlu2 %1742 }
 0x174   : > { %v1924_v46 = vpack.c.b16 %v1923_v3, %v1923_v3  ;;  %v864_v44 = vld [vmem:[#allocation2] ss:$2 sm:$0x7f]  ;;  %v865_v4 = vld [vmem:[#allocation2 + $0x1] ss:$2 sm:$0x7f] }
 0x175   : > { %v1631_v24 = vpop.permute.xlu0 %1630  ;;  %v1937_v27 = vrot.slane %v1936_v57, 1  ;;  %v866_v29 = vmax.f32 %v864_v44, %v865_v4 }
 0x176   : > { %v1928_v7 = vshll.u32 %v1924_v46, 16  ;;  %v1926_v32 = vshrl.u32 %v1924_v46, 16  ;;  %v1667_v9 = vsel %vm520_vm6, %v1665_v63, %v1631_v24 }
 0x177   : > { %1938 = vrot.lane.b32.xlu2 %v1937_v27, %s3720_s23  ;;  %v867_v2 = vadd.f32 %v4379_v33, %v866_v29  ;;  %v1669_v43 = vsel %vm523_vm5, %v1667_v9, %v1633_v45 }
 0x178   : > { %v1930_v28 = vrot.slane %v1928_v7, 1 }
 0x179   : > { %vm868_vm13 = vcmp.ge.f32.partialorder %v867_v2, 0.0  ;;  %v869_v31 = vmul.f32 %v867_v2, %v4383_v18 }
 0x17a   : > { %v1931_v36 = vor.u32 %v1930_v28, %v1926_v32  ;;  %v1640_v17 = vpop.permute.xlu1 %1639  ;;  %v3620_v32 = vld [vmem:[%s3806_s22 + $0x60] sm:$0x70]  ;;  %s3725_s22 = smov 60  }
 0x17b   : > { %v870_v14 = vsel %vm868_vm13, %v867_v2, %v869_v31  ;;  %v1671_v54 = vsel %vm526_vm7, %v1669_v43, %v1640_v17  ;;  %v1837_v62 = vpop.permute.xlu2 %1836  ;;  %vm2067_vm13 = vsmask.f32 2304 }
 0x17c   : > { %1932 = vrot.lane.b32.xlu1 %v1931_v36, %s3721_s24  ;;  %v871_v40 = vpack.c.bf16 %v870_v14, %v870_v14  ;;  %v3583_v36 = vor.u32 %v3620_v32, %v3582_v52 }
 0x17d   : > { %v1567_v6 = vpop.permute.xlu0 %1566 }
 0x17e   : > { %v874_v22 = vsel %vm4388_vm1, %v871_v40, %v873_v61  ;;  %v1598_v8 = vsel %vm526_vm7, %v1596_v49, %v1567_v6 }
 0x17f   : > { %875 = vst [vmem:[#allocation3 + $0x4] sm:$0xf] %v874_v22  ;;  %v1600_v5 = vsel %vm529_vm9, %v1598_v8, %v1579_v15 }
 0x182   : > { %v1585_v47 = vpop.permute.xlu1 %1584 }
 0x183   : > { %v1602_v55 = vsel %vm532_vm8, %v1600_v5, %v1585_v47  ;;  %v1768_v29 = vpop.permute.xlu2 %1767 }
 0x184   : > { %3133 = vmatmul.msk.bf16.vlgmr.msra.gmra.mxu2 %vm546_vm10, %v1602_v55 }
 0x185   : > { %v1652_v25 = vpop.permute.xlu0 %1651 }
 0x186   : > { %v1673_v58 = vsel %vm529_vm9, %v1671_v54, %v1652_v25  ;;  %v1918_v34 = vld [vmem:[#allocation3 + $0x4] sm:$0x7] }
 0x187   : > { %v2073_v41 = vld [vmem:[#allocation3 + $0x4] sm:$0xe]  ;;  %v1675_v56 = vsel %vm532_vm8, %v1673_v58, %v1658_v50  ;;  %v1941_v1 = vunpack.c.l.b16 %v1918_v34 }
 0x188   : > { %v4426_v60 = vld [vmem:[#allocation3 + $0x4] sm:$0x7]  ;;  %v2091_v26 = vunpack.c.l.b16 %v2073_v41  ;;  %3138 = vmatmul.msk.bf16.vlgmr.msra.gmra.mxu3 %vm546_vm10, %v1675_v56 }
 0x189   : > { %v2079_v48 = vunpack.c.l.b16 %v4426_v60  ;;  %v1919_v45 = vld [vmem:[#allocation3 + $0x4] sm:$0xe]  ;;  %v1942_v10 = vpack.c.b16 %v1941_v1, %v1941_v1 }
 0x18a   : > { %v2092_v11 = vpack.c.b16 %v2091_v26, %v2091_v26  ;;  %v1955_v16 = vunpack.c.l.b16 %v1919_v45  ;;  %v1833_v35 = vpop.permute.xlu1 %1832 }
 0x18b   : > { %v2080_v12 = vpack.c.b16 %v2079_v48, %v2079_v48  ;;  %1943 = vrot.lane.b32.xlu0 %v1942_v10, %s3722_s25  ;;  %v1948_v23 = vshll.u32 %v1942_v10, 16  ;;  %v1946_v4 = vshrl.u32 %v1942_v10, 16  ;;  %v1848_v50 = vpop.permute.xlu2 %1847  ;;  %v1869_v6 = vsel %vm510_vm2, %v4273_v0, %v1833_v35 }
 0x18c   : > { %v2093_v37 = vrot.slane %v2092_v11, 1  ;;  %v1956_v19 = vpack.c.b16 %v1955_v16, %v1955_v16 }
 0x18d   : > { %v2084_v15 = vshll.u32 %v2080_v12, 16  ;;  %v1737_v20 = vpop.permute.xlu0 %1736  ;;  %v2082_v42 = vshrl.u32 %v2080_v12, 16  ;;  %v1950_v46 = vrot.slane %v1948_v23, 1 }
 0x18e   : > { %2094 = vrot.lane.b32.xlu1 %v2093_v37, %s3720_s23  ;;  %v1957_v44 = vrot.slane %v1956_v19, 1  ;;  %v1796_v38 = vsel %vm510_vm2, %v3583_v36, %v1737_v20  ;;  %v1081_v37 = vld [vmem:[#allocation3 + $0x8] sm:$0xf] }
 0x18f   : > { %v2086_v3 = vrot.slane %v2084_v15, 1  ;;  %v1951_v24 = vor.u32 %v1950_v46, %v1946_v4  ;;  %v1798_v61 = vsel %vm514_vm3, %v1796_v38, %v1743_v51 }
 0x191   : > { %v2087_v57 = vor.u32 %v2086_v3, %v2082_v42 }
 0x192   : > { %v1750_v27 = vpop.permute.xlu1 %1749  ;;  %v990_v31 = vpop.f32.mrf.mxu0 }
 0x193   : > { %2088 = vrot.lane.b32.xlu2 %v2087_v57, %s3721_s24  ;;  %1958 = vrot.lane.b32.xlu0 %v1957_v44, %s3723_s26  ;;  %v1800_v53 = vsel %vm517_vm4, %v1798_v61, %v1750_v27  ;;  %v1793_v22 = vpop.permute.xlu2 %1792 }
 0x195   : > { %v1835_v7 = vpop.permute.xlu0 %1834 }
 0x196   : > { %1952 = vrot.lane.b32.xlu1 %v1951_v24, %s3724_s27  ;;  %v1871_v30 = vsel %vm514_vm3, %v1869_v6, %v1835_v7 }
 0x197   : > { %v1873_v43 = vsel %vm517_vm4, %v1871_v30, %v1837_v62 }
 0x19a   : > { %v1839_v2 = vpop.permute.xlu1 %1838  ;;  %v992_v49 = vpop.f32.mrf.mxu0 }
 0x19b   : > { %v1875_v55 = vsel %vm520_vm6, %v1873_v43, %v1839_v2 }
 0x19d   : > { %v1762_v28 = vpop.permute.xlu0 %1761 }
 0x19e   : > { %v1802_v13 = vsel %vm520_vm6, %v1800_v53, %v1762_v28  ;;  %vm1986_vm6 = vcmask 244736  }
 0x19f   : > { %v1804_v63 = vsel %vm523_vm5, %v1802_v13, %v1768_v29 }
 0x1a2   : > { %v1775_v40 = vpop.permute.xlu1 %1774 }
 0x1a3   : > { %v1806_v9 = vsel %vm526_vm7, %v1804_v63, %v1775_v40 }
 0x1a4   : > { %v1063_v39 = vpop.f32.mrf.mxu1 }
 0x1a5   : > { %v1068_v17 = vmax.f32 %v990_v31, %v1063_v39  ;;  %v1841_v14 = vpop.permute.xlu0 %1840 }
 0x1a6   : > { %v1877_v54 = vsel %vm523_vm5, %v1875_v55, %v1841_v14  ;;  %vm1983_vm5 = vcmask 162816  }
 0x1a7   : > { %1070 = vst.msk [vmem:[#allocation2] sm:$0xff] %vm645_vm11, %v1068_v17  ;;  %v1879_v58 = vsel %vm526_vm7, %v1877_v54, %v1848_v50  ;;  %vm1989_vm7 = vcmask 326656  }
 0x1aa   : > { %v1860_v25 = vpop.permute.xlu1 %1859 }
 0x1ab   : > { %v1881_v34 = vsel %vm529_vm9, %v1879_v58, %v1860_v25 }
 0x1ac   : > { %v1065_v8 = vpop.f32.mrf.mxu1 }
 0x1ad   : > { %v1069_v5 = vmax.f32 %v992_v49, %v1065_v8  ;;  %v1787_v47 = vpop.permute.xlu0 %1786 }
 0x1ae   : > { %v1808_v51 = vsel %vm529_vm9, %v1806_v9, %v1787_v47  ;;  %vm1995_vm9 = vcmask 490496  }
 0x1af   : > { %1071 = vst.msk [vmem:[#allocation2 + $0x8] sm:$0x3f] %vm647_vm12, %v1069_v5  ;;  %v1810_v0 = vsel %vm532_vm8, %v1808_v51, %v1793_v22  ;;  %v1289_v22 = vld [vmem:[#allocation3 + $0xc] sm:$0xf] }
 0x1b0   : > { %3151 = vmatmul.msk.bf16.vlgmr.msrb.gmra.mxu0 %vm546_vm10, %v1810_v0 }
 0x1b3   : > { %v1198_v45 = vpop.f32.mrf.mxu2 }
 0x1b5   : > { %v1866_v41 = vpop.permute.xlu0 %1865 }
 0x1b6   : > { %v1072_v56 = vld [vmem:[#allocation2] ss:$2 sm:$0x7f]  ;;  %v1073_v1 = vld [vmem:[#allocation2 + $0x1] ss:$2 sm:$0x7f]  ;;  %v1883_v26 = vsel %vm532_vm8, %v1881_v34, %v1866_v41 }
 0x1b7   : > { %3156 = vmatmul.msk.bf16.vlgmr.msrb.gmra.mxu1 %vm546_vm10, %v1883_v26  ;;  %v1074_v48 = vmax.f32 %v1072_v56, %v1073_v1  ;;  %vm1992_vm8 = vcmask 408576   ;;  %vm1998_vm10 = vcmask 572416  }
 0x1b9   : > { %v1075_v10 = vadd.f32 %v4379_v33, %v1074_v48 }
 0x1ba   : > { %v1271_v11 = vpop.f32.mrf.mxu3 }
 0x1bb   : > { %v1276_v12 = vmax.f32 %v1198_v45, %v1271_v11  ;;  %vm1076_vm2 = vcmp.ge.f32.partialorder %v1075_v10, 0.0  ;;  %v1077_v16 = vmul.f32 %v1075_v10, %v4383_v18  ;;  %v1200_v20 = vpop.f32.mrf.mxu2 }
 0x1bd   : > { %1278 = vst.msk [vmem:[#allocation2] sm:$0xff] %vm645_vm11, %v1276_v12  ;;  %v1078_v35 = vsel %vm1076_vm2, %v1075_v10, %v1077_v16 }
 0x1be   : > { %v1079_v15 = vpack.c.bf16 %v1078_v35, %v1078_v35 }
 0x1c0   : > { %v1082_v23 = vsel %vm4388_vm1, %v1079_v15, %v1081_v37 }
 0x1c1   : > { %1083 = vst [vmem:[#allocation3 + $0x8] sm:$0xf] %v1082_v23 }
 0x1c2   : > { %v1273_v42 = vpop.f32.mrf.mxu3 }
 0x1c3   : > { %v1277_v3 = vmax.f32 %v1200_v20, %v1273_v42 }
 0x1c5   : > { %1279 = vst.msk [vmem:[#allocation2 + $0x8] sm:$0x3f] %vm647_vm12, %v1277_v3 }
 0x1c8   : > { %v2074_v19 = vld [vmem:[#allocation3 + $0x8] sm:$0x7] }
 0x1c9   : > { %v1920_v62 = vld [vmem:[#allocation3 + $0x8] sm:$0x7]  ;;  %v2097_v46 = vunpack.c.l.b16 %v2074_v19 }
 0x1ca   : > { %v1921_v57 = vld [vmem:[#allocation3 + $0x8] sm:$0xe]  ;;  %v1961_v44 = vunpack.c.l.b16 %v1920_v62 }
 0x1cb   : > { %v2098_v4 = vpack.c.b16 %v2097_v46, %v2097_v46  ;;  %v1975_v27 = vunpack.c.l.b16 %v1921_v57  ;;  %v2075_v28 = vld [vmem:[#allocation3 + $0x8] sm:$0xe] }
 0x1cc   : > { %v1962_v24 = vpack.c.b16 %v1961_v44, %v1961_v44  ;;  %v1280_v7 = vld [vmem:[#allocation2] ss:$2 sm:$0x7f]  ;;  %v1281_v29 = vld [vmem:[#allocation2 + $0x1] ss:$2 sm:$0x7f]  ;;  %v2111_v61 = vunpack.c.l.b16 %v2075_v28 }
 0x1cd   : > { %2099 = vrot.lane.b32.xlu0 %v2098_v4, %s3722_s25  ;;  %v2104_v32 = vshll.u32 %v2098_v4, 16  ;;  %v1282_v2 = vmax.f32 %v1280_v7, %v1281_v29  ;;  %v1976_v31 = vpack.c.b16 %v1975_v27, %v1975_v27  ;;  %v2102_v14 = vshrl.u32 %v2098_v4, 16  ;;  %v4474_v8 = vld [vmem:[#allocation3 + $0x8] sm:$0x7] }
 0x1ce   : > { %1963 = vrot.lane.b32.xlu2 %v1962_v24, %s3725_s22  ;;  %v1968_v52 = vshll.u32 %v1962_v24, 16  ;;  %v1966_v36 = vshrl.u32 %v1962_v24, 16  ;;  %v2112_v30 = vpack.c.b16 %v2111_v61, %v2111_v61  ;;  %v2183_v47 = vunpack.c.l.b16 %v4474_v8  ;;  %v2177_v35 = vld [vmem:[#allocation3 + $0x8] sm:$0xe] }
 0x1cf   : > { %v2106_v38 = vrot.slane %v2104_v32, 1  ;;  %v1283_v39 = vadd.f32 %v4379_v33, %v1282_v2  ;;  %v1977_v40 = vrot.slane %v1976_v31, 1  ;;  %v2195_v3 = vunpack.c.l.b16 %v2177_v35  ;;  %v1497_v31 = vld [vmem:[#allocation3 + $0x10] sm:$0xf]  ;;  %v3249_v35 = vld [vmem:[%s4761_s3 + $0x28] sm:$0x10] }
 0x1d0   : > { %v1970_v50 = vrot.slane %v1968_v52, 1  ;;  %v2113_v9 = vrot.slane %v2112_v30, 1  ;;  %v2184_v0 = vpack.c.b16 %v2183_v47, %v2183_v47 }
 0x1d1   : > { %vm1284_vm3 = vcmp.ge.f32.partialorder %v1283_v39, 0.0  ;;  %v1285_v53 = vmul.f32 %v1283_v39, %v4383_v18  ;;  %v2107_v6 = vor.u32 %v2106_v38, %v2102_v14  ;;  %v2196_v57 = vpack.c.b16 %v2195_v3, %v2195_v3 }
 0x1d2   : > { %v1971_v17 = vor.u32 %v1970_v50, %v1966_v36  ;;  %v2188_v26 = vshll.u32 %v2184_v0, 16  ;;  %v2186_v42 = vshrl.u32 %v2184_v0, 16 }
 0x1d3   : > { %v1286_v13 = vsel %vm1284_vm3, %v1283_v39, %v1285_v53  ;;  %v2197_v7 = vrot.slane %v2196_v57, 1 }
 0x1d4   : > { %1972 = vrot.lane.b32.xlu1 %v1971_v17, %s3726_s28  ;;  %v1287_v49 = vpack.c.bf16 %v1286_v13, %v1286_v13  ;;  %v2190_v23 = vrot.slane %v2188_v26, 1 }
 0x1d5   : > { %1978 = vrot.lane.b32.xlu0 %v1977_v40, %s3727_s29 }
 0x1d6   : > { %2108 = vrot.lane.b32.xlu2 %v2107_v6, %s3724_s27  ;;  %v1290_v63 = vsel %vm4388_vm1, %v1287_v49, %v1289_v22  ;;  %v2191_v62 = vor.u32 %v2190_v23, %v2186_v42 }
 0x1d7   : > { %1291 = vst [vmem:[#allocation3 + $0xc] sm:$0xf] %v1290_v63 }
 0x1d9   : > { %v1479_v5 = vpop.f32.mrf.mxu1 }
 0x1dc   : > { %2114 = vrot.lane.b32.xlu1 %v2113_v9, %s3723_s26  ;;  %v1406_v51 = vpop.f32.mrf.mxu0 }
 0x1dd   : > { %v1484_v43 = vmax.f32 %v1406_v51, %v1479_v5 }
 0x1de   : > { %v2076_v55 = vld [vmem:[#allocation3 + $0xc] sm:$0x7] }
 0x1df   : > { %1486 = vst.msk [vmem:[#allocation2] sm:$0xff] %vm645_vm11, %v1484_v43  ;;  %v2077_v54 = vld [vmem:[#allocation3 + $0xc] sm:$0xe]  ;;  %v2117_v25 = vunpack.c.l.b16 %v2076_v55 }
 0x1e0   : > { %v2131_v58 = vunpack.c.l.b16 %v2077_v54  ;;  %v2178_v34 = vld [vmem:[#allocation3 + $0xc] sm:$0x7] }
 0x1e1   : > { %v2201_v41 = vunpack.c.l.b16 %v2178_v34  ;;  %v2118_v56 = vpack.c.b16 %v2117_v25, %v2117_v25  ;;  %v1481_v48 = vpop.f32.mrf.mxu1  ;;  %v2179_v44 = vld [vmem:[#allocation3 + $0xc] sm:$0xe] }
 0x1e2   : > { %v2132_v1 = vpack.c.b16 %v2131_v58, %v2131_v58  ;;  %v2215_v52 = vunpack.c.l.b16 %v2179_v44  ;;  %v4491_v14 = vld [vmem:[#allocation3 + $0xc] sm:$0x7]  ;;  %v3248_v44 = vld [vmem:[%s4761_s3 + $0x20] sm:$0xff] }
 0x1e3   : > { %2119 = vrot.lane.b32.xlu2 %v2118_v56, %s3725_s22  ;;  %v2124_v11 = vshll.u32 %v2118_v56, 16  ;;  %v2202_v16 = vpack.c.b16 %v2201_v41, %v2201_v41  ;;  %v2122_v37 = vshrl.u32 %v2118_v56, 16  ;;  %v2287_v61 = vunpack.c.l.b16 %v4491_v14  ;;  %v2281_v43 = vld [vmem:[#allocation3 + $0xc] sm:$0xe] }
 0x1e4   : > { %v1408_v45 = vpop.f32.mrf.mxu0  ;;  %v2133_v10 = vrot.slane %v2132_v1, 1  ;;  %v2216_v36 = vpack.c.b16 %v2215_v52, %v2215_v52  ;;  %v2299_v56 = vunpack.c.l.b16 %v2281_v43  ;;  %v3246_v52 = vld [vmem:[%s4761_s3 + $0x10] sm:$0xff] }
 0x1e5   : > { %v1485_v12 = vmax.f32 %v1408_v45, %v1481_v48  ;;  %v2126_v15 = vrot.slane %v2124_v11, 1  ;;  %v2208_v19 = vshll.u32 %v2202_v16, 16  ;;  %v2206_v29 = vshrl.u32 %v2202_v16, 16 }
 0x1e6   : > { %2134 = vrot.lane.b32.xlu1 %v2133_v10, %s3727_s29  ;;  %v2217_v39 = vrot.slane %v2216_v36, 1  ;;  %v2288_v53 = vpack.c.b16 %v2287_v61, %v2287_v61  ;;  %v2300_v10 = vpack.c.b16 %v2299_v56, %v2299_v56 }
 0x1e7   : > { %1487 = vst.msk [vmem:[#allocation2 + $0x8] sm:$0x3f] %vm647_vm12, %v1485_v12  ;;  %v2127_v20 = vor.u32 %v2126_v15, %v2122_v37  ;;  %v2210_v46 = vrot.slane %v2208_v19, 1 }
 0x1e8   : > { %v2292_v9 = vshll.u32 %v2288_v53, 16  ;;  %v2290_v41 = vshrl.u32 %v2288_v53, 16  ;;  %v2301_v15 = vrot.slane %v2300_v10, 1 }
 0x1e9   : > { %2128 = vrot.lane.b32.xlu0 %v2127_v20, %s3726_s28  ;;  %v2211_v28 = vor.u32 %v2210_v46, %v2206_v29 }
 0x1ea   : > { %v2294_v54 = vrot.slane %v2292_v9, 1  ;;  %v1939_v9 = vpop.permute.xlu2 %1938 }
 0x1eb   : > { %2192 = vrot.lane.b32.xlu2 %v2191_v62, %s3721_s24 }
 0x1ec   : > { %v2295_v26 = vor.u32 %v2294_v54, %v2290_v41 }
 0x1ee   : > { %2203 = vrot.lane.b32.xlu1 %v2202_v16, %s3722_s25  ;;  %v1488_v4 = vld [vmem:[#allocation2] ss:$2 sm:$0x7f]  ;;  %v1489_v24 = vld [vmem:[#allocation2 + $0x1] ss:$2 sm:$0x7f]  ;;  %v1933_v53 = vpop.permute.xlu1 %1932 }
 0x1ef   : > { %v1490_v27 = vmax.f32 %v1488_v4, %v1489_v24  ;;  %v3179_v16 = vld [vmem:[%s4761_s3 + $0x28] sm:$0xf]  ;;  %v3247_v24 = vld [vmem:[%s4761_s3 + $0x18] sm:$0xff] }
 0x1f0   : > { %v3180_v37 = vor.u32 %v3249_v35, %v3179_v16 }
 0x1f1   : > { %v1491_v32 = vadd.f32 %v4379_v33, %v1490_v27  ;;  %2198 = vrot.lane.b32.xlu0 %v2197_v7, %s3720_s23 }
 0x1f2   : > { %v2046_v42 = vsel %vm549_vm0, %v3180_v37, 0  ;;  %v2089_v16 = vpop.permute.xlu2 %2088 }
 0x1f3   : > { %vm1492_vm4 = vcmp.ge.f32.partialorder %v1491_v32, 0.0  ;;  %v1493_v2 = vmul.f32 %v1491_v32, %v4383_v18  ;;  %2212 = vrot.lane.b32.xlu2 %v2211_v28, %s3724_s27  ;;  %2050 = vmatpush.bf16.msrb.mxu2 %v2046_v42  ;;  %v3245_v28 = vld [vmem:[%s4761_s3 + $0x8] sm:$0xff] }
 0x1f4   : > { %2157 = vmatpush.bf16.msrb.mxu3 %v2046_v42  ;;  %2261 = vmatpush.bf16.msra.mxu0 %v2046_v42 }
 0x1f5   : > { %v1494_v50 = vsel %vm1492_vm4, %v1491_v32, %v1493_v2  ;;  %2365 = vmatpush.bf16.msra.mxu1 %v2046_v42 }
 0x1f6   : > { %v1495_v38 = vpack.c.bf16 %v1494_v50, %v1494_v50  ;;  %v1705_v50 = vld [vmem:[#allocation3 + $0x14] sm:$0xf] }
 0x1f7   : > { %2051 = vmatpush.bf16.msrb.mxu2 %v3248_v44 }
 0x1f8   : > { %v1498_v17 = vsel %vm4388_vm1, %v1495_v38, %v1497_v31  ;;  %2158 = vmatpush.bf16.msrb.mxu3 %v3248_v44  ;;  %2262 = vmatpush.bf16.msra.mxu0 %v3248_v44 }
 0x1f9   : > { %1499 = vst [vmem:[#allocation3 + $0x10] sm:$0xf] %v1498_v17  ;;  %2218 = vrot.lane.b32.xlu0 %v2217_v39, %s3723_s26  ;;  %2366 = vmatpush.bf16.msra.mxu1 %v3248_v44  ;;  %v3244_v17 = vld [vmem:[%s4761_s3] sm:$0xff] }
 0x1fb   : > { %2052 = vmatpush.bf16.msrb.mxu2 %v3247_v24 }
 0x1fc   : > { %2159 = vmatpush.bf16.msrb.mxu3 %v3247_v24  ;;  %2263 = vmatpush.bf16.msra.mxu0 %v3247_v24 }
 0x1fd   : > { %2367 = vmatpush.bf16.msra.mxu1 %v3247_v24 }
 0x1ff   : > { %2053 = vmatpush.bf16.msrb.mxu2 %v3246_v52 }
 0x200   : > { %v2180_v40 = vld [vmem:[#allocation3 + $0x10] sm:$0x7]  ;;  %2160 = vmatpush.bf16.msrb.mxu3 %v3246_v52  ;;  %2264 = vmatpush.bf16.msra.mxu0 %v3246_v52 }
 0x201   : > { %v2181_v6 = vld [vmem:[#allocation3 + $0x10] sm:$0xe]  ;;  %v2221_v22 = vunpack.c.l.b16 %v2180_v40  ;;  %2368 = vmatpush.bf16.msra.mxu1 %v3246_v52  ;;  %v1944_v40 = vpop.permute.xlu0 %1943 }
 0x202   : > { %v2282_v13 = vld [vmem:[#allocation3 + $0x10] sm:$0x7]  ;;  %v2235_v30 = vunpack.c.l.b16 %v2181_v6 }
 0x203   : > { %v2222_v49 = vpack.c.b16 %v2221_v22, %v2221_v22  ;;  %v2305_v5 = vunpack.c.l.b16 %v2282_v13  ;;  %v2283_v11 = vld [vmem:[#allocation3 + $0x10] sm:$0xe]  ;;  %2054 = vmatpush.bf16.msrb.mxu2 %v3245_v28 }
 0x204   : > { %v2236_v63 = vpack.c.b16 %v2235_v30, %v2235_v30  ;;  %v2319_v20 = vunpack.c.l.b16 %v2283_v11  ;;  %2161 = vmatpush.bf16.msrb.mxu3 %v3245_v28  ;;  %2265 = vmatpush.bf16.msra.mxu0 %v3245_v28  ;;  %v4528_v39 = vld [vmem:[#allocation3 + $0x10] sm:$0x7] }
 0x205   : > { %2223 = vrot.lane.b32.xlu1 %v2222_v49, %s3725_s22  ;;  %v2228_v51 = vshll.u32 %v2222_v49, 16  ;;  %v2226_v0 = vshrl.u32 %v2222_v49, 16  ;;  %v2306_v25 = vpack.c.b16 %v2305_v5, %v2305_v5  ;;  %2369 = vmatpush.bf16.msra.mxu1 %v3245_v28  ;;  %v2391_v61 = vunpack.c.l.b16 %v4528_v39  ;;  %v2385_v41 = vld [vmem:[#allocation3 + $0x10] sm:$0xe] }
 0x206   : > { %v2237_v47 = vrot.slane %v2236_v63, 1  ;;  %v2320_v46 = vpack.c.b16 %v2319_v20, %v2319_v20 }
 0x207   : > { %v2230_v55 = vrot.slane %v2228_v51, 1  ;;  %v1614_v58 = vpop.f32.mrf.mxu2  ;;  %v2312_v48 = vshll.u32 %v2306_v25, 16  ;;  %v2310_v23 = vshrl.u32 %v2306_v25, 16  ;;  %2055 = vmatpush.bf16.msrb.mxu2 %v3244_v17  ;;  %v2392_v6 = vpack.c.b16 %v2391_v61, %v2391_v61 }
 0x208   : > { %2238 = vrot.lane.b32.xlu0 %v2237_v47, %s3727_s29  ;;  %v2321_v4 = vrot.slane %v2320_v46, 1  ;;  %2162 = vmatpush.bf16.msrb.mxu3 %v3244_v17 }
 0x209   : > { %v2231_v34 = vor.u32 %v2230_v55, %v2226_v0  ;;  %v2314_v12 = vrot.slane %v2312_v48, 1  ;;  %2266 = vmatpush.bf16.msra.mxu0 %v3244_v17  ;;  %2370 = vmatpush.bf16.msra.mxu1 %v3244_v17  ;;  %v2396_v43 = vshll.u32 %v2392_v6, 16  ;;  %v4534_v55 = vpop.permute.xlu1 %2094  ;;  %v2394_v11 = vshrl.u32 %v2392_v6, 16 }
 0x20b   : > { %2232 = vrot.lane.b32.xlu2 %v2231_v34, %s3726_s28  ;;  %v1687_v1 = vpop.f32.mrf.mxu3  ;;  %v2315_v62 = vor.u32 %v2314_v12, %v2310_v23  ;;  %2469 = vmatpush.bf16.msra.mxu2 %v2046_v42  ;;  %v2403_v12 = vunpack.c.l.b16 %v2385_v41 }
 0x20c   : > { %v1692_v45 = vmax.f32 %v1614_v58, %v1687_v1 }
 0x20d   : > { %2296 = vrot.lane.b32.xlu1 %v2295_v26, %s3721_s24  ;;  %v2398_v26 = vrot.slane %v2396_v43, 1  ;;  %v2404_v42 = vpack.c.b16 %v2403_v12, %v2403_v12 }
 0x20e   : > { %1694 = vst.msk [vmem:[#allocation2] sm:$0xff] %vm645_vm11, %v1692_v45  ;;  %v1959_v45 = vpop.permute.xlu0 %1958 }
 0x20f   : > { %v1616_v3 = vpop.f32.mrf.mxu2  ;;  %2470 = vmatpush.bf16.msra.mxu2 %v3248_v44  ;;  %v2399_v35 = vor.u32 %v2398_v26, %v2394_v11 }
 0x210   : > { %2307 = vrot.lane.b32.xlu0 %v2306_v25, %s3722_s25 }
 0x213   : > { %2302 = vrot.lane.b32.xlu2 %v2301_v15, %s3720_s23  ;;  %v1689_v19 = vpop.f32.mrf.mxu3  ;;  %2471 = vmatpush.bf16.msra.mxu2 %v3247_v24  ;;  %v1982_v15 = vsel %vm645_vm11, %v4397_v21, %v1933_v53  ;;  %v2405_v24 = vrot.slane %v2404_v42, 1 }
 0x214   : > { %v1693_v57 = vmax.f32 %v1616_v3, %v1689_v19  ;;  %v1953_v3 = vpop.permute.xlu1 %1952  ;;  %v1985_v46 = vsel %vm1983_vm5, %v1982_v15, %v1939_v9  ;;  %v2138_v9 = vsel %vm645_vm11, %v4426_v60, %v2089_v16 }
 0x215   : > { %2316 = vrot.lane.b32.xlu1 %v2315_v62, %s3724_s27  ;;  %v1988_v21 = vsel %vm1986_vm6, %v1985_v46, %v1944_v40 }
 0x216   : > { %1695 = vst.msk [vmem:[#allocation2 + $0x8] sm:$0x3f] %vm647_vm12, %v1693_v57 }
 0x217   : > { %2472 = vmatpush.bf16.msra.mxu2 %v3246_v52 }
 0x21b   : > { %2322 = vrot.lane.b32.xlu2 %v2321_v4, %s3723_s26  ;;  %2473 = vmatpush.bf16.msra.mxu2 %v3245_v28 }
 0x21d   : > { %v1696_v27 = vld [vmem:[#allocation2] ss:$2 sm:$0x7f]  ;;  %v1697_v7 = vld [vmem:[#allocation2 + $0x1] ss:$2 sm:$0x7f] }
 0x21e   : > { %v1698_v29 = vmax.f32 %v1696_v27, %v1697_v7  ;;  %v1991_v7 = vsel %vm1989_vm7, %v1988_v21, %v1953_v3 }
 0x21f   : > { %2474 = vmatpush.bf16.msra.mxu2 %v3244_v17 }
 0x220   : > { %v1699_v32 = vadd.f32 %v4379_v33, %v1698_v29 }
 0x222   : > { %vm1700_vm0 = vcmp.ge.f32.partialorder %v1699_v32, 0.0  ;;  %v1701_v2 = vmul.f32 %v1699_v32, %v4383_v18 }
 0x224   : > { %v1702_v36 = vsel %vm1700_vm0, %v1699_v32, %v1701_v2  ;;  %v1994_v32 = vsel %vm1992_vm8, %v1991_v7, %v1959_v45  ;;  %vm2550_vm0 = vcmask 130048  }
 0x225   : > { %v1703_v31 = vpack.c.bf16 %v1702_v36, %v1702_v36 }
 0x227   : > { %v1706_v38 = vsel %vm4388_vm1, %v1703_v31, %v1705_v50 }
 0x228   : > { %1707 = vst [vmem:[#allocation3 + $0x14] sm:$0xf] %v1706_v38  ;;  %v1964_v29 = vpop.permute.xlu2 %1963 }
 0x229   : > { %v1997_v2 = vsel %vm1995_vm9, %v1994_v32, %v1964_v29 }
 0x22d   : > { %v1822_v5 = vpop.f32.mrf.mxu0 }
 0x22f   : > { %v2284_v13 = vld [vmem:[#allocation3 + $0x14] sm:$0x7] }
 0x230   : > { %v2285_v22 = vld [vmem:[#allocation3 + $0x14] sm:$0xe]  ;;  %v2325_v49 = vunpack.c.l.b16 %v2284_v13 }
 0x231   : > { %v2386_v30 = vld [vmem:[#allocation3 + $0x14] sm:$0x7]  ;;  %v2339_v63 = vunpack.c.l.b16 %v2285_v22 }
 0x232   : > { %v2326_v47 = vpack.c.b16 %v2325_v49, %v2325_v49  ;;  %v2409_v0 = vunpack.c.l.b16 %v2386_v30  ;;  %v2387_v62 = vld [vmem:[#allocation3 + $0x14] sm:$0xe]  ;;  %v1913_v30 = vld [vmem:[#allocation3 + $0x18] sm:$0xf] }
 0x233   : > { %v2340_v51 = vpack.c.b16 %v2339_v63, %v2339_v63  ;;  %v2423_v27 = vunpack.c.l.b16 %v2387_v62 }
 0x234   : > { %2327 = vrot.lane.b32.xlu0 %v2326_v47, %s3725_s22  ;;  %v1895_v54 = vpop.f32.mrf.mxu1  ;;  %v2332_v58 = vshll.u32 %v2326_v47, 16  ;;  %v2330_v56 = vshrl.u32 %v2326_v47, 16  ;;  %v2410_v48 = vpack.c.b16 %v2409_v0, %v2409_v0  ;;  %v2140_v47 = vsel %vm1983_vm5, %v2138_v9, %v4534_v55 }
 0x235   : > { %v2341_v25 = vrot.slane %v2340_v51, 1  ;;  %v1900_v34 = vmax.f32 %v1822_v5, %v1895_v54  ;;  %v1824_v23 = vpop.f32.mrf.mxu0  ;;  %v2424_v28 = vpack.c.b16 %v2423_v27, %v2423_v27  ;;  %v2109_v5 = vpop.permute.xlu2 %2108 }
 0x236   : > { %v2334_v1 = vrot.slane %v2332_v58, 1  ;;  %v2416_v37 = vshll.u32 %v2410_v48, 16  ;;  %v2414_v4 = vshrl.u32 %v2410_v48, 16 }
 0x237   : > { %2342 = vrot.lane.b32.xlu2 %v2341_v25, %s3727_s29  ;;  %1902 = vst.msk [vmem:[#allocation2] sm:$0xff] %vm645_vm11, %v1900_v34  ;;  %v2425_v40 = vrot.slane %v2424_v28, 1 }
 0x238   : > { %v2335_v10 = vor.u32 %v2334_v1, %v2330_v56  ;;  %v2418_v57 = vrot.slane %v2416_v37, 1 }
 0x23a   : > { %2336 = vrot.lane.b32.xlu1 %v2335_v10, %s3726_s28  ;;  %v2419_v52 = vor.u32 %v2418_v57, %v2414_v4 }
 0x23c   : > { %2400 = vrot.lane.b32.xlu0 %v2399_v35, %s3721_s24  ;;  %v1897_v20 = vpop.f32.mrf.mxu1  ;;  %s3624_s24 = smul.u32 12, %s4774_s14 }
 0x23d   : > { %v1901_v19 = vmax.f32 %v1824_v23, %v1897_v20  ;;  %v2120_v58 = vpop.permute.xlu2 %2119 }
 0x23f   : > { %2411 = vrot.lane.b32.xlu2 %v2410_v48, %s3722_s25  ;;  %1903 = vst.msk [vmem:[#allocation2 + $0x8] sm:$0x3f] %vm647_vm12, %v1901_v19  ;;  %v2100_v44 = vpop.permute.xlu0 %2099  ;;  %vm2001_vm12 = vcmask 654336  }
 0x242   : > { %2406 = vrot.lane.b32.xlu1 %v2405_v24, %s3720_s23  ;;  %s3025_s23 = sld [smem:[#allocation5 + $0x1]] }
 0x244   : > { %2420 = vrot.lane.b32.xlu0 %v2419_v52, %s3724_s27  ;;  %s4741_s27 = scalar_lea.vmem %s4768_s10, %s3624_s24 }
 0x245   : > { %v2193_v16 = vpop.permute.xlu2 %2192 }
 0x246   : > { %v1973_v36 = vpop.permute.xlu1 %1972  ;;  %v1904_v31 = vld [vmem:[#allocation2] ss:$2 sm:$0x7f]  ;;  %v1905_v38 = vld [vmem:[#allocation2 + $0x1] ss:$2 sm:$0x7f]  ;;  %v2242_v37 = vsel %vm645_vm11, %v4474_v8, %v2193_v16 }
 0x247   : > { %v2000_v50 = vsel %vm1998_vm10, %v1997_v2, %v1973_v36  ;;  %v1979_v17 = vpop.permute.xlu0 %1978  ;;  %v1906_v61 = vmax.f32 %v1904_v31, %v1905_v38 }
 0x248   : > { %v2003_v53 = vsel %vm2001_vm12, %v2000_v50, %v1979_v17  ;;  %v4602_v9 = vstv %s3025_s23 }
 0x249   : > { %3181 = vmatmul.msk.bf16.vlgmr.msrb.gmra.mxu2 %vm2042_vm14, %v2003_v53  ;;  %v1907_v6 = vadd.f32 %v4379_v33, %v1906_v61  ;;  %v2142_v33 = vsel %vm1986_vm6, %v2140_v47, %v2100_v44 }
 0x24a   : > { %2426 = vrot.lane.b32.xlu1 %v2425_v40, %s3723_s26  ;;  %v2144_v43 = vsel %vm1989_vm7, %v2142_v33, %v2109_v5 }
 0x24b   : > { %vm1908_vm15 = vcmp.ge.f32.partialorder %v1907_v6, 0.0  ;;  %v1909_v13 = vmul.f32 %v1907_v6, %v4383_v18 }
 0x24d   : > { %v1910_v22 = vsel %vm1908_vm15, %v1907_v6, %v1909_v13  ;;  %v2213_v23 = vpop.permute.xlu2 %2212  ;;  %v4597_v13 = vld [vmem:[%s4762_s4] ss:$0 sm:$0xff] }
 0x24e   : > { %v1911_v49 = vpack.c.bf16 %v1910_v22, %v1910_v22  ;;  %v2115_v51 = vpop.permute.xlu1 %2114 }
 0x24f   : > { %v2146_v54 = vsel %vm1992_vm8, %v2144_v43, %v2115_v51 }
 0x250   : > { %v1914_v63 = vsel %vm4388_vm1, %v1911_v49, %v1913_v30  ;;  %v2148_v60 = vsel %vm1995_vm9, %v2146_v54, %v2120_v58  ;;  %vm2066_vm1 = vcmask 124928   ;;  %v2069_v54 = vld [vmem:[#allocation4] sm:$0x7] }
 0x251   : > { %1915 = vst [vmem:[#allocation3 + $0x18] sm:$0xf] %v1914_v63 }
 0x258   : > { %v2388_v18 = vld [vmem:[#allocation3 + $0x18] sm:$0x7]  ;;  %v2135_v1 = vpop.permute.xlu1 %2134 }
 0x259   : > { %v2389_v0 = vld [vmem:[#allocation3 + $0x18] sm:$0xe]  ;;  %v2429_v25 = vunpack.c.l.b16 %v2388_v18 }
 0x25a   : > { %v2443_v59 = vunpack.c.l.b16 %v2389_v0 }
 0x25b   : > { %v2430_v34 = vpack.c.b16 %v2429_v25, %v2429_v25  ;;  %v2129_v56 = vpop.permute.xlu0 %2128 }
 0x25c   : > { %v2444_v41 = vpack.c.b16 %v2443_v59, %v2443_v59  ;;  %v2150_v55 = vsel %vm1998_vm10, %v2148_v60, %v2129_v56 }
 0x25d   : > { %2431 = vrot.lane.b32.xlu2 %v2430_v34, %s3725_s22  ;;  %v2436_v48 = vshll.u32 %v2430_v34, 16  ;;  %v2152_v45 = vsel %vm2001_vm12, %v2150_v55, %v2135_v1  ;;  %v2434_v10 = vshrl.u32 %v2430_v34, 16  ;;  %s3728_s22 = smov 32  }
 0x25e   : > { %v2445_v26 = vrot.slane %v2444_v41, 1  ;;  %3182 = vmatmul.msk.bf16.vlgmr.msrb.gmra.mxu3 %vm2042_vm14, %v2152_v45 }
 0x25f   : > { %v2438_v11 = vrot.slane %v2436_v48, 1 }
 0x260   : > { %2446 = vrot.lane.b32.xlu1 %v2445_v26, %s3727_s29  ;;  %v2204_v15 = vpop.permute.xlu1 %2203 }
 0x261   : > { %v2439_v12 = vor.u32 %v2438_v11, %v2434_v10 }
 0x263   : > { %2440 = vrot.lane.b32.xlu0 %v2439_v12, %s3726_s28  ;;  %v2199_v35 = vpop.permute.xlu0 %2198  ;;  %s3729_s28 = smov 16  }
 0x264   : > { %v2244_v20 = vsel %vm1983_vm5, %v2242_v37, %v2199_v35 }
 0x265   : > { %v2246_v3 = vsel %vm1986_vm6, %v2244_v20, %v2204_v15  ;;  %v2233_v46 = vpop.permute.xlu2 %2232  ;;  %v3258_v15 = vld [vmem:[%s4763_s5 + $0x40] sm:$0xff] }
 0x266   : > { %v2248_v19 = vsel %vm1989_vm7, %v2246_v3, %v2213_v23  ;;  %2652 = vmatpush.bf16.msrb.mxu0 %v3258_v15 }
 0x26b   : > { %v2219_v42 = vpop.permute.xlu0 %2218 }
 0x26c   : > { %v2250_v62 = vsel %vm1992_vm8, %v2248_v19, %v2219_v42 }
 0x26d   : > { %v2303_v27 = vpop.permute.xlu2 %2302 }
 0x275   : > { %v2323_v28 = vpop.permute.xlu2 %2322 }
 0x277   : > { %v2224_v57 = vpop.permute.xlu1 %2223 }
 0x278   : > { %v2252_v44 = vsel %vm1995_vm9, %v2250_v62, %v2224_v57 }
 0x279   : > { %v2254_v21 = vsel %vm1998_vm10, %v2252_v44, %v2233_v46  ;;  %v2173_v46 = vld [vmem:[#allocation4 + $0x4] sm:$0x7] }
 0x27a   : > { %v2239_v4 = vpop.permute.xlu0 %2238 }
 0x27b   : > { %v2256_v8 = vsel %vm2001_vm12, %v2254_v21, %v2239_v4 }
 0x27c   : > { %3183 = vmatmul.msk.bf16.vlgmr.msra.gmra.mxu0 %vm2042_vm14, %v2256_v8 }
 0x27d   : > { %2763 = vmatpush.bf16.msra.mxu0 %v3258_v15 }
 0x27f   : > { %v2297_v24 = vpop.permute.xlu1 %2296 }
 0x280   : > { %v2346_v7 = vsel %vm645_vm11, %v4491_v14, %v2297_v24 }
 0x281   : > { %v2348_v52 = vsel %vm1983_vm5, %v2346_v7, %v2303_v27 }
 0x282   : > { %v2308_v29 = vpop.permute.xlu0 %2307 }
 0x283   : > { %v2350_v2 = vsel %vm1986_vm6, %v2348_v52, %v2308_v29 }
 0x287   : > { %v2317_v32 = vpop.permute.xlu1 %2316 }
 0x288   : > { %v2352_v36 = vsel %vm1989_vm7, %v2350_v2, %v2317_v32 }
 0x289   : > { %v2354_v31 = vsel %vm1992_vm8, %v2352_v36, %v2323_v28 }
 0x291   : > { %v2343_v61 = vpop.permute.xlu2 %2342 }
 0x299   : > { %v2412_v49 = vpop.permute.xlu2 %2411 }
 0x2a6   : > { %v2328_v50 = vpop.permute.xlu0 %2327 }
 0x2a7   : > { %v2356_v38 = vsel %vm1995_vm9, %v2354_v31, %v2328_v50 }
 0x2ac   : > { %v2337_v17 = vpop.permute.xlu1 %2336 }
 0x2ad   : > { %v2358_v53 = vsel %vm1998_vm10, %v2356_v38, %v2337_v17 }
 0x2ae   : > { %v2360_v14 = vsel %vm2001_vm12, %v2358_v53, %v2343_v61  ;;  %v2401_v40 = vpop.permute.xlu0 %2400  ;;  %v2277_v53 = vld [vmem:[#allocation4 + $0x8] sm:$0x7] }
 0x2af   : > { %3184 = vmatmul.msk.bf16.vlgmr.msra.gmra.mxu1 %vm2042_vm14, %v2360_v14  ;;  %v2450_v22 = vsel %vm645_vm11, %v4528_v39, %v2401_v40  ;;  %vm4608_vm11 = vmand %vm2066_vm1, %vm2067_vm13 }
 0x2b4   : > { %v2407_v6 = vpop.permute.xlu1 %2406 }
 0x2b5   : > { %v2452_v30 = vsel %vm1983_vm5, %v2450_v22, %v2407_v6 }
 0x2b6   : > { %v2421_v5 = vpop.permute.xlu0 %2420  ;;  %v2454_v33 = vsel %vm1986_vm6, %v2452_v30, %v2412_v49 }
 0x2b7   : > { %v2456_v18 = vsel %vm1989_vm7, %v2454_v33, %v2421_v5  ;;  %v2432_v58 = vpop.permute.xlu2 %2431  ;;  %vm2554_vm7 = vcmask 261120  }
 0x2bc   : > { %v2427_v51 = vpop.permute.xlu1 %2426 }
 0x2bd   : > { %v2458_v25 = vsel %vm1992_vm8, %v2456_v18, %v2427_v51  ;;  %vm2557_vm8 = vcmask 392192  }
 0x2be   : > { %v2460_v60 = vsel %vm1995_vm9, %v2458_v25, %v2432_v58  ;;  %vm2560_vm9 = vcmask 523264  }
 0x2cc   : > { %v2057_v63 = vpop.f32.mrf.mxu2 }
 0x2cd   : > { %v2058_v47 = vadd.f32 %v4597_v13, %v2057_v63 }
 0x2cf   : > { %vm2061_vm2 = vcmp.ge.f32.partialorder %v2058_v47, 0.0  ;;  %v2063_v43 = vmul.f32 %v4602_v9, %v2058_v47 }
 0x2d1   : > { %v2064_v39 = vsel %vm2061_vm2, %v2058_v47, %v2063_v43 }
 0x2d2   : > { %v2065_v59 = vpack.c.bf16 %v2064_v39, %v2064_v39  ;;  %v2447_v1 = vpop.permute.xlu1 %2446 }
 0x2d4   : > { %v2070_v34 = vsel %vm4608_vm11, %v2065_v59, %v2069_v54  ;;  %v2059_v41 = vpop.f32.mrf.mxu2 }
 0x2d5   : > { %2071 = vst [vmem:[#allocation4] sm:$0x7] %v2070_v34  ;;  %v2441_v56 = vpop.permute.xlu0 %2440  ;;  %v2381_v34 = vld [vmem:[#allocation4 + $0xc] sm:$0x7] }
 0x2d6   : > { %v2462_v55 = vsel %vm1998_vm10, %v2460_v60, %v2441_v56  ;;  %vm2565_vm10 = vcmask 785408  }
 0x2d7   : > { %v2464_v26 = vsel %vm2001_vm12, %v2462_v55, %v2447_v1 }
 0x2d8   : > { %3185 = vmatmul.msk.bf16.vlgmr.msra.gmra.mxu2 %vm2042_vm14, %v2464_v26  ;;  %vm2568_vm14 = vcmask 916480  }
 0x2dc   : > { %v2489_v48 = vld [vmem:[#allocation4] sm:$0x6] }
 0x2dd   : > { %v4619_v45 = vld [vmem:[#allocation4] sm:$0x3]  ;;  %v2507_v10 = vunpack.c.l.b16 %v2489_v48 }
 0x2de   : > { %v2495_v11 = vunpack.c.l.b16 %v4619_v45 }
 0x2df   : > { %v2508_v12 = vpack.c.b16 %v2507_v10, %v2507_v10 }
 0x2e0   : > { %v2496_v16 = vpack.c.b16 %v2495_v11, %v2495_v11 }
 0x2e1   : > { %v2509_v35 = vrot.slane %v2508_v12, 1  ;;  %v2164_v23 = vpop.f32.mrf.mxu3 }
 0x2e2   : > { %v2500_v37 = vshll.u32 %v2496_v16, 16  ;;  %v2165_v20 = vadd.f32 %v4597_v13, %v2164_v23  ;;  %v2498_v42 = vshrl.u32 %v2496_v16, 16 }
 0x2e3   : > { %2510 = vrot.lane.b32.xlu0 %v2509_v35, %s3728_s22 }
 0x2e4   : > { %v2502_v3 = vrot.slane %v2500_v37, 1  ;;  %vm2168_vm3 = vcmp.ge.f32.partialorder %v2165_v20, 0.0  ;;  %v2169_v19 = vmul.f32 %v2165_v20, %v4602_v9 }
 0x2e6   : > { %v2503_v62 = vor.u32 %v2502_v3, %v2498_v42  ;;  %v2170_v57 = vsel %vm2168_vm3, %v2165_v20, %v2169_v19  ;;  %v3256_v20 = vld [vmem:[%s4763_s5 + $0x30] sm:$0xff]  ;;  %v3255_v42 = vld [vmem:[%s4763_s5 + $0x28] sm:$0xff]  ;;  %v3254_v3 = vld [vmem:[%s4763_s5 + $0x20] sm:$0xff] }
 0x2e7   : > { %v2171_v44 = vpack.c.bf16 %v2170_v57, %v2170_v57  ;;  %v3253_v19 = vld [vmem:[%s4763_s5 + $0x18] sm:$0xff]  ;;  %v3251_v57 = vld [vmem:[%s4763_s5 + $0x8] sm:$0xff] }
 0x2e8   : > { %2504 = vrot.lane.b32.xlu2 %v2503_v62, %s3729_s28  ;;  %v3252_v62 = vld [vmem:[%s4763_s5 + $0x10] sm:$0xff] }
 0x2e9   : > { %v2174_v21 = vsel %vm4608_vm11, %v2171_v44, %v2173_v46  ;;  %v2166_v4 = vpop.f32.mrf.mxu3 }
 0x2ea   : > { %2175 = vst [vmem:[#allocation4 + $0x4] sm:$0x7] %v2174_v21  ;;  %v3250_v4 = vld [vmem:[%s4763_s5] sm:$0xff] }
 0x2f1   : > { %v4631_v8 = vld [vmem:[#allocation4 + $0x4] sm:$0x3] }
 0x2f2   : > { %v2491_v24 = vld [vmem:[#allocation4 + $0x4] sm:$0x6]  ;;  %v2513_v27 = vunpack.c.l.b16 %v4631_v8 }
 0x2f3   : > { %v2527_v7 = vunpack.c.l.b16 %v2491_v24 }
 0x2f4   : > { %v2514_v29 = vpack.c.b16 %v2513_v27, %v2513_v27  ;;  %v2485_v27 = vld [vmem:[#allocation4 + $0x10] sm:$0x7] }
 0x2f5   : > { %v2528_v52 = vpack.c.b16 %v2527_v7, %v2527_v7 }
 0x2f6   : > { %2515 = vrot.lane.b32.xlu1 %v2514_v29, %s3730_s16  ;;  %v2520_v28 = vshll.u32 %v2514_v29, 16  ;;  %v2518_v50 = vshrl.u32 %v2514_v29, 16 }
 0x2f7   : > { %v2529_v32 = vrot.slane %v2528_v52, 1 }
 0x2f8   : > { %v2522_v31 = vrot.slane %v2520_v28, 1 }
 0x2f9   : > { %v2268_v2 = vpop.f32.mrf.mxu0  ;;  %2530 = vrot.lane.b32.xlu0 %v2529_v32, %s3727_s29 }
 0x2fa   : > { %v2269_v36 = vadd.f32 %v4597_v13, %v2268_v2  ;;  %v2523_v17 = vor.u32 %v2522_v31, %v2518_v50 }
 0x2fc   : > { %vm2272_vm4 = vcmp.ge.f32.partialorder %v2269_v36, 0.0  ;;  %v2273_v38 = vmul.f32 %v2269_v36, %v4602_v9  ;;  %2524 = vrot.lane.b32.xlu2 %v2523_v17, %s3731_s17 }
 0x2fe   : > { %v2274_v61 = vsel %vm2272_vm4, %v2269_v36, %v2273_v38 }
 0x2ff   : > { %v2275_v14 = vpack.c.bf16 %v2274_v61, %v2274_v61 }
 0x301   : > { %v2278_v40 = vsel %vm4608_vm11, %v2275_v14, %v2277_v53  ;;  %v2270_v6 = vpop.f32.mrf.mxu0  ;;  %2696 = vrot.lane.b32.xlu0 %v2523_v17, %s3729_s28 }
 0x302   : > { %2279 = vst [vmem:[#allocation4 + $0x8] sm:$0x7] %v2278_v40 }
 0x309   : > { %v4642_v22 = vld [vmem:[#allocation4 + $0x8] sm:$0x3] }
 0x30a   : > { %v2493_v30 = vld [vmem:[#allocation4 + $0x8] sm:$0x6]  ;;  %v2533_v49 = vunpack.c.l.b16 %v4642_v22 }
 0x30b   : > { %v2547_v63 = vunpack.c.l.b16 %v2493_v30 }
 0x30c   : > { %v2534_v5 = vpack.c.b16 %v2533_v49, %v2533_v49 }
 0x30d   : > { %v2548_v47 = vpack.c.b16 %v2547_v63, %v2547_v63 }
 0x30e   : > { %2535 = vrot.lane.b32.xlu1 %v2534_v5, %s3732_s18  ;;  %v2540_v51 = vshll.u32 %v2534_v5, 16  ;;  %v2538_v43 = vshrl.u32 %v2534_v5, 16 }
 0x30f   : > { %v2549_v33 = vrot.slane %v2548_v47, 1 }
 0x310   : > { %v2542_v18 = vrot.slane %v2540_v51, 1 }
 0x311   : > { %3222 = vmatmul.msk.bf16.vlgmr.msrb.gmra.mxu0 %vm2550_vm0, %v2549_v33 }
 0x312   : > { %2858 = vmatpush.bf16.msrb.mxu0 %v3258_v15  ;;  %v2543_v39 = vor.u32 %v2542_v18, %v2538_v43  ;;  %v3257_v15 = vld [vmem:[%s4763_s5 + $0x38] sm:$0xff] }
 0x313   : > { %2632 = vmatpush.bf16.msra.mxu3 %v3257_v15  ;;  %2743 = vmatpush.bf16.msrb.mxu2 %v3257_v15 }
 0x314   : > { %2702 = vrot.lane.b32.xlu0 %v2543_v39, %s3731_s17  ;;  %2544 = vrot.lane.b32.xlu2 %v2543_v39, %s3733_s19 }
 0x316   : > { %2698 = vrot.lane.b32.xlu1 %v2529_v32, %s3728_s22 }
 0x317   : > { %2633 = vmatpush.bf16.msra.mxu3 %v3256_v20  ;;  %2744 = vmatpush.bf16.msrb.mxu2 %v3256_v20 }
 0x31b   : > { %2634 = vmatpush.bf16.msra.mxu3 %v3255_v42  ;;  %2745 = vmatpush.bf16.msrb.mxu2 %v3255_v42 }
 0x31c   : > { %2700 = vrot.lane.b32.xlu2 %v2534_v5, %s3730_s16 }
 0x31e   : > { %2704 = vrot.lane.b32.xlu1 %v2549_v33, %s3727_s29 }
 0x31f   : > { %2635 = vmatpush.bf16.msra.mxu3 %v3254_v3  ;;  %2746 = vmatpush.bf16.msrb.mxu2 %v3254_v3 }
 0x323   : > { %2636 = vmatpush.bf16.msra.mxu3 %v3253_v19  ;;  %2747 = vmatpush.bf16.msrb.mxu2 %v3253_v19 }
 0x326   : > { %2791 = vrot.lane.b32.xlu1 %v2543_v39, %s3729_s28 }
 0x327   : > { %2637 = vmatpush.bf16.msra.mxu3 %v3252_v62  ;;  %2748 = vmatpush.bf16.msrb.mxu2 %v3252_v62 }
 0x32b   : > { %2638 = vmatpush.bf16.msra.mxu3 %v3251_v57  ;;  %2749 = vmatpush.bf16.msrb.mxu2 %v3251_v57 }
 0x32c   : > { %v2372_v54 = vpop.f32.mrf.mxu1 }
 0x32d   : > { %v2373_v25 = vadd.f32 %v4597_v13, %v2372_v54 }
 0x32f   : > { %vm2376_vm5 = vcmp.ge.f32.partialorder %v2373_v25, 0.0  ;;  %v2377_v59 = vmul.f32 %v2373_v25, %v4602_v9  ;;  %2639 = vmatpush.bf16.msra.mxu3 %v3250_v4  ;;  %2750 = vmatpush.bf16.msrb.mxu2 %v3250_v4 }
 0x331   : > { %v2378_v58 = vsel %vm2376_vm5, %v2373_v25, %v2377_v59 }
 0x332   : > { %v2379_v41 = vpack.c.bf16 %v2378_v58, %v2378_v58 }
 0x333   : > { %2838 = vmatpush.bf16.msrb.mxu3 %v3257_v15 }
 0x334   : > { %v2382_v60 = vsel %vm4608_vm11, %v2379_v41, %v2381_v34  ;;  %v2374_v56 = vpop.f32.mrf.mxu1 }
 0x335   : > { %2383 = vst [vmem:[#allocation4 + $0xc] sm:$0x7] %v2382_v60 }
 0x337   : > { %2839 = vmatpush.bf16.msrb.mxu3 %v3256_v20 }
 0x33b   : > { %2840 = vmatpush.bf16.msrb.mxu3 %v3255_v42 }
 0x33c   : > { %v2694_v1 = vld [vmem:[#allocation4 + $0xc] sm:$0x3] }
 0x33d   : > { %v2695_v55 = vld [vmem:[#allocation4 + $0xc] sm:$0x6]  ;;  %v2707_v26 = vunpack.c.l.b16 %v2694_v1 }
 0x33e   : > { %v2721_v48 = vunpack.c.l.b16 %v2695_v55 }
 0x33f   : > { %v2708_v10 = vpack.c.b16 %v2707_v26, %v2707_v26  ;;  %2841 = vmatpush.bf16.msrb.mxu3 %v3254_v3 }
 0x340   : > { %v2722_v11 = vpack.c.b16 %v2721_v48, %v2721_v48 }
 0x341   : > { %2709 = vrot.lane.b32.xlu2 %v2708_v10, %s3732_s18  ;;  %v2714_v16 = vshll.u32 %v2708_v10, 16  ;;  %v2712_v35 = vshrl.u32 %v2708_v10, 16 }
 0x342   : > { %v2723_v12 = vrot.slane %v2722_v11, 1  ;;  %v2505_v50 = vpop.permute.xlu2 %2504 }
 0x343   : > { %v2716_v37 = vrot.slane %v2714_v16, 1  ;;  %2842 = vmatpush.bf16.msrb.mxu3 %v3253_v19  ;;  %v2553_v40 = vsel %vm2550_vm0, %v4619_v45, %v2505_v50 }
 0x344   : > { %3232 = vmatmul.msk.bf16.vlgmr.msra.gmra.mxu0 %vm2550_vm0, %v2723_v12 }
 0x345   : > { %v2717_v23 = vor.u32 %v2716_v37, %v2712_v35 }
 0x347   : > { %2797 = vrot.lane.b32.xlu1 %v2717_v23, %s3731_s17  ;;  %2718 = vrot.lane.b32.xlu0 %v2717_v23, %s3733_s19 }
 0x348   : > { %2843 = vmatpush.bf16.msrb.mxu3 %v3252_v62 }
 0x349   : > { %2793 = vrot.lane.b32.xlu2 %v2549_v33, %s3728_s22 }
 0x34c   : > { %2844 = vmatpush.bf16.msrb.mxu3 %v3251_v57 }
 0x34f   : > { %2795 = vrot.lane.b32.xlu0 %v2708_v10, %s3730_s16 }
 0x350   : > { %2845 = vmatpush.bf16.msrb.mxu3 %v3250_v4  ;;  %v3259_v4 = vld [vmem:[%s4765_s7] sm:$0xff] }
 0x351   : > { %2799 = vrot.lane.b32.xlu2 %v2723_v12, %s3727_s29 }
 0x355   : > { %v2511_v61 = vpop.permute.xlu0 %2510 }
 0x356   : > { %v2556_v6 = vsel %vm2554_vm7, %v2553_v40, %v2511_v61  ;;  %v2525_v30 = vpop.permute.xlu2 %2524 }
 0x35b   : > { %v2476_v46 = vpop.f32.mrf.mxu2 }
 0x35c   : > { %v2477_v44 = vadd.f32 %v4597_v13, %v2476_v46 }
 0x35e   : > { %vm2480_vm6 = vcmp.ge.f32.partialorder %v2477_v44, 0.0  ;;  %v2481_v21 = vmul.f32 %v2477_v44, %v4602_v9 }
 0x360   : > { %v2482_v24 = vsel %vm2480_vm6, %v2477_v44, %v2481_v21 }
 0x361   : > { %v2483_v7 = vpack.c.bf16 %v2482_v24, %v2482_v24 }
 0x363   : > { %v2486_v29 = vsel %vm4608_vm11, %v2483_v7, %v2485_v27  ;;  %v2478_v52 = vpop.f32.mrf.mxu2  ;;  %v3669_v7 = vld [vmem:[%s4764_s6] ss:$0 sm:$0xff] }
 0x364   : > { %2487 = vst [vmem:[#allocation4 + $0x10] sm:$0x7] %v2486_v29 }
 0x368   : > { %v2516_v14 = vpop.permute.xlu1 %2515 }
 0x369   : > { %v2559_v49 = vsel %vm2557_vm8, %v2556_v6, %v2516_v14 }
 0x36a   : > { %v2562_v63 = vsel %vm2560_vm9, %v2559_v49, %v2525_v30 }
 0x36b   : > { %v2789_v13 = vld [vmem:[#allocation4 + $0x10] sm:$0x3]  ;;  %v2531_v5 = vpop.permute.xlu0 %2530 }
 0x36c   : > { %v2790_v9 = vld [vmem:[#allocation4 + $0x10] sm:$0x6]  ;;  %v2802_v32 = vunpack.c.l.b16 %v2789_v13  ;;  %v2564_v47 = vsel %vm2001_vm12, %v2562_v63, %v2531_v5  ;;  %v2659_v13 = vstv %s3026_s30 }
 0x36d   : > { %v2816_v28 = vunpack.c.l.b16 %v2790_v9 }
 0x36e   : > { %v2803_v2 = vpack.c.b16 %v2802_v32, %v2802_v32  ;;  %v2545_v51 = vpop.permute.xlu2 %2544 }
 0x36f   : > { %v2817_v36 = vpack.c.b16 %v2816_v28, %v2816_v28 }
 0x370   : > { %2804 = vrot.lane.b32.xlu0 %v2803_v2, %s3732_s18  ;;  %v2809_v38 = vshll.u32 %v2803_v2, 16  ;;  %v2807_v0 = vshrl.u32 %v2803_v2, 16 }
 0x371   : > { %v2818_v31 = vrot.slane %v2817_v36, 1 }
 0x372   : > { %v2811_v17 = vrot.slane %v2809_v38, 1 }
 0x373   : > { %3234 = vmatmul.msk.bf16.vlgmr.msrb.gmra.mxu0 %vm2550_vm0, %v2818_v31  ;;  %v2697_v54 = vpop.permute.xlu0 %2696 }
 0x374   : > { %v2812_v53 = vor.u32 %v2811_v17, %v2807_v0  ;;  %v2726_v58 = vsel %vm2550_vm0, %v4631_v8, %v2697_v54 }
 0x376   : > { %2813 = vrot.lane.b32.xlu1 %v2812_v53, %s3733_s19  ;;  %v2701_v59 = vpop.permute.xlu2 %2700 }
 0x380   : > { %v2536_v33 = vpop.permute.xlu1 %2535 }
 0x381   : > { %v2567_v45 = vsel %vm2565_vm10, %v2564_v47, %v2536_v33  ;;  %v3670_v47 = vld [vmem:[%s4766_s8] ss:$0 sm:$0xff] }
 0x382   : > { %v2570_v43 = vsel %vm2568_vm14, %v2567_v45, %v2545_v51 }
 0x383   : > { %2640 = vmatmul.bf16.vlgmr.msra.gmra.mxu3 %v2570_v43 }
 0x386   : > { %v2703_v34 = vpop.permute.xlu0 %2702 }
 0x388   : > { %v2699_v25 = vpop.permute.xlu1 %2698 }
 0x389   : > { %v2728_v41 = vsel %vm2554_vm7, %v2726_v58, %v2699_v25  ;;  %v420_v25 = vlaneseq }
 0x38a   : > { %v2730_v60 = vsel %vm2557_vm8, %v2728_v41, %v2701_v59 }
 0x38b   : > { %v2732_v55 = vsel %vm2560_vm9, %v2730_v60, %v2703_v34  ;;  %v4734_v34 = vand.u32 127, %v420_v25 }
 0x38d   : > { %vm422_vm11 = vcmp.eq.s32.totalorder %v4734_v34, 0 }
 0x38e   : > { %v2654_v18 = vpop.f32.mrf.mxu0 }
 0x390   : > { %v2705_v56 = vpop.permute.xlu1 %2704 }
 0x391   : > { %v2734_v26 = vsel %vm2001_vm12, %v2732_v55, %v2705_v56 }
 0x396   : > { %v2656_v39 = vpop.f32.mrf.mxu0 }
 0x398   : > { %v2792_v8 = vpop.permute.xlu1 %2791 }
 0x399   : > { %v2821_v15 = vsel %vm2550_vm0, %v4642_v22, %v2792_v8  ;;  %v3260_v22 = vld [vmem:[%s4765_s7 + $0x8] sm:$0xff]  ;;  %vm2944_vm0 = vcmask 34816  }
 0x39a   : > { %2687 = vmatpush.bf16.msrb.mxu1 %v3260_v22 }
 0x39b   : > { %v2710_v1 = vpop.permute.xlu2 %2709 }
 0x39c   : > { %v2736_v48 = vsel %vm2565_vm10, %v2734_v26, %v2710_v1 }
 0x39e   : > { %2688 = vmatpush.bf16.msrb.mxu1 %v3259_v4 }
 0x3a2   : > { %2782 = vmatpush.bf16.msra.mxu1 %v3260_v22 }
 0x3a3   : > { %v2794_v35 = vpop.permute.xlu2 %2793 }
 0x3a4   : > { %v2823_v23 = vsel %vm2554_vm7, %v2821_v15, %v2794_v35 }
 0x3a6   : > { %2783 = vmatpush.bf16.msra.mxu1 %v3259_v4 }
 0x3ab   : > { %v2800_v62 = vpop.permute.xlu2 %2799 }
 0x3b9   : > { %v2719_v10 = vpop.permute.xlu0 %2718  ;;  %v2798_v20 = vpop.permute.xlu1 %2797 }
 0x3ba   : > { %v2738_v11 = vsel %vm2568_vm14, %v2736_v48, %v2719_v10 }
 0x3bb   : > { %2751 = vmatmul.bf16.vlgmr.msrb.gmra.mxu2 %v2738_v11 }
 0x3c1   : > { %v2765_v12 = vpop.f32.mrf.mxu0  ;;  %v2796_v37 = vpop.permute.xlu0 %2795 }
 0x3c2   : > { %v2825_v42 = vsel %vm2557_vm8, %v2823_v23, %v2796_v37 }
 0x3c3   : > { %v2827_v3 = vsel %vm2560_vm9, %v2825_v42, %v2798_v20 }
 0x3c4   : > { %v2829_v57 = vsel %vm2001_vm12, %v2827_v3, %v2800_v62 }
 0x3c9   : > { %v2767_v16 = vpop.f32.mrf.mxu0 }
 0x3e2   : > { %v2805_v19 = vpop.permute.xlu0 %2804 }
 0x3e3   : > { %v2831_v46 = vsel %vm2565_vm10, %v2829_v57, %v2805_v19 }
 0x3e8   : > { %v2814_v44 = vpop.permute.xlu1 %2813 }
 0x3e9   : > { %v2833_v21 = vsel %vm2568_vm14, %v2831_v46, %v2814_v44 }
 0x3ea   : > { %2846 = vmatmul.bf16.vlgmr.msrb.gmra.mxu3 %v2833_v21 }
 0x3f0   : > { %v2860_v24 = vpop.f32.mrf.mxu0 }
 0x3f8   : > { %v2862_v27 = vpop.f32.mrf.mxu0 }
 0x406   : > { %v2641_v29 = vpop.f32.mrf.mxu3 }
 0x407   : > { %v2642_v52 = vadd.f32 %v3669_v7, %v2641_v29 }
 0x409   : > { %v2655_v9 = vadd.f32 %v2654_v18, %v2642_v52 }
 0x40b   : > { %vm2658_vm12 = vcmp.ge.f32.partialorder %v2655_v9, 0.0  ;;  %v2660_v32 = vmul.f32 %v2659_v13, %v2655_v9 }
 0x40d   : > { %v2661_v28 = vsel %vm2658_vm12, %v2655_v9, %v2660_v32 }
 0x40e   : > { %v2662_v2 = vpack.c.bf16 %v2661_v28, %v2661_v28  ;;  %v2643_v36 = vpop.f32.mrf.mxu3 }
 0x410   : > { %3231 = vmatmul.msk.bf16.vlgmr.msrb.gmra.mxu1 %vm2554_vm7, %v2662_v2 }
 0x411   : > { %2877 = vmatpush.bf16.msrb.mxu1 %v3260_v22 }
 0x415   : > { %2878 = vmatpush.bf16.msrb.mxu1 %v3259_v4 }
 0x43e   : > { %v2752_v50 = vpop.f32.mrf.mxu2 }
 0x43f   : > { %v2753_v31 = vadd.f32 %v3669_v7, %v2752_v50 }
 0x441   : > { %v2766_v38 = vadd.f32 %v2765_v12, %v2753_v31 }
 0x443   : > { %vm2769_vm15 = vcmp.ge.f32.partialorder %v2766_v38, 0.0  ;;  %v2770_v0 = vmul.f32 %v2766_v38, %v2659_v13 }
 0x445   : > { %v2771_v17 = vsel %vm2769_vm15, %v2766_v38, %v2770_v0 }
 0x446   : > { %v2772_v61 = vpack.c.bf16 %v2771_v17, %v2771_v17  ;;  %v2754_v53 = vpop.f32.mrf.mxu2 }
 0x448   : > { %3233 = vmatmul.msk.bf16.vlgmr.msra.gmra.mxu1 %vm2554_vm7, %v2772_v61 }
 0x46d   : > { %v2847_v14 = vpop.f32.mrf.mxu3 }
 0x46e   : > { %v2848_v40 = vadd.f32 %v3669_v7, %v2847_v14 }
 0x470   : > { %v2861_v6 = vadd.f32 %v2860_v24, %v2848_v40 }
 0x472   : > { %vm2864_vm1 = vcmp.ge.f32.partialorder %v2861_v6, 0.0  ;;  %v2865_v30 = vmul.f32 %v2861_v6, %v2659_v13 }
 0x474   : > { %v2866_v49 = vsel %vm2864_vm1, %v2861_v6, %v2865_v30 }
 0x475   : > { %v2867_v63 = vpack.c.bf16 %v2866_v49, %v2866_v49  ;;  %v2849_v5 = vpop.f32.mrf.mxu3 }
 0x477   : > { %3235 = vmatmul.msk.bf16.vlgmr.msrb.gmra.mxu1 %vm2554_vm7, %v2867_v63 }
 0x48d   : > { %v2690_v33 = vpop.f32.mrf.mxu1 }
 0x48e   : > { %v2691_v51 = vadd.f32 %v3670_v47, %v2690_v33 }
 0x490   : > { %v3236_v45 = vmul.f32 -1.442695, %v2691_v51 }
 0x492   : > { %3671 = vpow2.f32 %v3236_v45 }
 0x495   : > { %v2692_v43 = vpop.f32.mrf.mxu1 }
 0x498   : > { %v3672_v18 = vpop.eup %3671 }
 0x499   : > { %v2893_v39 = vadd.f32 1.0, %v3672_v18 }
 0x49b   : > { %3673 = vrcp.f32 %v2893_v39  ;;  %v2907_v41 = vand.u32 2147483648, %v2893_v39  ;;  %v2905_v56 = vand.u32 2147483647, %v2893_v39  ;;  %vm2901_vm2 = vweird.f32 %v2893_v39 }
 0x49d   : > { %v2908_v55 = vor.u32 1.1754944e-38, %v2907_v41  ;;  %vm2906_vm4 = vcmp.eq.f32.partialorder %v2905_v56, 8.507059e+37 }
 0x4a1   : > { %v3674_v54 = vpop.eup %3673 }
 0x4a2   : > { %v2897_v59 = vmul.f32 %v3674_v54, %v2893_v39  ;;  %vm2902_vm13 = vweird.f32 %v3674_v54 }
 0x4a3   : > { %vm2903_vm3 = vmor %vm2901_vm2, %vm2902_vm13 }
 0x4a4   : > { %v2898_v58 = vsub.f32 1.0, %v2897_v59 }
 0x4a6   : > { %v2899_v60 = vmul.f32 %v3674_v54, %v2898_v58 }
 0x4a8   : > { %v2900_v1 = vadd.f32 %v3674_v54, %v2899_v60 }
 0x4aa   : > { %v2904_v26 = vsel %vm2903_vm3, %v3674_v54, %v2900_v1 }
 0x4ab   : > { %v2909_v48 = vsel %vm2906_vm4, %v2908_v55, %v2904_v26 }
 0x4ac   : > { %v2941_v10 = vsel %vm422_vm11, %v2909_v48, %v2691_v51 }
 0x4ad   : > { %2945 = vst.msk [vmem:[%s4741_s27] sm:$0x7] %vm2944_vm0, %v2941_v10 }
 0x4c5   : > { %v2785_v11 = vpop.f32.mrf.mxu1 }
 0x4c6   : > { %v2786_v12 = vadd.f32 %v3670_v47, %v2785_v11 }
 0x4c8   : > { %v3237_v16 = vmul.f32 -1.442695, %v2786_v12 }
 0x4ca   : > { %3675 = vpow2.f32 %v3237_v16 }
 0x4cd   : > { %v2787_v8 = vpop.f32.mrf.mxu1 }
 0x4d0   : > { %v3676_v35 = vpop.eup %3675 }
 0x4d1   : > { %v2894_v37 = vadd.f32 1.0, %v3676_v35 }
 0x4d3   : > { %3677 = vrcp.f32 %v2894_v37  ;;  %v2922_v42 = vand.u32 2147483648, %v2894_v37  ;;  %v2920_v19 = vand.u32 2147483647, %v2894_v37  ;;  %vm2916_vm6 = vweird.f32 %v2894_v37 }
 0x4d5   : > { %v2923_v57 = vor.u32 1.1754944e-38, %v2922_v42  ;;  %vm2921_vm8 = vcmp.eq.f32.partialorder %v2920_v19, 8.507059e+37 }
 0x4d9   : > { %v3678_v15 = vpop.eup %3677 }
 0x4da   : > { %v2912_v23 = vmul.f32 %v3678_v15, %v2894_v37  ;;  %vm2917_vm5 = vweird.f32 %v3678_v15 }
 0x4db   : > { %vm2918_vm7 = vmor %vm2916_vm6, %vm2917_vm5 }
 0x4dc   : > { %v2913_v20 = vsub.f32 1.0, %v2912_v23 }
 0x4de   : > { %v2914_v3 = vmul.f32 %v3678_v15, %v2913_v20 }
 0x4e0   : > { %v2915_v62 = vadd.f32 %v3678_v15, %v2914_v3 }
 0x4e2   : > { %v2919_v46 = vsel %vm2918_vm7, %v3678_v15, %v2915_v62 }
 0x4e3   : > { %v2924_v44 = vsel %vm2921_vm8, %v2923_v57, %v2919_v46 }
 0x4e4   : > { %v2942_v21 = vsel %vm422_vm11, %v2924_v44, %v2786_v12 }
 0x4e5   : > { %2946 = vst.msk [vmem:[%s4741_s27 + $0x4] sm:$0x7] %vm2944_vm0, %v2942_v21 }
 0x4f4   : > { %v2880_v22 = vpop.f32.mrf.mxu1 }
 0x4f5   : > { %v2881_v4 = vadd.f32 %v3670_v47, %v2880_v22 }
 0x4f7   : > { %v3238_v24 = vmul.f32 -1.442695, %v2881_v4 }
 0x4f9   : > { %3679 = vpow2.f32 %v3238_v24 }
 0x4fc   : > { %v2882_v27 = vpop.f32.mrf.mxu1 }
 0x4ff   : > { %v3680_v7 = vpop.eup %3679 }
 0x500   : > { %v2895_v29 = vadd.f32 1.0, %v3680_v7 }
 0x502   : > { %3681 = vrcp.f32 %v2895_v29  ;;  %v2937_v32 = vand.u32 2147483648, %v2895_v29  ;;  %v2935_v2 = vand.u32 2147483647, %v2895_v29  ;;  %vm2931_vm10 = vweird.f32 %v2895_v29 }
 0x504   : > { %v2938_v50 = vor.u32 1.1754944e-38, %v2937_v32  ;;  %vm2936_vm12 = vcmp.eq.f32.partialorder %v2935_v2, 8.507059e+37 }
 0x508   : > { %v3682_v52 = vpop.eup %3681 }
 0x509   : > { %v2927_v13 = vmul.f32 %v3682_v52, %v2895_v29  ;;  %vm2932_vm9 = vweird.f32 %v3682_v52 }
 0x50a   : > { %vm2933_vm14 = vmor %vm2931_vm10, %vm2932_vm9 }
 0x50b   : > { %v2928_v9 = vsub.f32 1.0, %v2927_v13 }
 0x50d   : > { %v2929_v28 = vmul.f32 %v3682_v52, %v2928_v9 }
 0x50f   : > { %v2930_v36 = vadd.f32 %v3682_v52, %v2929_v28 }
 0x511   : > { %v2934_v31 = vsel %vm2933_vm14, %v3682_v52, %v2930_v36 }
 0x512   : > { %v2939_v38 = vsel %vm2936_vm12, %v2938_v50, %v2934_v31 }
 0x513   : > { %v2943_v0 = vsel %vm422_vm11, %v2939_v38, %v2881_v4 }
 0x514   : > { %2947 = vst.msk [vmem:[%s4741_s27 + $0x8] sm:$0x7] %vm2944_vm0, %v2943_v0 }
 0x515 PF: > { %s21_s13 = sadd.s32 1, %s3708_s13  }
 0x516   : > { %p18_p7 = scmp.ge.s32.totalorder %s21_s13, 4  }
 0x518   :  { %20 = sbr.rel (!%p18_p7) target bundleno = 1 (0x1), region = 121 }
 0x51d   :  { %2969 = vsyncpa [#allocation6], 1 }
 0x51e   :  { %2971 = vsyncpa [#allocation6 + $0x1], 1 }

</bundles_post_ra>
